<compile_context>
chip_gen: v7x
topology: tpu7x:2x2x1
jax: 0.10.0
libtpu: 0.0.40
codegen_flags: <defaults>
</compile_context>

<pallas_src>
import functools

import jax
import jax.numpy as jnp
from jax.experimental import pallas as pl
from jax.experimental.pallas import tpu as pltpu


LANE = 128
S_T_PAIR = [(16, 64), (12, 128), (16, 256), (48, 512), (160, 512)]
STUDENT_CH = [s for s, _ in S_T_PAIR]   # 16, 12, 16, 48, 160
TEACHER_CH = [t for _, t in S_T_PAIR]   # 64, 128, 256, 512, 512
VMEM_LIMIT = 32 * 1024 * 1024           # safe on v5e/v6e/v7x for these tiles


def _round_up(n, m):
    return ((n + m - 1) // m) * m


# -----------------------------------------------------------------------------
# Pallas kernels
# -----------------------------------------------------------------------------
def _conv_bn_relu_kernel(x_ref, w_ref, b_ref, o_ref):
    # x_ref: (TM, C_in) bf16   w_ref: (C_in, C_out) bf16 (BN scale folded in)
    # b_ref: (1, C_out) f32    o_ref: (TM, C_out)
    y = jnp.dot(x_ref[...], w_ref[...], preferred_element_type=jnp.float32)
    y = jnp.maximum(y + b_ref[...], 0.0)
    o_ref[...] = y.astype(o_ref.dtype)


def _stage_connector_kernel(x_ref, w1_ref, b1_ref, w2_ref, b2_ref,
                            mid_ref, out_ref):
    # Fused: student stage conv1x1+BN+ReLU followed by connector
    # conv1x1+BN+ReLU.  Intermediate stays on-core (no HBM round trip).
    h = jnp.dot(x_ref[...], w1_ref[...], preferred_element_type=jnp.float32)
    h = jnp.maximum(h + b1_ref[...], 0.0)
    mid_ref[...] = h.astype(mid_ref.dtype)
    y = jnp.dot(h.astype(w2_ref.dtype), w2_ref[...],
                preferred_element_type=jnp.float32)
    y = jnp.maximum(y + b2_ref[...], 0.0)
    out_ref[...] = y.astype(out_ref.dtype)


# -----------------------------------------------------------------------------
# Wrappers (operate on channel-padded, channels-last pixel matrices)
# -----------------------------------------------------------------------------
def _grid_setup(m, tm):
    m8 = _round_up(max(m, 1), 8)
    tm_eff = min(tm, m8)
    m_pad = _round_up(m8, tm_eff)
    return tm_eff, m_pad


def conv_bn_relu_flat(xm, w, b, *, out_dtype=jnp.bfloat16, tm=512):
    """y = relu(xm @ w + b); xm: (M, C_in_pad) bf16, w bf16, b f32."""
    m, c_in = xm.shape
    c_out = w.shape[1]
    tm_eff, m_pad = _grid_setup(m, tm)
    if m_pad != m:
        xm = jnp.pad(xm, ((0, m_pad - m), (0, 0)))
    out = pl.pallas_call(
        _conv_bn_relu_kernel,
        out_shape=jax.ShapeDtypeStruct((m_pad, c_out), out_dtype),
        grid_spec=pltpu.PrefetchScalarGridSpec(
            num_scalar_prefetch=0,
            grid=(m_pad // tm_eff,),
            in_specs=[
                pl.BlockSpec((tm_eff, c_in), lambda i: (i, 0)),
                pl.BlockSpec((c_in, c_out), lambda i: (0, 0)),
                pl.BlockSpec((1, c_out), lambda i: (0, 0)),
            ],
            out_specs=pl.BlockSpec((tm_eff, c_out), lambda i: (i, 0)),
        ),
        compiler_params=pltpu.CompilerParams(
            dimension_semantics=("parallel",),
            vmem_limit_bytes=VMEM_LIMIT),
    )(xm, w, b)
    return out[:m] if m_pad != m else out


def stage_connector_flat(xm, w1, b1, w2, b2, *,
                         mid_dtype=jnp.bfloat16, out_dtype=jnp.float32,
                         tm=512):
    """Fused (stage conv+BN+ReLU, connector conv+BN+ReLU); returns (mid, out)."""
    m, c_in = xm.shape
    c_mid = w1.shape[1]
    c_out = w2.shape[1]
    tm_eff, m_pad = _grid_setup(m, tm)
    if m_pad != m:
        xm = jnp.pad(xm, ((0, m_pad - m), (0, 0)))
    mid, out = pl.pallas_call(
        _stage_connector_kernel,
        out_shape=(jax.ShapeDtypeStruct((m_pad, c_mid), mid_dtype),
                   jax.ShapeDtypeStruct((m_pad, c_out), out_dtype)),
        grid_spec=pltpu.PrefetchScalarGridSpec(
            num_scalar_prefetch=0,
            grid=(m_pad // tm_eff,),
            in_specs=[
                pl.BlockSpec((tm_eff, c_in), lambda i: (i, 0)),
                pl.BlockSpec((c_in, c_mid), lambda i: (0, 0)),
                pl.BlockSpec((1, c_mid), lambda i: (0, 0)),
                pl.BlockSpec((c_mid, c_out), lambda i: (0, 0)),
                pl.BlockSpec((1, c_out), lambda i: (0, 0)),
            ],
            out_specs=[pl.BlockSpec((tm_eff, c_mid), lambda i: (i, 0)),
                       pl.BlockSpec((tm_eff, c_out), lambda i: (i, 0))],
        ),
        compiler_params=pltpu.CompilerParams(
            dimension_semantics=("parallel",),
            vmem_limit_bytes=VMEM_LIMIT),
    )(xm, w1, b1, w2, b2)
    if m_pad != m:
        mid, out = mid[:m], out[:m]
    return mid, out


# -----------------------------------------------------------------------------
# Parameters: raw (torch-layout) + inference preparation (BN fold + pad)
# -----------------------------------------------------------------------------
def _make_conv_bn(key, c_in, c_out):
    kw, kg, kb = jax.random.split(key, 3)
    return {
        "w": 0.05 * jax.random.normal(kw, (c_out, c_in), jnp.float32),
        "gamma": 1.0 + 0.1 * jax.random.normal(kg, (c_out,), jnp.float32),
        "beta": 0.1 * jax.random.normal(kb, (c_out,), jnp.float32),
        "mean": jnp.zeros((c_out,), jnp.float32),
        "var": jnp.ones((c_out,), jnp.float32),
    }


def _fold_pad(p, c_in_pad, c_out_pad, eps=1e-5):
    """Fold inference BN into the 1x1-conv weight; zero-pad to lane multiples.

    relu(BN(x @ W^T)) == relu(x @ (W*scale)^T + (beta - mean*scale))
    Padded input channels have zero weight rows; padded output channels have
    zero weight columns and zero bias, so they stay exactly 0 after ReLU.
    """
    c_out, c_in = p["w"].shape
    scale = p["gamma"] / jnp.sqrt(p["var"] + eps)
    w = (p["w"] * scale[:, None]).T                       # (c_in, c_out)
    b = p["beta"] - p["mean"] * scale                     # (c_out,)
    w_pad = jnp.zeros((c_in_pad, c_out_pad), jnp.float32).at[:c_in, :c_out].set(w)
    b_pad = jnp.zeros((1, c_out_pad), jnp.float32).at[0, :c_out].set(b)
    return {"w": w_pad.astype(jnp.bfloat16), "b": b_pad, "c_out": c_out}


def make_params(key, num_classes=100):
    keys = jax.random.split(key, 17)
    params = {"student": [], "teacher": [], "connector": []}
    c_prev = 3
    for i, c in enumerate(STUDENT_CH):
        params["student"].append(_make_conv_bn(keys[i], c_prev, c))
        c_prev = c
    c_prev = 3
    for i, c in enumerate(TEACHER_CH):
        params["teacher"].append(_make_conv_bn(keys[5 + i], c_prev, c))
        c_prev = c
    for i, (s, t) in enumerate(S_T_PAIR):
        params["connector"].append(_make_conv_bn(keys[10 + i], s, t))
    params["student_fc"] = 0.05 * jax.random.normal(
        keys[15], (STUDENT_CH[-1], num_classes), jnp.float32)
    params["teacher_fc"] = 0.05 * jax.random.normal(
        keys[16], (TEACHER_CH[-1], num_classes), jnp.float32)
    return params


def prepare_params(params):
    prep = {"student": [], "teacher": [], "connector": []}
    c_prev_pad = _round_up(3, LANE)
    for p in params["student"]:
        c_out_pad = _round_up(p["w"].shape[0], LANE)
        prep["student"].append(_fold_pad(p, c_prev_pad, c_out_pad))
        c_prev_pad = c_out_pad
    c_prev_pad = _round_up(3, LANE)
    for p in params["teacher"]:
        c_out_pad = _round_up(p["w"].shape[0], LANE)
        prep["teacher"].append(_fold_pad(p, c_prev_pad, c_out_pad))
        c_prev_pad = c_out_pad
    for p, s_stage in zip(params["connector"], prep["student"]):
        c_in_pad = s_stage["w"].shape[1]          # padded student stage C_out
        c_out_pad = _round_up(p["w"].shape[0], LANE)
        prep["connector"].append(_fold_pad(p, c_in_pad, c_out_pad))
    prep["student_fc"] = params["student_fc"]
    prep["teacher_fc"] = params["teacher_fc"]
    prep["student_c_last"] = STUDENT_CH[-1]
    prep["teacher_c_last"] = TEACHER_CH[-1]
    return prep


# -----------------------------------------------------------------------------
# Forward pass (NHWC, channel-padded end-to-end)
# -----------------------------------------------------------------------------
def _avgpool2x2_nhwc(x):
    n, h, w, c = x.shape
    return x.reshape(n, h // 2, 2, w // 2, 2, c).mean(axis=(2, 4))


def _to_nchw(out_flat, n, h, w, c_real):
    y = out_flat.reshape(n, h, w, out_flat.shape[1])[..., :c_real]
    return jnp.transpose(y.astype(jnp.float32), (0, 3, 1, 2))


def _student_forward(prep, x):
    """Synthetic student pyramid with the connector fused into each stage."""
    feats = []
    f = x
    n = h = w = None
    for stage, conn in zip(prep["student"], prep["connector"]):
        f = _avgpool2x2_nhwc(f)
        n, h, w, c = f.shape
        xm = f.reshape(n * h * w, c)
        mid, out = stage_connector_flat(
            xm, stage["w"], stage["b"], conn["w"], conn["b"],
            mid_dtype=jnp.bfloat16, out_dtype=jnp.float32)
        f = mid.reshape(n, h, w, mid.shape[1])
        feats.append(_to_nchw(out, n, h, w, conn["c_out"]))
    pooled = f.astype(jnp.float32).reshape(n, h * w, -1).mean(axis=1)
    logits = pooled[:, :prep["student_c_last"]] @ prep["student_fc"]
    feats.append(logits)
    return feats


def _teacher_forward(prep, x):
    """Synthetic teacher pyramid (checkpoint backbone not reproducible)."""
    feats = []
    f = x
    n = h = w = None
    c_last = 0
    for stage in prep["teacher"]:
        f = _avgpool2x2_nhwc(f)
        n, h, w, c = f.shape
        xm = f.reshape(n * h * w, c)
        out = conv_bn_relu_flat(xm, stage["w"], stage["b"],
                                out_dtype=jnp.bfloat16)
        f = out.reshape(n, h, w, out.shape[1])
        feats.append(_to_nchw(out, n, h, w, stage["c_out"]))
        c_last = stage["c_out"]
    pooled = f.astype(jnp.float32).reshape(n, h * w, -1).mean(axis=1)
    logits = pooled[:, :c_last] @ prep["teacher_fc"]
    feats.append(logits)
    return feats


def channel_distill_forward(prep, x_nchw):
    """Mirrors ChannelDistillVgg13_Mobile_v2.forward: (ss, ts)."""
    # Single NCHW -> NHWC transpose + channel pad + bf16 cast for the whole net.
    x = jnp.transpose(x_nchw, (0, 2, 3, 1))
    c = x.shape[-1]
    c_pad = _round_up(c, LANE)
    x = jnp.pad(x, ((0, 0), (0, 0), (0, 0), (0, c_pad - c))).astype(jnp.bfloat16)
    ss = _student_forward(prep, x)   # connector already applied to ss[0:5]
    ts = _teacher_forward(prep, x)
    return ss, ts


# -----------------------------------------------------------------------------
# Main
# -----------------------------------------------------------------------------
if __name__ == "__main__":
    key = jax.random.PRNGKey(0)
    k_params, k_x = jax.random.split(key)

    num_classes = 100
    params = make_params(k_params, num_classes=num_classes)
    prep = prepare_params(params)

    # Small deterministic NCHW input like the PyTorch module (CIFAR-sized).
    x = jax.random.normal(k_x, (2, 3, 32, 32), jnp.float32)

    fwd = jax.jit(functools.partial(channel_distill_forward, prep))
    ss, ts = fwd(x)
    jax.block_until_ready((ss, ts))

    # Connector outputs must have teacher channel counts; synthetic pyramid
    # halves spatial resolution each of the 5 stages.
    expected = [(2, 64, 16, 16), (2, 128, 8, 8), (2, 256, 4, 4),
                (2, 512, 2, 2), (2, 512, 1, 1)]
    assert [tuple(s.shape) for s in ss[:5]] == expected, [s.shape for s in ss]
    assert [tuple(t.shape) for t in ts[:5]] == expected, [t.shape for t in ts]
    assert tuple(ss[-1].shape) == (2, num_classes)
    assert tuple(ts[-1].shape) == (2, num_classes)
    assert all(bool(jnp.all(s >= 0)) for s in ss[:5])   # ReLU outputs
    assert all(bool(jnp.all(t >= 0)) for t in ts[:5])

    print("KERNEL_OK")
</pallas_src>

<mosaic_0001>
module attributes {stable_mosaic.version = 11 : i64} {
  func.func @_conv_bn_relu_kernel(%arg0: i32, %arg1: memref<512x128xbf16, #tpu.memory_space<vmem>>, %arg2: memref<128x128xbf16, #tpu.memory_space<vmem>>, %arg3: memref<1x128xf32, #tpu.memory_space<vmem>>, %arg4: memref<512x128xbf16, #tpu.memory_space<vmem>>) attributes {dimension_semantics = [#tpu.dimension_semantics<parallel>], iteration_bounds = array<i64: 1>, scalar_prefetch = 0 : i64, scratch_operands = 0 : i64, tpu.core_type = #tpu.core_type<tc>, window_params = [{transform_indices = @transform_0, window_bounds = array<i64: 512, 128>}, {pipeline_mode = #tpu.pipeline_mode<synchronous>, transform_indices = @transform_1, window_bounds = array<i64: 128, 128>}, {pipeline_mode = #tpu.pipeline_mode<synchronous>, transform_indices = @transform_2, window_bounds = array<i64: 1, 128>}, {transform_indices = @transform_3, window_bounds = array<i64: 512, 128>}]} {
    %c0 = arith.constant 0 : index
    %c0_0 = arith.constant 0 : index
    %0 = vector.load %arg1[%c0, %c0_0] : memref<512x128xbf16, #tpu.memory_space<vmem>>, vector<512x128xbf16>
    %c0_1 = arith.constant 0 : index
    %c0_2 = arith.constant 0 : index
    %1 = vector.load %arg2[%c0_1, %c0_2] : memref<128x128xbf16, #tpu.memory_space<vmem>>, vector<128x128xbf16>
    %cst = arith.constant dense<0.000000e+00> : vector<512x128xf32>
    %2 = tpu.matmul %0, %1, %cst {dimension_numbers = #tpu.dot_dimension_numbers<[1], [0], [0], [1], [0, 0, 1, 1], [], []>} : vector<512x128xbf16>, vector<128x128xbf16>, vector<512x128xf32> -> vector<512x128xf32>
    %c0_3 = arith.constant 0 : index
    %c0_4 = arith.constant 0 : index
    %3 = vector.load %arg3[%c0_3, %c0_4] : memref<1x128xf32, #tpu.memory_space<vmem>>, vector<1x128xf32>
    %4 = vector.broadcast %3 : vector<1x128xf32> to vector<512x128xf32>
    %5 = arith.addf %2, %4 : vector<512x128xf32>
    %cst_5 = arith.constant 0.000000e+00 : f32
    %6 = vector.broadcast %cst_5 : f32 to vector<512x128xf32>
    %7 = arith.maximumf %5, %6 : vector<512x128xf32>
    %8 = arith.truncf %7 : vector<512x128xf32> to vector<512x128xbf16>
    %c0_6 = arith.constant 0 : index
    %c0_7 = arith.constant 0 : index
    %9 = vector.load %arg4[%c0_6, %c0_7] : memref<512x128xbf16, #tpu.memory_space<vmem>>, vector<512x128xbf16>
    tpu.vector_store %arg4[%c0_6, %c0_7], %8 {strides = array<i32>} : memref<512x128xbf16, #tpu.memory_space<vmem>>, vector<512x128xbf16>,
    return
  }
  func.func @transform_0(%arg0: i32) -> (i32, i32) {
    %c0_i32 = arith.constant 0 : i32
    %c0_i32_0 = arith.constant 0 : i32
    return %arg0, %c0_i32 : i32, i32
  }
  func.func @transform_1(%arg0: i32) -> (i32, i32) {
    %c0_i32 = arith.constant 0 : i32
    %c0_i32_0 = arith.constant 0 : i32
    %c0_i32_1 = arith.constant 0 : i32
    return %c0_i32, %c0_i32_0 : i32, i32
  }
  func.func @transform_2(%arg0: i32) -> (i32, i32) {
    %c0_i32 = arith.constant 0 : i32
    %c0_i32_0 = arith.constant 0 : i32
    %c0_i32_1 = arith.constant 0 : i32
    return %c0_i32, %c0_i32_0 : i32, i32
  }
  func.func @transform_3(%arg0: i32) -> (i32, i32) {
    %c0_i32 = arith.constant 0 : i32
    %c0_i32_0 = arith.constant 0 : i32
    return %arg0, %c0_i32 : i32, i32
  }
}

module attributes {stable_mosaic.version = 11 : i64} {
  func.func @_conv_bn_relu_kernel(%arg0: i32, %arg1: memref<128x128xbf16, #tpu.memory_space<vmem>>, %arg2: memref<128x128xbf16, #tpu.memory_space<vmem>>, %arg3: memref<1x128xf32, #tpu.memory_space<vmem>>, %arg4: memref<128x128xbf16, #tpu.memory_space<vmem>>) attributes {dimension_semantics = [#tpu.dimension_semantics<parallel>], iteration_bounds = array<i64: 1>, scalar_prefetch = 0 : i64, scratch_operands = 0 : i64, tpu.core_type = #tpu.core_type<tc>, window_params = [{transform_indices = @transform_0, window_bounds = array<i64: 128, 128>}, {pipeline_mode = #tpu.pipeline_mode<synchronous>, transform_indices = @transform_1, window_bounds = array<i64: 128, 128>}, {pipeline_mode = #tpu.pipeline_mode<synchronous>, transform_indices = @transform_2, window_bounds = array<i64: 1, 128>}, {transform_indices = @transform_3, window_bounds = array<i64: 128, 128>}]} {
    %c0 = arith.constant 0 : index
    %c0_0 = arith.constant 0 : index
    %0 = vector.load %arg1[%c0, %c0_0] : memref<128x128xbf16, #tpu.memory_space<vmem>>, vector<128x128xbf16>
    %c0_1 = arith.constant 0 : index
    %c0_2 = arith.constant 0 : index
    %1 = vector.load %arg2[%c0_1, %c0_2] : memref<128x128xbf16, #tpu.memory_space<vmem>>, vector<128x128xbf16>
    %cst = arith.constant dense<0.000000e+00> : vector<128x128xf32>
    %2 = tpu.matmul %0, %1, %cst {dimension_numbers = #tpu.dot_dimension_numbers<[1], [0], [0], [1], [0, 0, 1, 1], [], []>} : vector<128x128xbf16>, vector<128x128xbf16>, vector<128x128xf32> -> vector<128x128xf32>
    %c0_3 = arith.constant 0 : index
    %c0_4 = arith.constant 0 : index
    %3 = vector.load %arg3[%c0_3, %c0_4] : memref<1x128xf32, #tpu.memory_space<vmem>>, vector<1x128xf32>
    %4 = vector.broadcast %3 : vector<1x128xf32> to vector<128x128xf32>
    %5 = arith.addf %2, %4 : vector<128x128xf32>
    %cst_5 = arith.constant 0.000000e+00 : f32
    %6 = vector.broadcast %cst_5 : f32 to vector<128x128xf32>
    %7 = arith.maximumf %5, %6 : vector<128x128xf32>
    %8 = arith.truncf %7 : vector<128x128xf32> to vector<128x128xbf16>
    %c0_6 = arith.constant 0 : index
    %c0_7 = arith.constant 0 : index
    %9 = vector.load %arg4[%c0_6, %c0_7] : memref<128x128xbf16, #tpu.memory_space<vmem>>, vector<128x128xbf16>
    tpu.vector_store %arg4[%c0_6, %c0_7], %8 {strides = array<i32>} : memref<128x128xbf16, #tpu.memory_space<vmem>>, vector<128x128xbf16>,
    return
  }
  func.func @transform_0(%arg0: i32) -> (i32, i32) {
    %c0_i32 = arith.constant 0 : i32
    %c0_i32_0 = arith.constant 0 : i32
    return %arg0, %c0_i32 : i32, i32
  }
  func.func @transform_1(%arg0: i32) -> (i32, i32) {
    %c0_i32 = arith.constant 0 : i32
    %c0_i32_0 = arith.constant 0 : i32
    %c0_i32_1 = arith.constant 0 : i32
    return %c0_i32, %c0_i32_0 : i32, i32
  }
  func.func @transform_2(%arg0: i32) -> (i32, i32) {
    %c0_i32 = arith.constant 0 : i32
    %c0_i32_0 = arith.constant 0 : i32
    %c0_i32_1 = arith.constant 0 : i32
    return %c0_i32, %c0_i32_0 : i32, i32
  }
  func.func @transform_3(%arg0: i32) -> (i32, i32) {
    %c0_i32 = arith.constant 0 : i32
    %c0_i32_0 = arith.constant 0 : i32
    return %arg0, %c0_i32 : i32, i32
  }
}

module attributes {stable_mosaic.version = 11 : i64} {
  func.func @_conv_bn_relu_kernel(%arg0: i32, %arg1: memref<32x128xbf16, #tpu.memory_space<vmem>>, %arg2: memref<128x256xbf16, #tpu.memory_space<vmem>>, %arg3: memref<1x256xf32, #tpu.memory_space<vmem>>, %arg4: memref<32x256xbf16, #tpu.memory_space<vmem>>) attributes {dimension_semantics = [#tpu.dimension_semantics<parallel>], iteration_bounds = array<i64: 1>, scalar_prefetch = 0 : i64, scratch_operands = 0 : i64, tpu.core_type = #tpu.core_type<tc>, window_params = [{transform_indices = @transform_0, window_bounds = array<i64: 32, 128>}, {pipeline_mode = #tpu.pipeline_mode<synchronous>, transform_indices = @transform_1, window_bounds = array<i64: 128, 256>}, {pipeline_mode = #tpu.pipeline_mode<synchronous>, transform_indices = @transform_2, window_bounds = array<i64: 1, 256>}, {transform_indices = @transform_3, window_bounds = array<i64: 32, 256>}]} {
    %c0 = arith.constant 0 : index
    %c0_0 = arith.constant 0 : index
    %0 = vector.load %arg1[%c0, %c0_0] : memref<32x128xbf16, #tpu.memory_space<vmem>>, vector<32x128xbf16>
    %c0_1 = arith.constant 0 : index
    %c0_2 = arith.constant 0 : index
    %1 = vector.load %arg2[%c0_1, %c0_2] : memref<128x256xbf16, #tpu.memory_space<vmem>>, vector<128x256xbf16>
    %cst = arith.constant dense<0.000000e+00> : vector<32x256xf32>
    %2 = tpu.matmul %0, %1, %cst {dimension_numbers = #tpu.dot_dimension_numbers<[1], [0], [0], [1], [0, 0, 1, 1], [], []>} : vector<32x128xbf16>, vector<128x256xbf16>, vector<32x256xf32> -> vector<32x256xf32>
    %c0_3 = arith.constant 0 : index
    %c0_4 = arith.constant 0 : index
    %3 = vector.load %arg3[%c0_3, %c0_4] : memref<1x256xf32, #tpu.memory_space<vmem>>, vector<1x256xf32>
    %4 = vector.broadcast %3 : vector<1x256xf32> to vector<32x256xf32>
    %5 = arith.addf %2, %4 : vector<32x256xf32>
    %cst_5 = arith.constant 0.000000e+00 : f32
    %6 = vector.broadcast %cst_5 : f32 to vector<32x256xf32>
    %7 = arith.maximumf %5, %6 : vector<32x256xf32>
    %8 = arith.truncf %7 : vector<32x256xf32> to vector<32x256xbf16>
    %c0_6 = arith.constant 0 : index
    %c0_7 = arith.constant 0 : index
    %9 = vector.load %arg4[%c0_6, %c0_7] : memref<32x256xbf16, #tpu.memory_space<vmem>>, vector<32x256xbf16>
    tpu.vector_store %arg4[%c0_6, %c0_7], %8 {strides = array<i32>} : memref<32x256xbf16, #tpu.memory_space<vmem>>, vector<32x256xbf16>,
    return
  }
  func.func @transform_0(%arg0: i32) -> (i32, i32) {
    %c0_i32 = arith.constant 0 : i32
    %c0_i32_0 = arith.constant 0 : i32
    return %arg0, %c0_i32 : i32, i32
  }
  func.func @transform_1(%arg0: i32) -> (i32, i32) {
    %c0_i32 = arith.constant 0 : i32
    %c0_i32_0 = arith.constant 0 : i32
    %c0_i32_1 = arith.constant 0 : i32
    return %c0_i32, %c0_i32_0 : i32, i32
  }
  func.func @transform_2(%arg0: i32) -> (i32, i32) {
    %c0_i32 = arith.constant 0 : i32
    %c0_i32_0 = arith.constant 0 : i32
    %c0_i32_1 = arith.constant 0 : i32
    return %c0_i32, %c0_i32_0 : i32, i32
  }
  func.func @transform_3(%arg0: i32) -> (i32, i32) {
    %c0_i32 = arith.constant 0 : i32
    %c0_i32_0 = arith.constant 0 : i32
    return %arg0, %c0_i32 : i32, i32
  }
}

module attributes {stable_mosaic.version = 11 : i64} {
  func.func @_conv_bn_relu_kernel(%arg0: i32, %arg1: memref<8x256xbf16, #tpu.memory_space<vmem>>, %arg2: memref<256x512xbf16, #tpu.memory_space<vmem>>, %arg3: memref<1x512xf32, #tpu.memory_space<vmem>>, %arg4: memref<8x512xbf16, #tpu.memory_space<vmem>>) attributes {dimension_semantics = [#tpu.dimension_semantics<parallel>], iteration_bounds = array<i64: 1>, scalar_prefetch = 0 : i64, scratch_operands = 0 : i64, tpu.core_type = #tpu.core_type<tc>, window_params = [{transform_indices = @transform_0, window_bounds = array<i64: 8, 256>}, {pipeline_mode = #tpu.pipeline_mode<synchronous>, transform_indices = @transform_1, window_bounds = array<i64: 256, 512>}, {pipeline_mode = #tpu.pipeline_mode<synchronous>, transform_indices = @transform_2, window_bounds = array<i64: 1, 512>}, {transform_indices = @transform_3, window_bounds = array<i64: 8, 512>}]} {
    %c0 = arith.constant 0 : index
    %c0_0 = arith.constant 0 : index
    %0 = vector.load %arg1[%c0, %c0_0] : memref<8x256xbf16, #tpu.memory_space<vmem>>, vector<8x256xbf16>
    %c0_1 = arith.constant 0 : index
    %c0_2 = arith.constant 0 : index
    %1 = vector.load %arg2[%c0_1, %c0_2] : memref<256x512xbf16, #tpu.memory_space<vmem>>, vector<256x512xbf16>
    %cst = arith.constant dense<0.000000e+00> : vector<8x512xf32>
    %2 = tpu.matmul %0, %1, %cst {dimension_numbers = #tpu.dot_dimension_numbers<[1], [0], [0], [1], [0, 0, 1, 1], [], []>} : vector<8x256xbf16>, vector<256x512xbf16>, vector<8x512xf32> -> vector<8x512xf32>
    %c0_3 = arith.constant 0 : index
    %c0_4 = arith.constant 0 : index
    %3 = vector.load %arg3[%c0_3, %c0_4] : memref<1x512xf32, #tpu.memory_space<vmem>>, vector<1x512xf32>
    %4 = vector.broadcast %3 : vector<1x512xf32> to vector<8x512xf32>
    %5 = arith.addf %2, %4 : vector<8x512xf32>
    %cst_5 = arith.constant 0.000000e+00 : f32
    %6 = vector.broadcast %cst_5 : f32 to vector<8x512xf32>
    %7 = arith.maximumf %5, %6 : vector<8x512xf32>
    %8 = arith.truncf %7 : vector<8x512xf32> to vector<8x512xbf16>
    %c0_6 = arith.constant 0 : index
    %c0_7 = arith.constant 0 : index
    %9 = vector.load %arg4[%c0_6, %c0_7] : memref<8x512xbf16, #tpu.memory_space<vmem>>, vector<8x512xbf16>
    tpu.vector_store %arg4[%c0_6, %c0_7], %8 {strides = array<i32>} : memref<8x512xbf16, #tpu.memory_space<vmem>>, vector<8x512xbf16>,
    return
  }
  func.func @transform_0(%arg0: i32) -> (i32, i32) {
    %c0_i32 = arith.constant 0 : i32
    %c0_i32_0 = arith.constant 0 : i32
    return %arg0, %c0_i32 : i32, i32
  }
  func.func @transform_1(%arg0: i32) -> (i32, i32) {
    %c0_i32 = arith.constant 0 : i32
    %c0_i32_0 = arith.constant 0 : i32
    %c0_i32_1 = arith.constant 0 : i32
    return %c0_i32, %c0_i32_0 : i32, i32
  }
  func.func @transform_2(%arg0: i32) -> (i32, i32) {
    %c0_i32 = arith.constant 0 : i32
    %c0_i32_0 = arith.constant 0 : i32
    %c0_i32_1 = arith.constant 0 : i32
    return %c0_i32, %c0_i32_0 : i32, i32
  }
  func.func @transform_3(%arg0: i32) -> (i32, i32) {
    %c0_i32 = arith.constant 0 : i32
    %c0_i32_0 = arith.constant 0 : i32
    return %arg0, %c0_i32 : i32, i32
  }
}

module attributes {stable_mosaic.version = 11 : i64} {
  func.func @_conv_bn_relu_kernel(%arg0: i32, %arg1: memref<8x512xbf16, #tpu.memory_space<vmem>>, %arg2: memref<512x512xbf16, #tpu.memory_space<vmem>>, %arg3: memref<1x512xf32, #tpu.memory_space<vmem>>, %arg4: memref<8x512xbf16, #tpu.memory_space<vmem>>) attributes {dimension_semantics = [#tpu.dimension_semantics<parallel>], iteration_bounds = array<i64: 1>, scalar_prefetch = 0 : i64, scratch_operands = 0 : i64, tpu.core_type = #tpu.core_type<tc>, window_params = [{transform_indices = @transform_0, window_bounds = array<i64: 8, 512>}, {pipeline_mode = #tpu.pipeline_mode<synchronous>, transform_indices = @transform_1, window_bounds = array<i64: 512, 512>}, {pipeline_mode = #tpu.pipeline_mode<synchronous>, transform_indices = @transform_2, window_bounds = array<i64: 1, 512>}, {transform_indices = @transform_3, window_bounds = array<i64: 8, 512>}]} {
    %c0 = arith.constant 0 : index
    %c0_0 = arith.constant 0 : index
    %0 = vector.load %arg1[%c0, %c0_0] : memref<8x512xbf16, #tpu.memory_space<vmem>>, vector<8x512xbf16>
    %c0_1 = arith.constant 0 : index
    %c0_2 = arith.constant 0 : index
    %1 = vector.load %arg2[%c0_1, %c0_2] : memref<512x512xbf16, #tpu.memory_space<vmem>>, vector<512x512xbf16>
    %cst = arith.constant dense<0.000000e+00> : vector<8x512xf32>
    %2 = tpu.matmul %0, %1, %cst {dimension_numbers = #tpu.dot_dimension_numbers<[1], [0], [0], [1], [0, 0, 1, 1], [], []>} : vector<8x512xbf16>, vector<512x512xbf16>, vector<8x512xf32> -> vector<8x512xf32>
    %c0_3 = arith.constant 0 : index
    %c0_4 = arith.constant 0 : index
    %3 = vector.load %arg3[%c0_3, %c0_4] : memref<1x512xf32, #tpu.memory_space<vmem>>, vector<1x512xf32>
    %4 = vector.broadcast %3 : vector<1x512xf32> to vector<8x512xf32>
    %5 = arith.addf %2, %4 : vector<8x512xf32>
    %cst_5 = arith.constant 0.000000e+00 : f32
    %6 = vector.broadcast %cst_5 : f32 to vector<8x512xf32>
    %7 = arith.maximumf %5, %6 : vector<8x512xf32>
    %8 = arith.truncf %7 : vector<8x512xf32> to vector<8x512xbf16>
    %c0_6 = arith.constant 0 : index
    %c0_7 = arith.constant 0 : index
    %9 = vector.load %arg4[%c0_6, %c0_7] : memref<8x512xbf16, #tpu.memory_space<vmem>>, vector<8x512xbf16>
    tpu.vector_store %arg4[%c0_6, %c0_7], %8 {strides = array<i32>} : memref<8x512xbf16, #tpu.memory_space<vmem>>, vector<8x512xbf16>,
    return
  }
  func.func @transform_0(%arg0: i32) -> (i32, i32) {
    %c0_i32 = arith.constant 0 : i32
    %c0_i32_0 = arith.constant 0 : i32
    return %arg0, %c0_i32 : i32, i32
  }
  func.func @transform_1(%arg0: i32) -> (i32, i32) {
    %c0_i32 = arith.constant 0 : i32
    %c0_i32_0 = arith.constant 0 : i32
    %c0_i32_1 = arith.constant 0 : i32
    return %c0_i32, %c0_i32_0 : i32, i32
  }
  func.func @transform_2(%arg0: i32) -> (i32, i32) {
    %c0_i32 = arith.constant 0 : i32
    %c0_i32_0 = arith.constant 0 : i32
    %c0_i32_1 = arith.constant 0 : i32
    return %c0_i32, %c0_i32_0 : i32, i32
  }
  func.func @transform_3(%arg0: i32) -> (i32, i32) {
    %c0_i32 = arith.constant 0 : i32
    %c0_i32_0 = arith.constant 0 : i32
    return %arg0, %c0_i32 : i32, i32
  }
}

module attributes {stable_mosaic.version = 11 : i64} {
  func.func @_stage_connector_kernel(%arg0: i32, %arg1: memref<512x128xbf16, #tpu.memory_space<vmem>>, %arg2: memref<128x128xbf16, #tpu.memory_space<vmem>>, %arg3: memref<1x128xf32, #tpu.memory_space<vmem>>, %arg4: memref<128x128xbf16, #tpu.memory_space<vmem>>, %arg5: memref<1x128xf32, #tpu.memory_space<vmem>>, %arg6: memref<512x128xbf16, #tpu.memory_space<vmem>>, %arg7: memref<512x128xf32, #tpu.memory_space<vmem>>) attributes {dimension_semantics = [#tpu.dimension_semantics<parallel>], iteration_bounds = array<i64: 1>, scalar_prefetch = 0 : i64, scratch_operands = 0 : i64, tpu.core_type = #tpu.core_type<tc>, window_params = [{transform_indices = @transform_0, window_bounds = array<i64: 512, 128>}, {pipeline_mode = #tpu.pipeline_mode<synchronous>, transform_indices = @transform_1, window_bounds = array<i64: 128, 128>}, {pipeline_mode = #tpu.pipeline_mode<synchronous>, transform_indices = @transform_2, window_bounds = array<i64: 1, 128>}, {pipeline_mode = #tpu.pipeline_mode<synchronous>, transform_indices = @transform_3, window_bounds = array<i64: 128, 128>}, {pipeline_mode = #tpu.pipeline_mode<synchronous>, transform_indices = @transform_4, window_bounds = array<i64: 1, 128>}, {transform_indices = @transform_5, window_bounds = array<i64: 512, 128>}, {transform_indices = @transform_6, window_bounds = array<i64: 512, 128>}]} {
    %c0 = arith.constant 0 : index
    %c0_0 = arith.constant 0 : index
    %0 = vector.load %arg1[%c0, %c0_0] : memref<512x128xbf16, #tpu.memory_space<vmem>>, vector<512x128xbf16>
    %c0_1 = arith.constant 0 : index
    %c0_2 = arith.constant 0 : index
    %1 = vector.load %arg2[%c0_1, %c0_2] : memref<128x128xbf16, #tpu.memory_space<vmem>>, vector<128x128xbf16>
    %cst = arith.constant dense<0.000000e+00> : vector<512x128xf32>
    %2 = tpu.matmul %0, %1, %cst {dimension_numbers = #tpu.dot_dimension_numbers<[1], [0], [0], [1], [0, 0, 1, 1], [], []>} : vector<512x128xbf16>, vector<128x128xbf16>, vector<512x128xf32> -> vector<512x128xf32>
    %c0_3 = arith.constant 0 : index
    %c0_4 = arith.constant 0 : index
    %3 = vector.load %arg3[%c0_3, %c0_4] : memref<1x128xf32, #tpu.memory_space<vmem>>, vector<1x128xf32>
    %4 = vector.broadcast %3 : vector<1x128xf32> to vector<512x128xf32>
    %5 = arith.addf %2, %4 : vector<512x128xf32>
    %cst_5 = arith.constant 0.000000e+00 : f32
    %6 = vector.broadcast %cst_5 : f32 to vector<512x128xf32>
    %7 = arith.maximumf %5, %6 : vector<512x128xf32>
    %8 = arith.truncf %7 : vector<512x128xf32> to vector<512x128xbf16>
    %c0_6 = arith.constant 0 : index
    %c0_7 = arith.constant 0 : index
    %9 = vector.load %arg6[%c0_6, %c0_7] : memref<512x128xbf16, #tpu.memory_space<vmem>>, vector<512x128xbf16>
    tpu.vector_store %arg6[%c0_6, %c0_7], %8 {strides = array<i32>} : memref<512x128xbf16, #tpu.memory_space<vmem>>, vector<512x128xbf16>,
    %10 = arith.truncf %7 : vector<512x128xf32> to vector<512x128xbf16>
    %c0_8 = arith.constant 0 : index
    %c0_9 = arith.constant 0 : index
    %11 = vector.load %arg4[%c0_8, %c0_9] : memref<128x128xbf16, #tpu.memory_space<vmem>>, vector<128x128xbf16>
    %cst_10 = arith.constant dense<0.000000e+00> : vector<512x128xf32>
    %12 = tpu.matmul %10, %11, %cst_10 {dimension_numbers = #tpu.dot_dimension_numbers<[1], [0], [0], [1], [0, 0, 1, 1], [], []>} : vector<512x128xbf16>, vector<128x128xbf16>, vector<512x128xf32> -> vector<512x128xf32>
    %c0_11 = arith.constant 0 : index
    %c0_12 = arith.constant 0 : index
    %13 = vector.load %arg5[%c0_11, %c0_12] : memref<1x128xf32, #tpu.memory_space<vmem>>, vector<1x128xf32>
    %14 = vector.broadcast %13 : vector<1x128xf32> to vector<512x128xf32>
    %15 = arith.addf %12, %14 : vector<512x128xf32>
    %cst_13 = arith.constant 0.000000e+00 : f32
    %16 = vector.broadcast %cst_13 : f32 to vector<512x128xf32>
    %17 = arith.maximumf %15, %16 : vector<512x128xf32>
    %c0_14 = arith.constant 0 : index
    %c0_15 = arith.constant 0 : index
    %18 = vector.load %arg7[%c0_14, %c0_15] : memref<512x128xf32, #tpu.memory_space<vmem>>, vector<512x128xf32>
    tpu.vector_store %arg7[%c0_14, %c0_15], %17 {strides = array<i32>} : memref<512x128xf32, #tpu.memory_space<vmem>>, vector<512x128xf32>,
    return
  }
  func.func @transform_0(%arg0: i32) -> (i32, i32) {
    %c0_i32 = arith.constant 0 : i32
    %c0_i32_0 = arith.constant 0 : i32
    return %arg0, %c0_i32 : i32, i32
  }
  func.func @transform_1(%arg0: i32) -> (i32, i32) {
    %c0_i32 = arith.constant 0 : i32
    %c0_i32_0 = arith.constant 0 : i32
    %c0_i32_1 = arith.constant 0 : i32
    return %c0_i32, %c0_i32_0 : i32, i32
  }
  func.func @transform_2(%arg0: i32) -> (i32, i32) {
    %c0_i32 = arith.constant 0 : i32
    %c0_i32_0 = arith.constant 0 : i32
    %c0_i32_1 = arith.constant 0 : i32
    return %c0_i32, %c0_i32_0 : i32, i32
  }
  func.func @transform_3(%arg0: i32) -> (i32, i32) {
    %c0_i32 = arith.constant 0 : i32
    %c0_i32_0 = arith.constant 0 : i32
    %c0_i32_1 = arith.constant 0 : i32
    return %c0_i32, %c0_i32_0 : i32, i32
  }
  func.func @transform_4(%arg0: i32) -> (i32, i32) {
    %c0_i32 = arith.constant 0 : i32
    %c0_i32_0 = arith.constant 0 : i32
    %c0_i32_1 = arith.constant 0 : i32
    return %c0_i32, %c0_i32_0 : i32, i32
  }
  func.func @transform_5(%arg0: i32) -> (i32, i32) {
    %c0_i32 = arith.constant 0 : i32
    %c0_i32_0 = arith.constant 0 : i32
    return %arg0, %c0_i32 : i32, i32
  }
  func.func @transform_6(%arg0: i32) -> (i32, i32) {
    %c0_i32 = arith.constant 0 : i32
    %c0_i32_0 = arith.constant 0 : i32
    return %arg0, %c0_i32 : i32, i32
  }
}

module attributes {stable_mosaic.version = 11 : i64} {
  func.func @_stage_connector_kernel(%arg0: i32, %arg1: memref<128x128xbf16, #tpu.memory_space<vmem>>, %arg2: memref<128x128xbf16, #tpu.memory_space<vmem>>, %arg3: memref<1x128xf32, #tpu.memory_space<vmem>>, %arg4: memref<128x128xbf16, #tpu.memory_space<vmem>>, %arg5: memref<1x128xf32, #tpu.memory_space<vmem>>, %arg6: memref<128x128xbf16, #tpu.memory_space<vmem>>, %arg7: memref<128x128xf32, #tpu.memory_space<vmem>>) attributes {dimension_semantics = [#tpu.dimension_semantics<parallel>], iteration_bounds = array<i64: 1>, scalar_prefetch = 0 : i64, scratch_operands = 0 : i64, tpu.core_type = #tpu.core_type<tc>, window_params = [{transform_indices = @transform_0, window_bounds = array<i64: 128, 128>}, {pipeline_mode = #tpu.pipeline_mode<synchronous>, transform_indices = @transform_1, window_bounds = array<i64: 128, 128>}, {pipeline_mode = #tpu.pipeline_mode<synchronous>, transform_indices = @transform_2, window_bounds = array<i64: 1, 128>}, {pipeline_mode = #tpu.pipeline_mode<synchronous>, transform_indices = @transform_3, window_bounds = array<i64: 128, 128>}, {pipeline_mode = #tpu.pipeline_mode<synchronous>, transform_indices = @transform_4, window_bounds = array<i64: 1, 128>}, {transform_indices = @transform_5, window_bounds = array<i64: 128, 128>}, {transform_indices = @transform_6, window_bounds = array<i64: 128, 128>}]} {
    %c0 = arith.constant 0 : index
    %c0_0 = arith.constant 0 : index
    %0 = vector.load %arg1[%c0, %c0_0] : memref<128x128xbf16, #tpu.memory_space<vmem>>, vector<128x128xbf16>
    %c0_1 = arith.constant 0 : index
    %c0_2 = arith.constant 0 : index
    %1 = vector.load %arg2[%c0_1, %c0_2] : memref<128x128xbf16, #tpu.memory_space<vmem>>, vector<128x128xbf16>
    %cst = arith.constant dense<0.000000e+00> : vector<128x128xf32>
    %2 = tpu.matmul %0, %1, %cst {dimension_numbers = #tpu.dot_dimension_numbers<[1], [0], [0], [1], [0, 0, 1, 1], [], []>} : vector<128x128xbf16>, vector<128x128xbf16>, vector<128x128xf32> -> vector<128x128xf32>
    %c0_3 = arith.constant 0 : index
    %c0_4 = arith.constant 0 : index
    %3 = vector.load %arg3[%c0_3, %c0_4] : memref<1x128xf32, #tpu.memory_space<vmem>>, vector<1x128xf32>
    %4 = vector.broadcast %3 : vector<1x128xf32> to vector<128x128xf32>
    %5 = arith.addf %2, %4 : vector<128x128xf32>
    %cst_5 = arith.constant 0.000000e+00 : f32
    %6 = vector.broadcast %cst_5 : f32 to vector<128x128xf32>
    %7 = arith.maximumf %5, %6 : vector<128x128xf32>
    %8 = arith.truncf %7 : vector<128x128xf32> to vector<128x128xbf16>
    %c0_6 = arith.constant 0 : index
    %c0_7 = arith.constant 0 : index
    %9 = vector.load %arg6[%c0_6, %c0_7] : memref<128x128xbf16, #tpu.memory_space<vmem>>, vector<128x128xbf16>
    tpu.vector_store %arg6[%c0_6, %c0_7], %8 {strides = array<i32>} : memref<128x128xbf16, #tpu.memory_space<vmem>>, vector<128x128xbf16>,
    %10 = arith.truncf %7 : vector<128x128xf32> to vector<128x128xbf16>
    %c0_8 = arith.constant 0 : index
    %c0_9 = arith.constant 0 : index
    %11 = vector.load %arg4[%c0_8, %c0_9] : memref<128x128xbf16, #tpu.memory_space<vmem>>, vector<128x128xbf16>
    %cst_10 = arith.constant dense<0.000000e+00> : vector<128x128xf32>
    %12 = tpu.matmul %10, %11, %cst_10 {dimension_numbers = #tpu.dot_dimension_numbers<[1], [0], [0], [1], [0, 0, 1, 1], [], []>} : vector<128x128xbf16>, vector<128x128xbf16>, vector<128x128xf32> -> vector<128x128xf32>
    %c0_11 = arith.constant 0 : index
    %c0_12 = arith.constant 0 : index
    %13 = vector.load %arg5[%c0_11, %c0_12] : memref<1x128xf32, #tpu.memory_space<vmem>>, vector<1x128xf32>
    %14 = vector.broadcast %13 : vector<1x128xf32> to vector<128x128xf32>
    %15 = arith.addf %12, %14 : vector<128x128xf32>
    %cst_13 = arith.constant 0.000000e+00 : f32
    %16 = vector.broadcast %cst_13 : f32 to vector<128x128xf32>
    %17 = arith.maximumf %15, %16 : vector<128x128xf32>
    %c0_14 = arith.constant 0 : index
    %c0_15 = arith.constant 0 : index
    %18 = vector.load %arg7[%c0_14, %c0_15] : memref<128x128xf32, #tpu.memory_space<vmem>>, vector<128x128xf32>
    tpu.vector_store %arg7[%c0_14, %c0_15], %17 {strides = array<i32>} : memref<128x128xf32, #tpu.memory_space<vmem>>, vector<128x128xf32>,
    return
  }
  func.func @transform_0(%arg0: i32) -> (i32, i32) {
    %c0_i32 = arith.constant 0 : i32
    %c0_i32_0 = arith.constant 0 : i32
    return %arg0, %c0_i32 : i32, i32
  }
  func.func @transform_1(%arg0: i32) -> (i32, i32) {
    %c0_i32 = arith.constant 0 : i32
    %c0_i32_0 = arith.constant 0 : i32
    %c0_i32_1 = arith.constant 0 : i32
    return %c0_i32, %c0_i32_0 : i32, i32
  }
  func.func @transform_2(%arg0: i32) -> (i32, i32) {
    %c0_i32 = arith.constant 0 : i32
    %c0_i32_0 = arith.constant 0 : i32
    %c0_i32_1 = arith.constant 0 : i32
    return %c0_i32, %c0_i32_0 : i32, i32
  }
  func.func @transform_3(%arg0: i32) -> (i32, i32) {
    %c0_i32 = arith.constant 0 : i32
    %c0_i32_0 = arith.constant 0 : i32
    %c0_i32_1 = arith.constant 0 : i32
    return %c0_i32, %c0_i32_0 : i32, i32
  }
  func.func @transform_4(%arg0: i32) -> (i32, i32) {
    %c0_i32 = arith.constant 0 : i32
    %c0_i32_0 = arith.constant 0 : i32
    %c0_i32_1 = arith.constant 0 : i32
    return %c0_i32, %c0_i32_0 : i32, i32
  }
  func.func @transform_5(%arg0: i32) -> (i32, i32) {
    %c0_i32 = arith.constant 0 : i32
    %c0_i32_0 = arith.constant 0 : i32
    return %arg0, %c0_i32 : i32, i32
  }
  func.func @transform_6(%arg0: i32) -> (i32, i32) {
    %c0_i32 = arith.constant 0 : i32
    %c0_i32_0 = arith.constant 0 : i32
    return %arg0, %c0_i32 : i32, i32
  }
}

module attributes {stable_mosaic.version = 11 : i64} {
  func.func @_stage_connector_kernel(%arg0: i32, %arg1: memref<32x128xbf16, #tpu.memory_space<vmem>>, %arg2: memref<128x128xbf16, #tpu.memory_space<vmem>>, %arg3: memref<1x128xf32, #tpu.memory_space<vmem>>, %arg4: memref<128x256xbf16, #tpu.memory_space<vmem>>, %arg5: memref<1x256xf32, #tpu.memory_space<vmem>>, %arg6: memref<32x128xbf16, #tpu.memory_space<vmem>>, %arg7: memref<32x256xf32, #tpu.memory_space<vmem>>) attributes {dimension_semantics = [#tpu.dimension_semantics<parallel>], iteration_bounds = array<i64: 1>, scalar_prefetch = 0 : i64, scratch_operands = 0 : i64, tpu.core_type = #tpu.core_type<tc>, window_params = [{transform_indices = @transform_0, window_bounds = array<i64: 32, 128>}, {pipeline_mode = #tpu.pipeline_mode<synchronous>, transform_indices = @transform_1, window_bounds = array<i64: 128, 128>}, {pipeline_mode = #tpu.pipeline_mode<synchronous>, transform_indices = @transform_2, window_bounds = array<i64: 1, 128>}, {pipeline_mode = #tpu.pipeline_mode<synchronous>, transform_indices = @transform_3, window_bounds = array<i64: 128, 256>}, {pipeline_mode = #tpu.pipeline_mode<synchronous>, transform_indices = @transform_4, window_bounds = array<i64: 1, 256>}, {transform_indices = @transform_5, window_bounds = array<i64: 32, 128>}, {transform_indices = @transform_6, window_bounds = array<i64: 32, 256>}]} {
    %c0 = arith.constant 0 : index
    %c0_0 = arith.constant 0 : index
    %0 = vector.load %arg1[%c0, %c0_0] : memref<32x128xbf16, #tpu.memory_space<vmem>>, vector<32x128xbf16>
    %c0_1 = arith.constant 0 : index
    %c0_2 = arith.constant 0 : index
    %1 = vector.load %arg2[%c0_1, %c0_2] : memref<128x128xbf16, #tpu.memory_space<vmem>>, vector<128x128xbf16>
    %cst = arith.constant dense<0.000000e+00> : vector<32x128xf32>
    %2 = tpu.matmul %0, %1, %cst {dimension_numbers = #tpu.dot_dimension_numbers<[1], [0], [0], [1], [0, 0, 1, 1], [], []>} : vector<32x128xbf16>, vector<128x128xbf16>, vector<32x128xf32> -> vector<32x128xf32>
    %c0_3 = arith.constant 0 : index
    %c0_4 = arith.constant 0 : index
    %3 = vector.load %arg3[%c0_3, %c0_4] : memref<1x128xf32, #tpu.memory_space<vmem>>, vector<1x128xf32>
    %4 = vector.broadcast %3 : vector<1x128xf32> to vector<32x128xf32>
    %5 = arith.addf %2, %4 : vector<32x128xf32>
    %cst_5 = arith.constant 0.000000e+00 : f32
    %6 = vector.broadcast %cst_5 : f32 to vector<32x128xf32>
    %7 = arith.maximumf %5, %6 : vector<32x128xf32>
    %8 = arith.truncf %7 : vector<32x128xf32> to vector<32x128xbf16>
    %c0_6 = arith.constant 0 : index
    %c0_7 = arith.constant 0 : index
    %9 = vector.load %arg6[%c0_6, %c0_7] : memref<32x128xbf16, #tpu.memory_space<vmem>>, vector<32x128xbf16>
    tpu.vector_store %arg6[%c0_6, %c0_7], %8 {strides = array<i32>} : memref<32x128xbf16, #tpu.memory_space<vmem>>, vector<32x128xbf16>,
    %10 = arith.truncf %7 : vector<32x128xf32> to vector<32x128xbf16>
    %c0_8 = arith.constant 0 : index
    %c0_9 = arith.constant 0 : index
    %11 = vector.load %arg4[%c0_8, %c0_9] : memref<128x256xbf16, #tpu.memory_space<vmem>>, vector<128x256xbf16>
    %cst_10 = arith.constant dense<0.000000e+00> : vector<32x256xf32>
    %12 = tpu.matmul %10, %11, %cst_10 {dimension_numbers = #tpu.dot_dimension_numbers<[1], [0], [0], [1], [0, 0, 1, 1], [], []>} : vector<32x128xbf16>, vector<128x256xbf16>, vector<32x256xf32> -> vector<32x256xf32>
    %c0_11 = arith.constant 0 : index
    %c0_12 = arith.constant 0 : index
    %13 = vector.load %arg5[%c0_11, %c0_12] : memref<1x256xf32, #tpu.memory_space<vmem>>, vector<1x256xf32>
    %14 = vector.broadcast %13 : vector<1x256xf32> to vector<32x256xf32>
    %15 = arith.addf %12, %14 : vector<32x256xf32>
    %cst_13 = arith.constant 0.000000e+00 : f32
    %16 = vector.broadcast %cst_13 : f32 to vector<32x256xf32>
    %17 = arith.maximumf %15, %16 : vector<32x256xf32>
    %c0_14 = arith.constant 0 : index
    %c0_15 = arith.constant 0 : index
    %18 = vector.load %arg7[%c0_14, %c0_15] : memref<32x256xf32, #tpu.memory_space<vmem>>, vector<32x256xf32>
    tpu.vector_store %arg7[%c0_14, %c0_15], %17 {strides = array<i32>} : memref<32x256xf32, #tpu.memory_space<vmem>>, vector<32x256xf32>,
    return
  }
  func.func @transform_0(%arg0: i32) -> (i32, i32) {
    %c0_i32 = arith.constant 0 : i32
    %c0_i32_0 = arith.constant 0 : i32
    return %arg0, %c0_i32 : i32, i32
  }
  func.func @transform_1(%arg0: i32) -> (i32, i32) {
    %c0_i32 = arith.constant 0 : i32
    %c0_i32_0 = arith.constant 0 : i32
    %c0_i32_1 = arith.constant 0 : i32
    return %c0_i32, %c0_i32_0 : i32, i32
  }
  func.func @transform_2(%arg0: i32) -> (i32, i32) {
    %c0_i32 = arith.constant 0 : i32
    %c0_i32_0 = arith.constant 0 : i32
    %c0_i32_1 = arith.constant 0 : i32
    return %c0_i32, %c0_i32_0 : i32, i32
  }
  func.func @transform_3(%arg0: i32) -> (i32, i32) {
    %c0_i32 = arith.constant 0 : i32
    %c0_i32_0 = arith.constant 0 : i32
    %c0_i32_1 = arith.constant 0 : i32
    return %c0_i32, %c0_i32_0 : i32, i32
  }
  func.func @transform_4(%arg0: i32) -> (i32, i32) {
    %c0_i32 = arith.constant 0 : i32
    %c0_i32_0 = arith.constant 0 : i32
    %c0_i32_1 = arith.constant 0 : i32
    return %c0_i32, %c0_i32_0 : i32, i32
  }
  func.func @transform_5(%arg0: i32) -> (i32, i32) {
    %c0_i32 = arith.constant 0 : i32
    %c0_i32_0 = arith.constant 0 : i32
    return %arg0, %c0_i32 : i32, i32
  }
  func.func @transform_6(%arg0: i32) -> (i32, i32) {
    %c0_i32 = arith.constant 0 : i32
    %c0_i32_0 = arith.constant 0 : i32
    return %arg0, %c0_i32 : i32, i32
  }
}

module attributes {stable_mosaic.version = 11 : i64} {
  func.func @_stage_connector_kernel(%arg0: i32, %arg1: memref<8x128xbf16, #tpu.memory_space<vmem>>, %arg2: memref<128x128xbf16, #tpu.memory_space<vmem>>, %arg3: memref<1x128xf32, #tpu.memory_space<vmem>>, %arg4: memref<128x512xbf16, #tpu.memory_space<vmem>>, %arg5: memref<1x512xf32, #tpu.memory_space<vmem>>, %arg6: memref<8x128xbf16, #tpu.memory_space<vmem>>, %arg7: memref<8x512xf32, #tpu.memory_space<vmem>>) attributes {dimension_semantics = [#tpu.dimension_semantics<parallel>], iteration_bounds = array<i64: 1>, scalar_prefetch = 0 : i64, scratch_operands = 0 : i64, tpu.core_type = #tpu.core_type<tc>, window_params = [{transform_indices = @transform_0, window_bounds = array<i64: 8, 128>}, {pipeline_mode = #tpu.pipeline_mode<synchronous>, transform_indices = @transform_1, window_bounds = array<i64: 128, 128>}, {pipeline_mode = #tpu.pipeline_mode<synchronous>, transform_indices = @transform_2, window_bounds = array<i64: 1, 128>}, {pipeline_mode = #tpu.pipeline_mode<synchronous>, transform_indices = @transform_3, window_bounds = array<i64: 128, 512>}, {pipeline_mode = #tpu.pipeline_mode<synchronous>, transform_indices = @transform_4, window_bounds = array<i64: 1, 512>}, {transform_indices = @transform_5, window_bounds = array<i64: 8, 128>}, {transform_indices = @transform_6, window_bounds = array<i64: 8, 512>}]} {
    %c0 = arith.constant 0 : index
    %c0_0 = arith.constant 0 : index
    %0 = vector.load %arg1[%c0, %c0_0] : memref<8x128xbf16, #tpu.memory_space<vmem>>, vector<8x128xbf16>
    %c0_1 = arith.constant 0 : index
    %c0_2 = arith.constant 0 : index
    %1 = vector.load %arg2[%c0_1, %c0_2] : memref<128x128xbf16, #tpu.memory_space<vmem>>, vector<128x128xbf16>
    %cst = arith.constant dense<0.000000e+00> : vector<8x128xf32>
    %2 = tpu.matmul %0, %1, %cst {dimension_numbers = #tpu.dot_dimension_numbers<[1], [0], [0], [1], [0, 0, 1, 1], [], []>} : vector<8x128xbf16>, vector<128x128xbf16>, vector<8x128xf32> -> vector<8x128xf32>
    %c0_3 = arith.constant 0 : index
    %c0_4 = arith.constant 0 : index
    %3 = vector.load %arg3[%c0_3, %c0_4] : memref<1x128xf32, #tpu.memory_space<vmem>>, vector<1x128xf32>
    %4 = vector.broadcast %3 : vector<1x128xf32> to vector<8x128xf32>
    %5 = arith.addf %2, %4 : vector<8x128xf32>
    %cst_5 = arith.constant 0.000000e+00 : f32
    %6 = vector.broadcast %cst_5 : f32 to vector<8x128xf32>
    %7 = arith.maximumf %5, %6 : vector<8x128xf32>
    %8 = arith.truncf %7 : vector<8x128xf32> to vector<8x128xbf16>
    %c0_6 = arith.constant 0 : index
    %c0_7 = arith.constant 0 : index
    %9 = vector.load %arg6[%c0_6, %c0_7] : memref<8x128xbf16, #tpu.memory_space<vmem>>, vector<8x128xbf16>
    tpu.vector_store %arg6[%c0_6, %c0_7], %8 {strides = array<i32>} : memref<8x128xbf16, #tpu.memory_space<vmem>>, vector<8x128xbf16>,
    %10 = arith.truncf %7 : vector<8x128xf32> to vector<8x128xbf16>
    %c0_8 = arith.constant 0 : index
    %c0_9 = arith.constant 0 : index
    %11 = vector.load %arg4[%c0_8, %c0_9] : memref<128x512xbf16, #tpu.memory_space<vmem>>, vector<128x512xbf16>
    %cst_10 = arith.constant dense<0.000000e+00> : vector<8x512xf32>
    %12 = tpu.matmul %10, %11, %cst_10 {dimension_numbers = #tpu.dot_dimension_numbers<[1], [0], [0], [1], [0, 0, 1, 1], [], []>} : vector<8x128xbf16>, vector<128x512xbf16>, vector<8x512xf32> -> vector<8x512xf32>
    %c0_11 = arith.constant 0 : index
    %c0_12 = arith.constant 0 : index
    %13 = vector.load %arg5[%c0_11, %c0_12] : memref<1x512xf32, #tpu.memory_space<vmem>>, vector<1x512xf32>
    %14 = vector.broadcast %13 : vector<1x512xf32> to vector<8x512xf32>
    %15 = arith.addf %12, %14 : vector<8x512xf32>
    %cst_13 = arith.constant 0.000000e+00 : f32
    %16 = vector.broadcast %cst_13 : f32 to vector<8x512xf32>
    %17 = arith.maximumf %15, %16 : vector<8x512xf32>
    %c0_14 = arith.constant 0 : index
    %c0_15 = arith.constant 0 : index
    %18 = vector.load %arg7[%c0_14, %c0_15] : memref<8x512xf32, #tpu.memory_space<vmem>>, vector<8x512xf32>
    tpu.vector_store %arg7[%c0_14, %c0_15], %17 {strides = array<i32>} : memref<8x512xf32, #tpu.memory_space<vmem>>, vector<8x512xf32>,
    return
  }
  func.func @transform_0(%arg0: i32) -> (i32, i32) {
    %c0_i32 = arith.constant 0 : i32
    %c0_i32_0 = arith.constant 0 : i32
    return %arg0, %c0_i32 : i32, i32
  }
  func.func @transform_1(%arg0: i32) -> (i32, i32) {
    %c0_i32 = arith.constant 0 : i32
    %c0_i32_0 = arith.constant 0 : i32
    %c0_i32_1 = arith.constant 0 : i32
    return %c0_i32, %c0_i32_0 : i32, i32
  }
  func.func @transform_2(%arg0: i32) -> (i32, i32) {
    %c0_i32 = arith.constant 0 : i32
    %c0_i32_0 = arith.constant 0 : i32
    %c0_i32_1 = arith.constant 0 : i32
    return %c0_i32, %c0_i32_0 : i32, i32
  }
  func.func @transform_3(%arg0: i32) -> (i32, i32) {
    %c0_i32 = arith.constant 0 : i32
    %c0_i32_0 = arith.constant 0 : i32
    %c0_i32_1 = arith.constant 0 : i32
    return %c0_i32, %c0_i32_0 : i32, i32
  }
  func.func @transform_4(%arg0: i32) -> (i32, i32) {
    %c0_i32 = arith.constant 0 : i32
    %c0_i32_0 = arith.constant 0 : i32
    %c0_i32_1 = arith.constant 0 : i32
    return %c0_i32, %c0_i32_0 : i32, i32
  }
  func.func @transform_5(%arg0: i32) -> (i32, i32) {
    %c0_i32 = arith.constant 0 : i32
    %c0_i32_0 = arith.constant 0 : i32
    return %arg0, %c0_i32 : i32, i32
  }
  func.func @transform_6(%arg0: i32) -> (i32, i32) {
    %c0_i32 = arith.constant 0 : i32
    %c0_i32_0 = arith.constant 0 : i32
    return %arg0, %c0_i32 : i32, i32
  }
}

module attributes {stable_mosaic.version = 11 : i64} {
  func.func @_stage_connector_kernel(%arg0: i32, %arg1: memref<8x128xbf16, #tpu.memory_space<vmem>>, %arg2: memref<128x256xbf16, #tpu.memory_space<vmem>>, %arg3: memref<1x256xf32, #tpu.memory_space<vmem>>, %arg4: memref<256x512xbf16, #tpu.memory_space<vmem>>, %arg5: memref<1x512xf32, #tpu.memory_space<vmem>>, %arg6: memref<8x256xbf16, #tpu.memory_space<vmem>>, %arg7: memref<8x512xf32, #tpu.memory_space<vmem>>) attributes {dimension_semantics = [#tpu.dimension_semantics<parallel>], iteration_bounds = array<i64: 1>, scalar_prefetch = 0 : i64, scratch_operands = 0 : i64, tpu.core_type = #tpu.core_type<tc>, window_params = [{transform_indices = @transform_0, window_bounds = array<i64: 8, 128>}, {pipeline_mode = #tpu.pipeline_mode<synchronous>, transform_indices = @transform_1, window_bounds = array<i64: 128, 256>}, {pipeline_mode = #tpu.pipeline_mode<synchronous>, transform_indices = @transform_2, window_bounds = array<i64: 1, 256>}, {pipeline_mode = #tpu.pipeline_mode<synchronous>, transform_indices = @transform_3, window_bounds = array<i64: 256, 512>}, {pipeline_mode = #tpu.pipeline_mode<synchronous>, transform_indices = @transform_4, window_bounds = array<i64: 1, 512>}, {transform_indices = @transform_5, window_bounds = array<i64: 8, 256>}, {transform_indices = @transform_6, window_bounds = array<i64: 8, 512>}]} {
    %c0 = arith.constant 0 : index
    %c0_0 = arith.constant 0 : index
    %0 = vector.load %arg1[%c0, %c0_0] : memref<8x128xbf16, #tpu.memory_space<vmem>>, vector<8x128xbf16>
    %c0_1 = arith.constant 0 : index
    %c0_2 = arith.constant 0 : index
    %1 = vector.load %arg2[%c0_1, %c0_2] : memref<128x256xbf16, #tpu.memory_space<vmem>>, vector<128x256xbf16>
    %cst = arith.constant dense<0.000000e+00> : vector<8x256xf32>
    %2 = tpu.matmul %0, %1, %cst {dimension_numbers = #tpu.dot_dimension_numbers<[1], [0], [0], [1], [0, 0, 1, 1], [], []>} : vector<8x128xbf16>, vector<128x256xbf16>, vector<8x256xf32> -> vector<8x256xf32>
    %c0_3 = arith.constant 0 : index
    %c0_4 = arith.constant 0 : index
    %3 = vector.load %arg3[%c0_3, %c0_4] : memref<1x256xf32, #tpu.memory_space<vmem>>, vector<1x256xf32>
    %4 = vector.broadcast %3 : vector<1x256xf32> to vector<8x256xf32>
    %5 = arith.addf %2, %4 : vector<8x256xf32>
    %cst_5 = arith.constant 0.000000e+00 : f32
    %6 = vector.broadcast %cst_5 : f32 to vector<8x256xf32>
    %7 = arith.maximumf %5, %6 : vector<8x256xf32>
    %8 = arith.truncf %7 : vector<8x256xf32> to vector<8x256xbf16>
    %c0_6 = arith.constant 0 : index
    %c0_7 = arith.constant 0 : index
    %9 = vector.load %arg6[%c0_6, %c0_7] : memref<8x256xbf16, #tpu.memory_space<vmem>>, vector<8x256xbf16>
    tpu.vector_store %arg6[%c0_6, %c0_7], %8 {strides = array<i32>} : memref<8x256xbf16, #tpu.memory_space<vmem>>, vector<8x256xbf16>,
    %10 = arith.truncf %7 : vector<8x256xf32> to vector<8x256xbf16>
    %c0_8 = arith.constant 0 : index
    %c0_9 = arith.constant 0 : index
    %11 = vector.load %arg4[%c0_8, %c0_9] : memref<256x512xbf16, #tpu.memory_space<vmem>>, vector<256x512xbf16>
    %cst_10 = arith.constant dense<0.000000e+00> : vector<8x512xf32>
    %12 = tpu.matmul %10, %11, %cst_10 {dimension_numbers = #tpu.dot_dimension_numbers<[1], [0], [0], [1], [0, 0, 1, 1], [], []>} : vector<8x256xbf16>, vector<256x512xbf16>, vector<8x512xf32> -> vector<8x512xf32>
    %c0_11 = arith.constant 0 : index
    %c0_12 = arith.constant 0 : index
    %13 = vector.load %arg5[%c0_11, %c0_12] : memref<1x512xf32, #tpu.memory_space<vmem>>, vector<1x512xf32>
    %14 = vector.broadcast %13 : vector<1x512xf32> to vector<8x512xf32>
    %15 = arith.addf %12, %14 : vector<8x512xf32>
    %cst_13 = arith.constant 0.000000e+00 : f32
    %16 = vector.broadcast %cst_13 : f32 to vector<8x512xf32>
    %17 = arith.maximumf %15, %16 : vector<8x512xf32>
    %c0_14 = arith.constant 0 : index
    %c0_15 = arith.constant 0 : index
    %18 = vector.load %arg7[%c0_14, %c0_15] : memref<8x512xf32, #tpu.memory_space<vmem>>, vector<8x512xf32>
    tpu.vector_store %arg7[%c0_14, %c0_15], %17 {strides = array<i32>} : memref<8x512xf32, #tpu.memory_space<vmem>>, vector<8x512xf32>,
    return
  }
  func.func @transform_0(%arg0: i32) -> (i32, i32) {
    %c0_i32 = arith.constant 0 : i32
    %c0_i32_0 = arith.constant 0 : i32
    return %arg0, %c0_i32 : i32, i32
  }
  func.func @transform_1(%arg0: i32) -> (i32, i32) {
    %c0_i32 = arith.constant 0 : i32
    %c0_i32_0 = arith.constant 0 : i32
    %c0_i32_1 = arith.constant 0 : i32
    return %c0_i32, %c0_i32_0 : i32, i32
  }
  func.func @transform_2(%arg0: i32) -> (i32, i32) {
    %c0_i32 = arith.constant 0 : i32
    %c0_i32_0 = arith.constant 0 : i32
    %c0_i32_1 = arith.constant 0 : i32
    return %c0_i32, %c0_i32_0 : i32, i32
  }
  func.func @transform_3(%arg0: i32) -> (i32, i32) {
    %c0_i32 = arith.constant 0 : i32
    %c0_i32_0 = arith.constant 0 : i32
    %c0_i32_1 = arith.constant 0 : i32
    return %c0_i32, %c0_i32_0 : i32, i32
  }
  func.func @transform_4(%arg0: i32) -> (i32, i32) {
    %c0_i32 = arith.constant 0 : i32
    %c0_i32_0 = arith.constant 0 : i32
    %c0_i32_1 = arith.constant 0 : i32
    return %c0_i32, %c0_i32_0 : i32, i32
  }
  func.func @transform_5(%arg0: i32) -> (i32, i32) {
    %c0_i32 = arith.constant 0 : i32
    %c0_i32_0 = arith.constant 0 : i32
    return %arg0, %c0_i32 : i32, i32
  }
  func.func @transform_6(%arg0: i32) -> (i32, i32) {
    %c0_i32 = arith.constant 0 : i32
    %c0_i32_0 = arith.constant 0 : i32
    return %arg0, %c0_i32 : i32, i32
  }
}

</mosaic_0001>

<bundles_post_ra>
// kernel: channel_distill_forward.16
= control target key start
LH: loop header
LB: loop body
LE: loop exit
PB: predicated region body
PF: predicated region fallthrough
CT: control target
= control target key end

     0   :  { %s618_s1 = inlined_call_operand.vmem [shape: bf16[128,128], index: 1, kind: input, shape index: {}]   ;;  %s619_s0 = inlined_call_operand.vmem [shape: bf16[128,128], index: 0, kind: input, shape index: {}]   ;;  %s620_s2 = inlined_call_operand.vmem [shape: f32[1,128], index: 2, kind: input, shape index: {}]   ;;  %s621_s3 = inlined_call_operand.vmem [shape: bf16[128,128], index: 3, kind: output, shape index: {}]  }
   0x1   :  { %v507_v0 = vld [vmem:[%s618_s1] sm:$0xff]   ;;  %v508_v1 = vld [vmem:[%s618_s1 + $0x8] sm:$0xff]   ;;  %v509_v2 = vld [vmem:[%s618_s1 + $0x10] sm:$0xff]  }
   0x2   :  { %459 = vmatprep.subr.bf16.mxu0 %v507_v0  ;;  %491 = vmatprep.subr.bf16.mxu1 %v507_v0  ;;  %v510_v3 = vld [vmem:[%s618_s1 + $0x18] sm:$0xff]   ;;  %v515_v4 = vld [vmem:[%s619_s0] sm:$0xff]   ;;  %v512_v7 = vld [vmem:[%s618_s1 + $0x28] sm:$0xff]  }
   0x3   :  { %460 = vmatpush3.bf16.msra.mxu0 %v507_v0  ;;  %499 = vmatpush3.bf16.msra.mxu1 %v507_v0  ;;  %v516_v5 = vld [vmem:[%s619_s0 + $0x20] sm:$0xff]   ;;  %v513_v8 = vld [vmem:[%s618_s1 + $0x30] sm:$0xff]   ;;  %v514_v9 = vld [vmem:[%s618_s1 + $0x38] sm:$0xff]  }
   0x4   :  { %461 = vmatprep.subr.bf16.mxu0 %v508_v1  ;;  %492 = vmatprep.subr.bf16.mxu1 %v508_v1  ;;  %v511_v6 = vld [vmem:[%s618_s1 + $0x20] sm:$0xff]   ;;  %v517_v10 = vld [vmem:[%s619_s0 + $0x8] sm:$0xff]   ;;  %v519_v12 = vld [vmem:[%s619_s0 + $0x10] sm:$0xff]  }
   0x5   :  { %475 = vmatprep.mubr.bf16.mxu0 %v515_v4  ;;  %483 = vmatprep.mubr.bf16.mxu1 %v516_v5  ;;  %v518_v11 = vld [vmem:[%s619_s0 + $0x28] sm:$0xff]   ;;  %v520_v13 = vld [vmem:[%s619_s0 + $0x30] sm:$0xff]   ;;  %v521_v14 = vld [vmem:[%s619_s0 + $0x18] sm:$0xff]  }
   0x6   :  { %v522_v15 = vld [vmem:[%s619_s0 + $0x38] sm:$0xff]   ;;  %v347_v16 = vld [vmem:[%s620_s2] ss:$0 sm:$0xff] }
   0x7   :  { %462 = vmatpush3.bf16.msra.mxu0 %v508_v1  ;;  %500 = vmatpush3.bf16.msra.mxu1 %v508_v1 }
   0x8   :  { %463 = vmatprep.subr.bf16.mxu0 %v509_v2  ;;  %493 = vmatprep.subr.bf16.mxu1 %v509_v2 }
   0xb   :  { %464 = vmatpush3.bf16.msra.mxu0 %v509_v2  ;;  %501 = vmatpush3.bf16.msra.mxu1 %v509_v2 }
   0xc   :  { %465 = vmatprep.subr.bf16.mxu0 %v510_v3  ;;  %494 = vmatprep.subr.bf16.mxu1 %v510_v3 }
   0xf   :  { %466 = vmatpush3.bf16.msra.mxu0 %v510_v3  ;;  %502 = vmatpush3.bf16.msra.mxu1 %v510_v3 }
  0x10   :  { %467 = vmatprep.subr.bf16.mxu0 %v511_v6  ;;  %495 = vmatprep.subr.bf16.mxu1 %v511_v6 }
  0x13   :  { %468 = vmatpush3.bf16.msra.mxu0 %v511_v6  ;;  %503 = vmatpush3.bf16.msra.mxu1 %v511_v6 }
  0x14   :  { %469 = vmatprep.subr.bf16.mxu0 %v512_v7  ;;  %496 = vmatprep.subr.bf16.mxu1 %v512_v7 }
  0x17   :  { %470 = vmatpush3.bf16.msra.mxu0 %v512_v7  ;;  %504 = vmatpush3.bf16.msra.mxu1 %v512_v7 }
  0x18   :  { %471 = vmatprep.subr.bf16.mxu0 %v513_v8  ;;  %497 = vmatprep.subr.bf16.mxu1 %v513_v8 }
  0x1b   :  { %472 = vmatpush3.bf16.msra.mxu0 %v513_v8  ;;  %505 = vmatpush3.bf16.msra.mxu1 %v513_v8 }
  0x1c   :  { %473 = vmatprep.subr.bf16.mxu0 %v514_v9  ;;  %498 = vmatprep.subr.bf16.mxu1 %v514_v9 }
  0x1f   :  { %474 = vmatpush3.bf16.msra.mxu0 %v514_v9  ;;  %506 = vmatpush3.bf16.msra.mxu1 %v514_v9 }
  0x22   :  { %476 = vmatmul.mubr.bf16.vlgmr.msra.gmra.mrb[0].mxu0 %v517_v10  ;;  %484 = vmatmul.mubr.bf16.vlgmr.msra.gmra.mrb[0].mxu1 %v518_v11 }
  0x23   :  { %479 = vmatprep.mubr.bf16.mxu0 %v519_v12  ;;  %487 = vmatprep.mubr.bf16.mxu1 %v520_v13 }
  0x2a   :  { %480 = vmatmul.mubr.bf16.gmra.mrb[4].mxu0 %v521_v14  ;;  %488 = vmatmul.mubr.bf16.gmra.mrb[4].mxu1 %v522_v15 }
  0xf5   :  { %v477_v17 = vpop.f32.mrb[0].mxu0  ;;  %v485_v18 = vpop.f32.mrb[0].mxu1 }
  0xf6   :  { %v193_v19 = vadd.f32 %v477_v17, %v347_v16  ;;  %v225_v20 = vadd.f32 %v485_v18, %v347_v16  ;;  %v184_v21 = vpop.f32.mrb[1].mxu0  ;;  %v216_v22 = vpop.f32.mrb[1].mxu1 }
  0xf7   :  { %v185_v23 = vadd.f32 %v347_v16, %v184_v21  ;;  %v217_v24 = vadd.f32 %v347_v16, %v216_v22  ;;  %v478_v25 = vpop.f32.mrb[2].mxu0  ;;  %v486_v26 = vpop.f32.mrb[2].mxu1 }
  0xf8   :  { %v196_v27 = vadd.f32 %v478_v25, %v347_v16  ;;  %v228_v28 = vadd.f32 %v486_v26, %v347_v16  ;;  %v187_v29 = vpop.f32.mrb[3].mxu0  ;;  %v219_v30 = vpop.f32.mrb[3].mxu1  ;;  %v249_v33 = vmax.f32 %v193_v19, 0.0  ;;  %v257_v34 = vmax.f32 %v225_v20, 0.0 }
  0xf9   :  { %v188_v31 = vadd.f32 %v347_v16, %v187_v29  ;;  %v220_v32 = vadd.f32 %v347_v16, %v219_v30  ;;  %v247_v37 = vmax.f32 %v185_v23, 0.0  ;;  %v255_v38 = vmax.f32 %v217_v24, 0.0 }
  0xfa   :  { %v250_v35 = vmax.f32 %v196_v27, 0.0  ;;  %v258_v36 = vmax.f32 %v228_v28, 0.0 }
  0xfb   :  { %v248_v39 = vmax.f32 %v188_v31, 0.0  ;;  %v256_v40 = vmax.f32 %v220_v32, 0.0 }
  0xfc   :  { %v404_v41 = vpack.c.bf16 %v250_v35, %v249_v33  ;;  %v424_v42 = vpack.c.bf16 %v258_v36, %v257_v34 }
  0xfd   :  { %v399_v43 = vpack.c.bf16 %v248_v39, %v247_v37  ;;  %v419_v44 = vpack.c.bf16 %v256_v40, %v255_v38  ;;  %v481_v45 = vpop.f32.mrb[4].mxu0  ;;  %v489_v46 = vpop.f32.mrb[4].mxu1 }
  0xfe   :  { %436 = vst [vmem:[%s621_s3 + $0x8] sm:$0xff] %v404_v41   ;;  %440 = vst [vmem:[%s621_s3 + $0x28] sm:$0xff] %v424_v42   ;;  %v209_v47 = vadd.f32 %v481_v45, %v347_v16  ;;  %v241_v48 = vadd.f32 %v489_v46, %v347_v16  ;;  %v200_v49 = vpop.f32.mrb[5].mxu0  ;;  %v232_v50 = vpop.f32.mrb[5].mxu1 }
  0xff   :  { %400 = vst [vmem:[%s621_s3] sm:$0xff] %v399_v43   ;;  %439 = vst [vmem:[%s621_s3 + $0x20] sm:$0xff] %v419_v44   ;;  %v201_v51 = vadd.f32 %v347_v16, %v200_v49  ;;  %v233_v52 = vadd.f32 %v347_v16, %v232_v50  ;;  %v482_v53 = vpop.f32.mrb[6].mxu0  ;;  %v490_v54 = vpop.f32.mrb[6].mxu1 }
 0x100   :  { %v212_v55 = vadd.f32 %v482_v53, %v347_v16  ;;  %v244_v56 = vadd.f32 %v490_v54, %v347_v16  ;;  %v203_v57 = vpop.f32.mrb[7].mxu0  ;;  %v235_v58 = vpop.f32.mrb[7].mxu1  ;;  %v253_v61 = vmax.f32 %v209_v47, 0.0  ;;  %v261_v62 = vmax.f32 %v241_v48, 0.0 }
 0x101   :  { %v204_v59 = vadd.f32 %v347_v16, %v203_v57  ;;  %v236_v60 = vadd.f32 %v347_v16, %v235_v58  ;;  %v251_v1 = vmax.f32 %v201_v51, 0.0  ;;  %v259_v2 = vmax.f32 %v233_v52, 0.0 }
 0x102   :  { %v254_v63 = vmax.f32 %v212_v55, 0.0  ;;  %v262_v0 = vmax.f32 %v244_v56, 0.0 }
 0x103   :  { %v252_v3 = vmax.f32 %v204_v59, 0.0  ;;  %v260_v4 = vmax.f32 %v236_v60, 0.0 }
 0x104   :  { %v414_v5 = vpack.c.bf16 %v254_v63, %v253_v61  ;;  %v434_v6 = vpack.c.bf16 %v262_v0, %v261_v62 }
 0x105   :  { %v409_v7 = vpack.c.bf16 %v252_v3, %v251_v1  ;;  %v429_v8 = vpack.c.bf16 %v260_v4, %v259_v2 }
 0x106   :  { %438 = vst [vmem:[%s621_s3 + $0x18] sm:$0xff] %v414_v5   ;;  %442 = vst [vmem:[%s621_s3 + $0x38] sm:$0xff] %v434_v6  }
 0x107   :  { %437 = vst [vmem:[%s621_s3 + $0x10] sm:$0xff] %v409_v7   ;;  %441 = vst [vmem:[%s621_s3 + $0x30] sm:$0xff] %v429_v8  }

// kernel: channel_distill_forward.15
= control target key start
LH: loop header
LB: loop body
LE: loop exit
PB: predicated region body
PF: predicated region fallthrough
CT: control target
= control target key end

     0   :  { %s1860_s1 = inlined_call_operand.vmem [shape: bf16[128,128], index: 1, kind: input, shape index: {}]   ;;  %s1861_s0 = inlined_call_operand.vmem [shape: bf16[512,128], index: 0, kind: input, shape index: {}]   ;;  %s1862_s2 = inlined_call_operand.vmem [shape: f32[1,128], index: 2, kind: input, shape index: {}]   ;;  %s1863_s3 = inlined_call_operand.vmem [shape: bf16[512,128], index: 3, kind: output, shape index: {}]  }
   0x1   :  { %v1515_v0 = vld [vmem:[%s1860_s1] sm:$0xff]   ;;  %v1516_v1 = vld [vmem:[%s1860_s1 + $0x8] sm:$0xff]   ;;  %v1517_v2 = vld [vmem:[%s1860_s1 + $0x10] sm:$0xff]  }
   0x2   :  { %1419 = vmatprep.subr.bf16.mxu0 %v1515_v0  ;;  %1499 = vmatprep.subr.bf16.mxu1 %v1515_v0  ;;  %v1518_v3 = vld [vmem:[%s1860_s1 + $0x18] sm:$0xff]   ;;  %v1523_v4 = vld [vmem:[%s1861_s0] sm:$0xff]   ;;  %v1520_v7 = vld [vmem:[%s1860_s1 + $0x28] sm:$0xff]  }
   0x3   :  { %1420 = vmatpush3.bf16.msra.mxu0 %v1515_v0  ;;  %1507 = vmatpush3.bf16.msra.mxu1 %v1515_v0  ;;  %v1524_v5 = vld [vmem:[%s1861_s0 + $0x80] sm:$0xff]   ;;  %v1521_v8 = vld [vmem:[%s1860_s1 + $0x30] sm:$0xff]   ;;  %v1522_v9 = vld [vmem:[%s1860_s1 + $0x38] sm:$0xff]  }
   0x4   :  { %1421 = vmatprep.subr.bf16.mxu0 %v1516_v1  ;;  %1500 = vmatprep.subr.bf16.mxu1 %v1516_v1  ;;  %v1519_v6 = vld [vmem:[%s1860_s1 + $0x20] sm:$0xff]   ;;  %v1525_v10 = vld [vmem:[%s1861_s0 + $0x8] sm:$0xff]   ;;  %v1527_v12 = vld [vmem:[%s1861_s0 + $0x10] sm:$0xff]  }
   0x5   :  { %1435 = vmatprep.mubr.bf16.mxu0 %v1523_v4  ;;  %1467 = vmatprep.mubr.bf16.mxu1 %v1524_v5  ;;  %v1526_v11 = vld [vmem:[%s1861_s0 + $0x88] sm:$0xff]   ;;  %v1528_v13 = vld [vmem:[%s1861_s0 + $0x90] sm:$0xff]   ;;  %v1529_v14 = vld [vmem:[%s1861_s0 + $0x18] sm:$0xff]  }
   0x6   :  { %v1530_v15 = vld [vmem:[%s1861_s0 + $0x98] sm:$0xff]   ;;  %v1531_v16 = vld [vmem:[%s1861_s0 + $0x20] sm:$0xff]   ;;  %v1533_v18 = vld [vmem:[%s1861_s0 + $0x28] sm:$0xff]  }
   0x7   :  { %1422 = vmatpush3.bf16.msra.mxu0 %v1516_v1  ;;  %1508 = vmatpush3.bf16.msra.mxu1 %v1516_v1  ;;  %v1532_v17 = vld [vmem:[%s1861_s0 + $0xa0] sm:$0xff]   ;;  %v1534_v19 = vld [vmem:[%s1861_s0 + $0xa8] sm:$0xff]   ;;  %v1535_v20 = vld [vmem:[%s1861_s0 + $0x30] sm:$0xff]  }
   0x8   :  { %1423 = vmatprep.subr.bf16.mxu0 %v1517_v2  ;;  %1501 = vmatprep.subr.bf16.mxu1 %v1517_v2  ;;  %v1536_v21 = vld [vmem:[%s1861_s0 + $0xb0] sm:$0xff]   ;;  %v1537_v22 = vld [vmem:[%s1861_s0 + $0x38] sm:$0xff]   ;;  %v1539_v24 = vld [vmem:[%s1861_s0 + $0x40] sm:$0xff]  }
   0x9   :  { %v1538_v23 = vld [vmem:[%s1861_s0 + $0xb8] sm:$0xff]   ;;  %v1540_v25 = vld [vmem:[%s1861_s0 + $0xc0] sm:$0xff]   ;;  %v1541_v26 = vld [vmem:[%s1861_s0 + $0x48] sm:$0xff]  }
   0xa   :  { %v1542_v27 = vld [vmem:[%s1861_s0 + $0xc8] sm:$0xff]   ;;  %v1543_v28 = vld [vmem:[%s1861_s0 + $0x50] sm:$0xff]   ;;  %v1545_v30 = vld [vmem:[%s1861_s0 + $0x58] sm:$0xff]  }
   0xb   :  { %1424 = vmatpush3.bf16.msra.mxu0 %v1517_v2  ;;  %1509 = vmatpush3.bf16.msra.mxu1 %v1517_v2  ;;  %v1544_v29 = vld [vmem:[%s1861_s0 + $0xd0] sm:$0xff]   ;;  %v1546_v31 = vld [vmem:[%s1861_s0 + $0xd8] sm:$0xff]   ;;  %v1547_v32 = vld [vmem:[%s1861_s0 + $0x60] sm:$0xff]  }
   0xc   :  { %1425 = vmatprep.subr.bf16.mxu0 %v1518_v3  ;;  %1502 = vmatprep.subr.bf16.mxu1 %v1518_v3  ;;  %v1548_v33 = vld [vmem:[%s1861_s0 + $0xe0] sm:$0xff]   ;;  %v1549_v34 = vld [vmem:[%s1861_s0 + $0x68] sm:$0xff]   ;;  %v1551_v36 = vld [vmem:[%s1861_s0 + $0x70] sm:$0xff]  }
   0xd   :  { %v1550_v35 = vld [vmem:[%s1861_s0 + $0xe8] sm:$0xff]   ;;  %v1552_v37 = vld [vmem:[%s1861_s0 + $0xf0] sm:$0xff]   ;;  %v1553_v38 = vld [vmem:[%s1861_s0 + $0x78] sm:$0xff]  }
   0xe   :  { %v1554_v39 = vld [vmem:[%s1861_s0 + $0xf8] sm:$0xff]   ;;  %v1698_v40 = vld [vmem:[%s1862_s2] ss:$0 sm:$0xff] }
   0xf   :  { %1426 = vmatpush3.bf16.msra.mxu0 %v1518_v3  ;;  %1510 = vmatpush3.bf16.msra.mxu1 %v1518_v3 }
  0x10   :  { %1427 = vmatprep.subr.bf16.mxu0 %v1519_v6  ;;  %1503 = vmatprep.subr.bf16.mxu1 %v1519_v6 }
  0x13   :  { %1428 = vmatpush3.bf16.msra.mxu0 %v1519_v6  ;;  %1511 = vmatpush3.bf16.msra.mxu1 %v1519_v6 }
  0x14   :  { %1429 = vmatprep.subr.bf16.mxu0 %v1520_v7  ;;  %1504 = vmatprep.subr.bf16.mxu1 %v1520_v7 }
  0x17   :  { %1430 = vmatpush3.bf16.msra.mxu0 %v1520_v7  ;;  %1512 = vmatpush3.bf16.msra.mxu1 %v1520_v7 }
  0x18   :  { %1431 = vmatprep.subr.bf16.mxu0 %v1521_v8  ;;  %1505 = vmatprep.subr.bf16.mxu1 %v1521_v8 }
  0x1b   :  { %1432 = vmatpush3.bf16.msra.mxu0 %v1521_v8  ;;  %1513 = vmatpush3.bf16.msra.mxu1 %v1521_v8 }
  0x1c   :  { %1433 = vmatprep.subr.bf16.mxu0 %v1522_v9  ;;  %1506 = vmatprep.subr.bf16.mxu1 %v1522_v9 }
  0x1f   :  { %1434 = vmatpush3.bf16.msra.mxu0 %v1522_v9  ;;  %1514 = vmatpush3.bf16.msra.mxu1 %v1522_v9 }
  0x22   :  { %1436 = vmatmul.mubr.bf16.vlgmr.msra.gmra.mrb[0].mxu0 %v1525_v10  ;;  %1468 = vmatmul.mubr.bf16.vlgmr.msra.gmra.mrb[0].mxu1 %v1526_v11 }
  0x23   :  { %1439 = vmatprep.mubr.bf16.mxu0 %v1527_v12  ;;  %1471 = vmatprep.mubr.bf16.mxu1 %v1528_v13 }
  0x2a   :  { %1440 = vmatmul.mubr.bf16.gmra.mrb[4].mxu0 %v1529_v14  ;;  %1472 = vmatmul.mubr.bf16.gmra.mrb[4].mxu1 %v1530_v15 }
  0x2b   :  { %1443 = vmatprep.mubr.bf16.mxu0 %v1531_v16  ;;  %1475 = vmatprep.mubr.bf16.mxu1 %v1532_v17 }
  0x32   :  { %1444 = vmatmul.mubr.bf16.gmra.mrb[8].mxu0 %v1533_v18  ;;  %1476 = vmatmul.mubr.bf16.gmra.mrb[8].mxu1 %v1534_v19 }
  0x33   :  { %1447 = vmatprep.mubr.bf16.mxu0 %v1535_v20  ;;  %1479 = vmatprep.mubr.bf16.mxu1 %v1536_v21 }
  0x3a   :  { %1448 = vmatmul.mubr.bf16.gmra.mrb[12].mxu0 %v1537_v22  ;;  %1480 = vmatmul.mubr.bf16.gmra.mrb[12].mxu1 %v1538_v23 }
  0x3b   :  { %1451 = vmatprep.mubr.bf16.mxu0 %v1539_v24  ;;  %1483 = vmatprep.mubr.bf16.mxu1 %v1540_v25 }
  0x42   :  { %1452 = vmatmul.mubr.bf16.gmra.mrb[16].mxu0 %v1541_v26  ;;  %1484 = vmatmul.mubr.bf16.gmra.mrb[16].mxu1 %v1542_v27 }
  0x43   :  { %1455 = vmatprep.mubr.bf16.mxu0 %v1543_v28  ;;  %1487 = vmatprep.mubr.bf16.mxu1 %v1544_v29 }
  0x4a   :  { %1456 = vmatmul.mubr.bf16.gmra.mrb[20].mxu0 %v1545_v30  ;;  %1488 = vmatmul.mubr.bf16.gmra.mrb[20].mxu1 %v1546_v31 }
  0x4b   :  { %1459 = vmatprep.mubr.bf16.mxu0 %v1547_v32  ;;  %1491 = vmatprep.mubr.bf16.mxu1 %v1548_v33 }
  0x52   :  { %1460 = vmatmul.mubr.bf16.gmra.mrb[24].mxu0 %v1549_v34  ;;  %1492 = vmatmul.mubr.bf16.gmra.mrb[24].mxu1 %v1550_v35 }
  0x53   :  { %1463 = vmatprep.mubr.bf16.mxu0 %v1551_v36  ;;  %1495 = vmatprep.mubr.bf16.mxu1 %v1552_v37 }
  0x5a   :  { %1464 = vmatmul.mubr.bf16.gmra.mrb[28].mxu0 %v1553_v38  ;;  %1496 = vmatmul.mubr.bf16.gmra.mrb[28].mxu1 %v1554_v39 }
  0xf5   :  { %v1437_v41 = vpop.f32.mrb[0].mxu0  ;;  %v1469_v42 = vpop.f32.mrb[0].mxu1 }
  0xf6   :  { %v385_v43 = vadd.f32 %v1437_v41, %v1698_v40  ;;  %v513_v44 = vadd.f32 %v1469_v42, %v1698_v40  ;;  %v376_v45 = vpop.f32.mrb[1].mxu0  ;;  %v504_v46 = vpop.f32.mrb[1].mxu1 }
  0xf7   :  { %v377_v47 = vadd.f32 %v1698_v40, %v376_v45  ;;  %v505_v48 = vadd.f32 %v1698_v40, %v504_v46  ;;  %v1438_v49 = vpop.f32.mrb[2].mxu0  ;;  %v1470_v50 = vpop.f32.mrb[2].mxu1 }
  0xf8   :  { %v388_v51 = vadd.f32 %v1438_v49, %v1698_v40  ;;  %v516_v52 = vadd.f32 %v1470_v50, %v1698_v40  ;;  %v379_v53 = vpop.f32.mrb[3].mxu0  ;;  %v507_v54 = vpop.f32.mrb[3].mxu1  ;;  %v633_v57 = vmax.f32 %v385_v43, 0.0  ;;  %v665_v58 = vmax.f32 %v513_v44, 0.0 }
  0xf9   :  { %v380_v55 = vadd.f32 %v1698_v40, %v379_v53  ;;  %v508_v56 = vadd.f32 %v1698_v40, %v507_v54  ;;  %v631_v61 = vmax.f32 %v377_v47, 0.0  ;;  %v663_v62 = vmax.f32 %v505_v48, 0.0 }
  0xfa   :  { %v634_v59 = vmax.f32 %v388_v51, 0.0  ;;  %v666_v60 = vmax.f32 %v516_v52, 0.0 }
  0xfb   :  { %v632_v63 = vmax.f32 %v380_v55, 0.0  ;;  %v664_v0 = vmax.f32 %v508_v56, 0.0 }
  0xfc   :  { %v1196_v1 = vpack.c.bf16 %v634_v59, %v633_v57  ;;  %v1276_v2 = vpack.c.bf16 %v666_v60, %v665_v58 }
  0xfd   :  { %v1191_v3 = vpack.c.bf16 %v632_v63, %v631_v61  ;;  %v1271_v4 = vpack.c.bf16 %v664_v0, %v663_v62  ;;  %v1441_v5 = vpop.f32.mrb[4].mxu0  ;;  %v1473_v6 = vpop.f32.mrb[4].mxu1 }
  0xfe   :  { %1348 = vst [vmem:[%s1863_s3 + $0x8] sm:$0xff] %v1196_v1   ;;  %1364 = vst [vmem:[%s1863_s3 + $0x88] sm:$0xff] %v1276_v2   ;;  %v401_v7 = vadd.f32 %v1441_v5, %v1698_v40  ;;  %v529_v8 = vadd.f32 %v1473_v6, %v1698_v40  ;;  %v392_v9 = vpop.f32.mrb[5].mxu0  ;;  %v520_v10 = vpop.f32.mrb[5].mxu1 }
  0xff   :  { %1192 = vst [vmem:[%s1863_s3] sm:$0xff] %v1191_v3   ;;  %1363 = vst [vmem:[%s1863_s3 + $0x80] sm:$0xff] %v1271_v4   ;;  %v393_v11 = vadd.f32 %v1698_v40, %v392_v9  ;;  %v521_v12 = vadd.f32 %v1698_v40, %v520_v10  ;;  %v1442_v13 = vpop.f32.mrb[6].mxu0  ;;  %v1474_v14 = vpop.f32.mrb[6].mxu1 }
 0x100   :  { %v404_v15 = vadd.f32 %v1442_v13, %v1698_v40  ;;  %v532_v16 = vadd.f32 %v1474_v14, %v1698_v40  ;;  %v395_v17 = vpop.f32.mrb[7].mxu0  ;;  %v523_v18 = vpop.f32.mrb[7].mxu1  ;;  %v637_v21 = vmax.f32 %v401_v7, 0.0  ;;  %v669_v22 = vmax.f32 %v529_v8, 0.0 }
 0x101   :  { %v396_v19 = vadd.f32 %v1698_v40, %v395_v17  ;;  %v524_v20 = vadd.f32 %v1698_v40, %v523_v18  ;;  %v635_v25 = vmax.f32 %v393_v11, 0.0  ;;  %v667_v26 = vmax.f32 %v521_v12, 0.0 }
 0x102   :  { %v638_v23 = vmax.f32 %v404_v15, 0.0  ;;  %v670_v24 = vmax.f32 %v532_v16, 0.0 }
 0x103   :  { %v636_v27 = vmax.f32 %v396_v19, 0.0  ;;  %v668_v28 = vmax.f32 %v524_v20, 0.0 }
 0x104   :  { %v1206_v29 = vpack.c.bf16 %v638_v23, %v637_v21  ;;  %v1286_v30 = vpack.c.bf16 %v670_v24, %v669_v22 }
 0x105   :  { %v1201_v31 = vpack.c.bf16 %v636_v27, %v635_v25  ;;  %v1281_v32 = vpack.c.bf16 %v668_v28, %v667_v26  ;;  %v1445_v33 = vpop.f32.mrb[8].mxu0  ;;  %v1477_v34 = vpop.f32.mrb[8].mxu1 }
 0x106   :  { %1350 = vst [vmem:[%s1863_s3 + $0x18] sm:$0xff] %v1206_v29   ;;  %1366 = vst [vmem:[%s1863_s3 + $0x98] sm:$0xff] %v1286_v30   ;;  %v417_v35 = vadd.f32 %v1445_v33, %v1698_v40  ;;  %v545_v36 = vadd.f32 %v1477_v34, %v1698_v40  ;;  %v408_v37 = vpop.f32.mrb[9].mxu0  ;;  %v536_v38 = vpop.f32.mrb[9].mxu1 }
 0x107   :  { %1349 = vst [vmem:[%s1863_s3 + $0x10] sm:$0xff] %v1201_v31   ;;  %1365 = vst [vmem:[%s1863_s3 + $0x90] sm:$0xff] %v1281_v32   ;;  %v409_v39 = vadd.f32 %v1698_v40, %v408_v37  ;;  %v537_v41 = vadd.f32 %v1698_v40, %v536_v38  ;;  %v1446_v42 = vpop.f32.mrb[10].mxu0  ;;  %v1478_v43 = vpop.f32.mrb[10].mxu1 }
 0x108   :  { %v420_v44 = vadd.f32 %v1446_v42, %v1698_v40  ;;  %v548_v45 = vadd.f32 %v1478_v43, %v1698_v40  ;;  %v411_v46 = vpop.f32.mrb[11].mxu0  ;;  %v539_v47 = vpop.f32.mrb[11].mxu1  ;;  %v641_v50 = vmax.f32 %v417_v35, 0.0  ;;  %v673_v51 = vmax.f32 %v545_v36, 0.0 }
 0x109   :  { %v412_v48 = vadd.f32 %v1698_v40, %v411_v46  ;;  %v540_v49 = vadd.f32 %v1698_v40, %v539_v47  ;;  %v639_v54 = vmax.f32 %v409_v39, 0.0  ;;  %v671_v55 = vmax.f32 %v537_v41, 0.0 }
 0x10a   :  { %v642_v52 = vmax.f32 %v420_v44, 0.0  ;;  %v674_v53 = vmax.f32 %v548_v45, 0.0 }
 0x10b   :  { %v640_v56 = vmax.f32 %v412_v48, 0.0  ;;  %v672_v57 = vmax.f32 %v540_v49, 0.0 }
 0x10c   :  { %v1216_v58 = vpack.c.bf16 %v642_v52, %v641_v50  ;;  %v1296_v59 = vpack.c.bf16 %v674_v53, %v673_v51 }
 0x10d   :  { %v1211_v60 = vpack.c.bf16 %v640_v56, %v639_v54  ;;  %v1291_v61 = vpack.c.bf16 %v672_v57, %v671_v55  ;;  %v1449_v62 = vpop.f32.mrb[12].mxu0  ;;  %v1481_v63 = vpop.f32.mrb[12].mxu1 }
 0x10e   :  { %1352 = vst [vmem:[%s1863_s3 + $0x28] sm:$0xff] %v1216_v58   ;;  %1368 = vst [vmem:[%s1863_s3 + $0xa8] sm:$0xff] %v1296_v59   ;;  %v433_v0 = vadd.f32 %v1449_v62, %v1698_v40  ;;  %v561_v1 = vadd.f32 %v1481_v63, %v1698_v40  ;;  %v424_v2 = vpop.f32.mrb[13].mxu0  ;;  %v552_v3 = vpop.f32.mrb[13].mxu1 }
 0x10f   :  { %1351 = vst [vmem:[%s1863_s3 + $0x20] sm:$0xff] %v1211_v60   ;;  %1367 = vst [vmem:[%s1863_s3 + $0xa0] sm:$0xff] %v1291_v61   ;;  %v425_v4 = vadd.f32 %v1698_v40, %v424_v2  ;;  %v553_v5 = vadd.f32 %v1698_v40, %v552_v3  ;;  %v1450_v6 = vpop.f32.mrb[14].mxu0  ;;  %v1482_v7 = vpop.f32.mrb[14].mxu1 }
 0x110   :  { %v436_v8 = vadd.f32 %v1450_v6, %v1698_v40  ;;  %v564_v9 = vadd.f32 %v1482_v7, %v1698_v40  ;;  %v427_v10 = vpop.f32.mrb[15].mxu0  ;;  %v555_v11 = vpop.f32.mrb[15].mxu1  ;;  %v645_v14 = vmax.f32 %v433_v0, 0.0  ;;  %v677_v15 = vmax.f32 %v561_v1, 0.0 }
 0x111   :  { %v428_v12 = vadd.f32 %v1698_v40, %v427_v10  ;;  %v556_v13 = vadd.f32 %v1698_v40, %v555_v11  ;;  %v643_v18 = vmax.f32 %v425_v4, 0.0  ;;  %v675_v19 = vmax.f32 %v553_v5, 0.0 }
 0x112   :  { %v646_v16 = vmax.f32 %v436_v8, 0.0  ;;  %v678_v17 = vmax.f32 %v564_v9, 0.0 }
 0x113   :  { %v644_v20 = vmax.f32 %v428_v12, 0.0  ;;  %v676_v21 = vmax.f32 %v556_v13, 0.0 }
 0x114   :  { %v1226_v22 = vpack.c.bf16 %v646_v16, %v645_v14  ;;  %v1306_v23 = vpack.c.bf16 %v678_v17, %v677_v15 }
 0x115   :  { %v1221_v24 = vpack.c.bf16 %v644_v20, %v643_v18  ;;  %v1301_v25 = vpack.c.bf16 %v676_v21, %v675_v19  ;;  %v1453_v26 = vpop.f32.mrb[16].mxu0  ;;  %v1485_v27 = vpop.f32.mrb[16].mxu1 }
 0x116   :  { %1354 = vst [vmem:[%s1863_s3 + $0x38] sm:$0xff] %v1226_v22   ;;  %1370 = vst [vmem:[%s1863_s3 + $0xb8] sm:$0xff] %v1306_v23   ;;  %v449_v28 = vadd.f32 %v1453_v26, %v1698_v40  ;;  %v577_v29 = vadd.f32 %v1485_v27, %v1698_v40  ;;  %v440_v30 = vpop.f32.mrb[17].mxu0  ;;  %v568_v31 = vpop.f32.mrb[17].mxu1 }
 0x117   :  { %1353 = vst [vmem:[%s1863_s3 + $0x30] sm:$0xff] %v1221_v24   ;;  %1369 = vst [vmem:[%s1863_s3 + $0xb0] sm:$0xff] %v1301_v25   ;;  %v441_v32 = vadd.f32 %v1698_v40, %v440_v30  ;;  %v569_v33 = vadd.f32 %v1698_v40, %v568_v31  ;;  %v1454_v34 = vpop.f32.mrb[18].mxu0  ;;  %v1486_v35 = vpop.f32.mrb[18].mxu1 }
 0x118   :  { %v452_v36 = vadd.f32 %v1454_v34, %v1698_v40  ;;  %v580_v37 = vadd.f32 %v1486_v35, %v1698_v40  ;;  %v443_v38 = vpop.f32.mrb[19].mxu0  ;;  %v571_v39 = vpop.f32.mrb[19].mxu1  ;;  %v649_v43 = vmax.f32 %v449_v28, 0.0  ;;  %v681_v44 = vmax.f32 %v577_v29, 0.0 }
 0x119   :  { %v444_v41 = vadd.f32 %v1698_v40, %v443_v38  ;;  %v572_v42 = vadd.f32 %v1698_v40, %v571_v39  ;;  %v647_v47 = vmax.f32 %v441_v32, 0.0  ;;  %v679_v48 = vmax.f32 %v569_v33, 0.0 }
 0x11a   :  { %v650_v45 = vmax.f32 %v452_v36, 0.0  ;;  %v682_v46 = vmax.f32 %v580_v37, 0.0 }
 0x11b   :  { %v648_v49 = vmax.f32 %v444_v41, 0.0  ;;  %v680_v50 = vmax.f32 %v572_v42, 0.0 }
 0x11c   :  { %v1236_v51 = vpack.c.bf16 %v650_v45, %v649_v43  ;;  %v1316_v52 = vpack.c.bf16 %v682_v46, %v681_v44 }
 0x11d   :  { %v1231_v53 = vpack.c.bf16 %v648_v49, %v647_v47  ;;  %v1311_v54 = vpack.c.bf16 %v680_v50, %v679_v48  ;;  %v1457_v55 = vpop.f32.mrb[20].mxu0  ;;  %v1489_v56 = vpop.f32.mrb[20].mxu1 }
 0x11e   :  { %1356 = vst [vmem:[%s1863_s3 + $0x48] sm:$0xff] %v1236_v51   ;;  %1372 = vst [vmem:[%s1863_s3 + $0xc8] sm:$0xff] %v1316_v52   ;;  %v465_v57 = vadd.f32 %v1457_v55, %v1698_v40  ;;  %v593_v58 = vadd.f32 %v1489_v56, %v1698_v40  ;;  %v456_v59 = vpop.f32.mrb[21].mxu0  ;;  %v584_v60 = vpop.f32.mrb[21].mxu1 }
 0x11f   :  { %1355 = vst [vmem:[%s1863_s3 + $0x40] sm:$0xff] %v1231_v53   ;;  %1371 = vst [vmem:[%s1863_s3 + $0xc0] sm:$0xff] %v1311_v54   ;;  %v457_v61 = vadd.f32 %v1698_v40, %v456_v59  ;;  %v585_v62 = vadd.f32 %v1698_v40, %v584_v60  ;;  %v1458_v63 = vpop.f32.mrb[22].mxu0  ;;  %v1490_v0 = vpop.f32.mrb[22].mxu1 }
 0x120   :  { %v468_v1 = vadd.f32 %v1458_v63, %v1698_v40  ;;  %v596_v2 = vadd.f32 %v1490_v0, %v1698_v40  ;;  %v459_v3 = vpop.f32.mrb[23].mxu0  ;;  %v587_v4 = vpop.f32.mrb[23].mxu1  ;;  %v653_v7 = vmax.f32 %v465_v57, 0.0  ;;  %v685_v8 = vmax.f32 %v593_v58, 0.0 }
 0x121   :  { %v460_v5 = vadd.f32 %v1698_v40, %v459_v3  ;;  %v588_v6 = vadd.f32 %v1698_v40, %v587_v4  ;;  %v651_v11 = vmax.f32 %v457_v61, 0.0  ;;  %v683_v12 = vmax.f32 %v585_v62, 0.0 }
 0x122   :  { %v654_v9 = vmax.f32 %v468_v1, 0.0  ;;  %v686_v10 = vmax.f32 %v596_v2, 0.0 }
 0x123   :  { %v652_v13 = vmax.f32 %v460_v5, 0.0  ;;  %v684_v14 = vmax.f32 %v588_v6, 0.0 }
 0x124   :  { %v1246_v15 = vpack.c.bf16 %v654_v9, %v653_v7  ;;  %v1326_v16 = vpack.c.bf16 %v686_v10, %v685_v8 }
 0x125   :  { %v1241_v17 = vpack.c.bf16 %v652_v13, %v651_v11  ;;  %v1321_v18 = vpack.c.bf16 %v684_v14, %v683_v12  ;;  %v1461_v19 = vpop.f32.mrb[24].mxu0  ;;  %v1493_v20 = vpop.f32.mrb[24].mxu1 }
 0x126   :  { %1358 = vst [vmem:[%s1863_s3 + $0x58] sm:$0xff] %v1246_v15   ;;  %1374 = vst [vmem:[%s1863_s3 + $0xd8] sm:$0xff] %v1326_v16   ;;  %v481_v21 = vadd.f32 %v1461_v19, %v1698_v40  ;;  %v609_v22 = vadd.f32 %v1493_v20, %v1698_v40  ;;  %v472_v23 = vpop.f32.mrb[25].mxu0  ;;  %v600_v24 = vpop.f32.mrb[25].mxu1 }
 0x127   :  { %1357 = vst [vmem:[%s1863_s3 + $0x50] sm:$0xff] %v1241_v17   ;;  %1373 = vst [vmem:[%s1863_s3 + $0xd0] sm:$0xff] %v1321_v18   ;;  %v473_v25 = vadd.f32 %v1698_v40, %v472_v23  ;;  %v601_v26 = vadd.f32 %v1698_v40, %v600_v24  ;;  %v1462_v27 = vpop.f32.mrb[26].mxu0  ;;  %v1494_v28 = vpop.f32.mrb[26].mxu1 }
 0x128   :  { %v484_v29 = vadd.f32 %v1462_v27, %v1698_v40  ;;  %v612_v30 = vadd.f32 %v1494_v28, %v1698_v40  ;;  %v475_v31 = vpop.f32.mrb[27].mxu0  ;;  %v603_v32 = vpop.f32.mrb[27].mxu1  ;;  %v657_v35 = vmax.f32 %v481_v21, 0.0  ;;  %v689_v36 = vmax.f32 %v609_v22, 0.0 }
 0x129   :  { %v476_v33 = vadd.f32 %v1698_v40, %v475_v31  ;;  %v604_v34 = vadd.f32 %v1698_v40, %v603_v32  ;;  %v655_v39 = vmax.f32 %v473_v25, 0.0  ;;  %v687_v41 = vmax.f32 %v601_v26, 0.0 }
 0x12a   :  { %v658_v37 = vmax.f32 %v484_v29, 0.0  ;;  %v690_v38 = vmax.f32 %v612_v30, 0.0 }
 0x12b   :  { %v656_v42 = vmax.f32 %v476_v33, 0.0  ;;  %v688_v43 = vmax.f32 %v604_v34, 0.0 }
 0x12c   :  { %v1256_v44 = vpack.c.bf16 %v658_v37, %v657_v35  ;;  %v1336_v45 = vpack.c.bf16 %v690_v38, %v689_v36 }
 0x12d   :  { %v1251_v46 = vpack.c.bf16 %v656_v42, %v655_v39  ;;  %v1331_v47 = vpack.c.bf16 %v688_v43, %v687_v41  ;;  %v1465_v48 = vpop.f32.mrb[28].mxu0  ;;  %v1497_v49 = vpop.f32.mrb[28].mxu1 }
 0x12e   :  { %1360 = vst [vmem:[%s1863_s3 + $0x68] sm:$0xff] %v1256_v44   ;;  %1376 = vst [vmem:[%s1863_s3 + $0xe8] sm:$0xff] %v1336_v45   ;;  %v497_v50 = vadd.f32 %v1465_v48, %v1698_v40  ;;  %v625_v51 = vadd.f32 %v1497_v49, %v1698_v40  ;;  %v488_v52 = vpop.f32.mrb[29].mxu0  ;;  %v616_v53 = vpop.f32.mrb[29].mxu1 }
 0x12f   :  { %1359 = vst [vmem:[%s1863_s3 + $0x60] sm:$0xff] %v1251_v46   ;;  %1375 = vst [vmem:[%s1863_s3 + $0xe0] sm:$0xff] %v1331_v47   ;;  %v489_v54 = vadd.f32 %v1698_v40, %v488_v52  ;;  %v617_v55 = vadd.f32 %v1698_v40, %v616_v53  ;;  %v1466_v56 = vpop.f32.mrb[30].mxu0  ;;  %v1498_v57 = vpop.f32.mrb[30].mxu1 }
 0x130   :  { %v500_v58 = vadd.f32 %v1466_v56, %v1698_v40  ;;  %v628_v59 = vadd.f32 %v1498_v57, %v1698_v40  ;;  %v491_v60 = vpop.f32.mrb[31].mxu0  ;;  %v619_v61 = vpop.f32.mrb[31].mxu1  ;;  %v661_v0 = vmax.f32 %v497_v50, 0.0  ;;  %v693_v1 = vmax.f32 %v625_v51, 0.0 }
 0x131   :  { %v492_v62 = vadd.f32 %v1698_v40, %v491_v60  ;;  %v620_v63 = vadd.f32 %v1698_v40, %v619_v61  ;;  %v659_v4 = vmax.f32 %v489_v54, 0.0  ;;  %v691_v5 = vmax.f32 %v617_v55, 0.0 }
 0x132   :  { %v662_v2 = vmax.f32 %v500_v58, 0.0  ;;  %v694_v3 = vmax.f32 %v628_v59, 0.0 }
 0x133   :  { %v660_v6 = vmax.f32 %v492_v62, 0.0  ;;  %v692_v7 = vmax.f32 %v620_v63, 0.0 }
 0x134   :  { %v1266_v8 = vpack.c.bf16 %v662_v2, %v661_v0  ;;  %v1346_v9 = vpack.c.bf16 %v694_v3, %v693_v1 }
 0x135   :  { %v1261_v10 = vpack.c.bf16 %v660_v6, %v659_v4  ;;  %v1341_v11 = vpack.c.bf16 %v692_v7, %v691_v5 }
 0x136   :  { %1362 = vst [vmem:[%s1863_s3 + $0x78] sm:$0xff] %v1266_v8   ;;  %1378 = vst [vmem:[%s1863_s3 + $0xf8] sm:$0xff] %v1346_v9  }
 0x137   :  { %1361 = vst [vmem:[%s1863_s3 + $0x70] sm:$0xff] %v1261_v10   ;;  %1377 = vst [vmem:[%s1863_s3 + $0xf0] sm:$0xff] %v1341_v11  }

// kernel: channel_distill_forward.17
= control target key start
LH: loop header
LB: loop body
LE: loop exit
PB: predicated region body
PF: predicated region fallthrough
CT: control target
= control target key end

     0   :  { %v301_v1 = vmov 0   ;;  %v37_v19 = vlaneseq  ;;  %s391_s1 = inlined_call_operand.vmem [shape: bf16[128,256], index: 1, kind: input, shape index: {}]   ;;  %s392_s0 = inlined_call_operand.vmem [shape: bf16[32,128], index: 0, kind: input, shape index: {}]   ;;  %s393_s2 = inlined_call_operand.vmem [shape: f32[1,256], index: 2, kind: input, shape index: {}]   ;;  %s394_s3 = inlined_call_operand.vmem [shape: bf16[32,256], index: 3, kind: output, shape index: {}]  }
   0x1   :  { %v275_v0 = vld [vmem:[%s391_s1 + $0x4] ss:$8 sps:$4 sm:$0xff]   ;;  %171 = vmatprep.mubr.bf16.mxu0 %v301_v1  ;;  %181 = vmatprep.mubr.bf16.mxu1 %v301_v1  ;;  %v277_v2 = vld [vmem:[%s391_s1] ss:$8 sps:$4 sm:$0xff]   ;;  %v278_v3 = vld [vmem:[%s391_s1 + $0x14] ss:$8 sps:$4 sm:$0xff]  }
   0x2   :  { %139 = vmatprep.subr.bf16.mxu0 %v275_v0  ;;  %258 = vmatprep.subr.bf16.mxu1 %v275_v0  ;;  %v280_v4 = vld [vmem:[%s391_s1 + $0x10] ss:$8 sps:$4 sm:$0xff]   ;;  %v281_v5 = vld [vmem:[%s391_s1 + $0x24] ss:$8 sps:$4 sm:$0xff]   ;;  %v283_v6 = vld [vmem:[%s391_s1 + $0x20] ss:$8 sps:$4 sm:$0xff]  }
   0x3   :  { %140 = vmatpush1.bf16.msra.mxu0 %v277_v2  ;;  %266 = vmatpush1.bf16.msra.mxu1 %v277_v2  ;;  %v284_v7 = vld [vmem:[%s391_s1 + $0x34] ss:$8 sps:$4 sm:$0xff]   ;;  %v286_v8 = vld [vmem:[%s391_s1 + $0x30] ss:$8 sps:$4 sm:$0xff]   ;;  %v287_v9 = vld [vmem:[%s391_s1 + $0x44] ss:$8 sps:$4 sm:$0xff]  }
   0x4   :  { %141 = vmatprep.subr.bf16.mxu0 %v278_v3  ;;  %259 = vmatprep.subr.bf16.mxu1 %v278_v3  ;;  %v289_v10 = vld [vmem:[%s391_s1 + $0x40] ss:$8 sps:$4 sm:$0xff]   ;;  %v290_v11 = vld [vmem:[%s391_s1 + $0x54] ss:$8 sps:$4 sm:$0xff]   ;;  %v292_v12 = vld [vmem:[%s391_s1 + $0x50] ss:$8 sps:$4 sm:$0xff]  }
   0x5   :  { %v293_v13 = vld [vmem:[%s391_s1 + $0x64] ss:$8 sps:$4 sm:$0xff]   ;;  %v295_v14 = vld [vmem:[%s391_s1 + $0x60] ss:$8 sps:$4 sm:$0xff]   ;;  %v296_v15 = vld [vmem:[%s391_s1 + $0x74] ss:$8 sps:$4 sm:$0xff]  }
   0x6   :  { %v298_v16 = vld [vmem:[%s391_s1 + $0x70] ss:$8 sps:$4 sm:$0xff]   ;;  %v299_v17 = vld [vmem:[%s392_s0] sm:$0xff]   ;;  %v300_v18 = vld [vmem:[%s392_s0 + $0x8] sm:$0xff]   ;;  %v38_v20 = vshrl.u32 %v37_v19, 7 }
   0x7   :  { %142 = vmatpush1.bf16.msra.mxu0 %v280_v4  ;;  %267 = vmatpush1.bf16.msra.mxu1 %v280_v4  ;;  %v35_v22 = vld [vmem:[%s393_s2] sm:$0x3] }
   0x8   :  { %143 = vmatprep.subr.bf16.mxu0 %v281_v5  ;;  %260 = vmatprep.subr.bf16.mxu1 %v281_v5  ;;  %v39_v21 = vsub.s32 0, %v38_v20  ;;  %v43_v23 = vsub.s32 1, %v38_v20 }
   0xa   :  { %v40_v24 = vrot.slane %v35_v22, %v39_v21  ;;  %v44_v25 = vrot.slane %v35_v22, %v43_v23 }
   0xb   :  { %144 = vmatpush1.bf16.msra.mxu0 %v283_v6  ;;  %268 = vmatpush1.bf16.msra.mxu1 %v283_v6 }
   0xc   :  { %145 = vmatprep.subr.bf16.mxu0 %v284_v7  ;;  %261 = vmatprep.subr.bf16.mxu1 %v284_v7 }
   0xf   :  { %146 = vmatpush1.bf16.msra.mxu0 %v286_v8  ;;  %269 = vmatpush1.bf16.msra.mxu1 %v286_v8 }
  0x10   :  { %147 = vmatprep.subr.bf16.mxu0 %v287_v9  ;;  %262 = vmatprep.subr.bf16.mxu1 %v287_v9 }
  0x13   :  { %148 = vmatpush1.bf16.msra.mxu0 %v289_v10  ;;  %270 = vmatpush1.bf16.msra.mxu1 %v289_v10 }
  0x14   :  { %149 = vmatprep.subr.bf16.mxu0 %v290_v11  ;;  %263 = vmatprep.subr.bf16.mxu1 %v290_v11 }
  0x17   :  { %150 = vmatpush1.bf16.msra.mxu0 %v292_v12  ;;  %271 = vmatpush1.bf16.msra.mxu1 %v292_v12 }
  0x18   :  { %151 = vmatprep.subr.bf16.mxu0 %v293_v13  ;;  %264 = vmatprep.subr.bf16.mxu1 %v293_v13 }
  0x1b   :  { %152 = vmatpush1.bf16.msra.mxu0 %v295_v14  ;;  %272 = vmatpush1.bf16.msra.mxu1 %v295_v14 }
  0x1c   :  { %153 = vmatprep.subr.bf16.mxu0 %v296_v15  ;;  %265 = vmatprep.subr.bf16.mxu1 %v296_v15 }
  0x1f   :  { %154 = vmatpush1.bf16.msra.mxu0 %v298_v16  ;;  %273 = vmatpush1.bf16.msra.mxu1 %v298_v16 }
  0x22   :  { %172 = vmatmul.mubr.bf16.vlgmr.msra.gmra.mrb[0].mxu0 %v299_v17  ;;  %182 = vmatmul.mubr.bf16.vlgmr.msra.gmra.mrb[0].mxu1 %v300_v18 }
  0xf5   :  { %v173_v26 = vpop.f32.mrb[0].mxu0  ;;  %v183_v27 = vpop.f32.mrb[0].mxu1 }
  0xf6   :  { %v174_v28 = vadd.f32 %v173_v26, %v40_v24  ;;  %v184_v29 = vadd.f32 %v183_v27, %v40_v24  ;;  %v175_v30 = vpop.f32.mrb[1].mxu0  ;;  %v185_v31 = vpop.f32.mrb[1].mxu1 }
  0xf7   :  { %v176_v32 = vadd.f32 %v175_v30, %v44_v25  ;;  %v186_v33 = vadd.f32 %v185_v31, %v44_v25  ;;  %v177_v34 = vpop.f32.mrb[2].mxu0  ;;  %v187_v35 = vpop.f32.mrb[2].mxu1 }
  0xf8   :  { %v192_v36 = vmax.f32 %v174_v28, 0.0  ;;  %v196_v37 = vmax.f32 %v184_v29, 0.0  ;;  %v178_v38 = vadd.f32 %v177_v34, %v40_v24  ;;  %v188_v39 = vadd.f32 %v187_v35, %v40_v24  ;;  %v179_v40 = vpop.f32.mrb[3].mxu0  ;;  %v189_v41 = vpop.f32.mrb[3].mxu1 }
  0xf9   :  { %v193_v42 = vmax.f32 %v176_v32, 0.0  ;;  %v197_v43 = vmax.f32 %v186_v33, 0.0  ;;  %v180_v44 = vadd.f32 %v179_v40, %v44_v25  ;;  %v190_v45 = vadd.f32 %v189_v41, %v44_v25 }
  0xfa   :  { %v194_v46 = vmax.f32 %v178_v38, 0.0  ;;  %v198_v47 = vmax.f32 %v188_v39, 0.0 }
  0xfb   :  { %v254_v48 = vpack.c.bf16 %v193_v42, %v192_v36  ;;  %v256_v49 = vpack.c.bf16 %v197_v43, %v196_v37  ;;  %v195_v50 = vmax.f32 %v180_v44, 0.0  ;;  %v199_v51 = vmax.f32 %v190_v45, 0.0 }
  0xfd   :  { %224 = vst [vmem:[%s394_s3] sm:$0xff] %v254_v48  ;;  %226 = vst [vmem:[%s394_s3 + $0x10] sm:$0xff] %v256_v49  ;;  %v255_v52 = vpack.c.bf16 %v195_v50, %v194_v46  ;;  %v257_v53 = vpack.c.bf16 %v199_v51, %v198_v47 }
  0xff   :  { %225 = vst [vmem:[%s394_s3 + $0x8] sm:$0xff] %v255_v52  ;;  %227 = vst [vmem:[%s394_s3 + $0x18] sm:$0xff] %v257_v53 }

// kernel: channel_distill_forward.18
= control target key start
LH: loop header
LB: loop body
LE: loop exit
PB: predicated region body
PF: predicated region fallthrough
CT: control target
= control target key end

     0   :  { %s928_s1 = inlined_call_operand.vmem [shape: bf16[256,512], index: 1, kind: input, shape index: {}]   ;;  %s929_s0 = inlined_call_operand.vmem [shape: bf16[8,256], index: 0, kind: input, shape index: {}]   ;;  %s930_s2 = inlined_call_operand.vmem [shape: f32[1,512], index: 2, kind: input, shape index: {}]   ;;  %s931_s3 = inlined_call_operand.vmem [shape: bf16[8,512], index: 3, kind: output, shape index: {}]  }
   0x1   :  { %v606_v0 = vld [vmem:[%s928_s1 + $0x4] ss:$16 sps:$4 sm:$0xff]   ;;  %v608_v1 = vld [vmem:[%s928_s1 + $0xc] ss:$16 sps:$4 sm:$0xff]   ;;  %v610_v2 = vld [vmem:[%s928_s1] ss:$16 sps:$4 sm:$0xff]  }
   0x2   :  { %428 = vmatprep.subr.bf16.mxu0 %v606_v0  ;;  %v611_v3 = vld [vmem:[%s928_s1 + $0x8] ss:$16 sps:$4 sm:$0xff]   ;;  %469 = vmatprep.subr.bf16.mxu1 %v608_v1  ;;  %v612_v4 = vld [vmem:[%s928_s1 + $0x24] ss:$16 sps:$4 sm:$0xff]   ;;  %v614_v5 = vld [vmem:[%s928_s1 + $0x2c] ss:$16 sps:$4 sm:$0xff]  }
   0x3   :  { %429 = vmatpush1.bf16.msra.mxu0 %v610_v2  ;;  %470 = vmatpush1.bf16.msra.mxu1 %v611_v3  ;;  %v616_v6 = vld [vmem:[%s928_s1 + $0x20] ss:$16 sps:$4 sm:$0xff]   ;;  %v617_v7 = vld [vmem:[%s928_s1 + $0x28] ss:$16 sps:$4 sm:$0xff]   ;;  %v618_v8 = vld [vmem:[%s928_s1 + $0x44] ss:$16 sps:$4 sm:$0xff]   ;;  %v81_v3 = vlaneseq }
   0x4   :  { %430 = vmatprep.subr.bf16.mxu0 %v612_v4  ;;  %471 = vmatprep.subr.bf16.mxu1 %v614_v5  ;;  %v620_v9 = vld [vmem:[%s928_s1 + $0x4c] ss:$16 sps:$4 sm:$0xff]   ;;  %v622_v10 = vld [vmem:[%s928_s1 + $0x40] ss:$16 sps:$4 sm:$0xff]   ;;  %v623_v11 = vld [vmem:[%s928_s1 + $0x48] ss:$16 sps:$4 sm:$0xff]  }
   0x5   :  { %v624_v12 = vld [vmem:[%s928_s1 + $0x64] ss:$16 sps:$4 sm:$0xff]   ;;  %v626_v13 = vld [vmem:[%s928_s1 + $0x6c] ss:$16 sps:$4 sm:$0xff]   ;;  %v628_v14 = vld [vmem:[%s928_s1 + $0x60] ss:$16 sps:$4 sm:$0xff]  }
   0x6   :  { %v629_v15 = vld [vmem:[%s928_s1 + $0x68] ss:$16 sps:$4 sm:$0xff]   ;;  %v630_v16 = vld [vmem:[%s928_s1 + $0x84] ss:$16 sps:$4 sm:$0xff]   ;;  %v632_v17 = vld [vmem:[%s928_s1 + $0x8c] ss:$16 sps:$4 sm:$0xff]  }
   0x7   :  { %431 = vmatpush1.bf16.msra.mxu0 %v616_v6  ;;  %472 = vmatpush1.bf16.msra.mxu1 %v617_v7  ;;  %v634_v18 = vld [vmem:[%s928_s1 + $0x80] ss:$16 sps:$4 sm:$0xff]   ;;  %v635_v19 = vld [vmem:[%s928_s1 + $0x88] ss:$16 sps:$4 sm:$0xff]   ;;  %v636_v20 = vld [vmem:[%s928_s1 + $0xa4] ss:$16 sps:$4 sm:$0xff]  }
   0x8   :  { %432 = vmatprep.subr.bf16.mxu0 %v618_v8  ;;  %473 = vmatprep.subr.bf16.mxu1 %v620_v9  ;;  %v638_v21 = vld [vmem:[%s928_s1 + $0xac] ss:$16 sps:$4 sm:$0xff]   ;;  %v640_v22 = vld [vmem:[%s928_s1 + $0xa0] ss:$16 sps:$4 sm:$0xff]   ;;  %v641_v23 = vld [vmem:[%s928_s1 + $0xa8] ss:$16 sps:$4 sm:$0xff]  }
   0x9   :  { %v642_v24 = vld [vmem:[%s928_s1 + $0xc4] ss:$16 sps:$4 sm:$0xff]   ;;  %v644_v25 = vld [vmem:[%s928_s1 + $0xcc] ss:$16 sps:$4 sm:$0xff]   ;;  %v646_v26 = vld [vmem:[%s928_s1 + $0xc0] ss:$16 sps:$4 sm:$0xff]  }
   0xa   :  { %v647_v27 = vld [vmem:[%s928_s1 + $0xc8] ss:$16 sps:$4 sm:$0xff]   ;;  %v648_v28 = vld [vmem:[%s928_s1 + $0xe4] ss:$16 sps:$4 sm:$0xff]   ;;  %v650_v29 = vld [vmem:[%s928_s1 + $0xec] ss:$16 sps:$4 sm:$0xff]  }
   0xb   :  { %433 = vmatpush1.bf16.msra.mxu0 %v622_v10  ;;  %474 = vmatpush1.bf16.msra.mxu1 %v623_v11  ;;  %v652_v30 = vld [vmem:[%s928_s1 + $0xe0] ss:$16 sps:$4 sm:$0xff]   ;;  %v653_v31 = vld [vmem:[%s928_s1 + $0xe8] ss:$16 sps:$4 sm:$0xff]   ;;  %v654_v32 = vld [vmem:[%s928_s1 + $0x104] ss:$16 sps:$4 sm:$0xff]  }
   0xc   :  { %434 = vmatprep.subr.bf16.mxu0 %v624_v12  ;;  %475 = vmatprep.subr.bf16.mxu1 %v626_v13  ;;  %v656_v33 = vld [vmem:[%s928_s1 + $0x10c] ss:$16 sps:$4 sm:$0xff]   ;;  %v658_v34 = vld [vmem:[%s928_s1 + $0x100] ss:$16 sps:$4 sm:$0xff]   ;;  %v659_v35 = vld [vmem:[%s928_s1 + $0x108] ss:$16 sps:$4 sm:$0xff]  }
   0xd   :  { %v660_v36 = vld [vmem:[%s928_s1 + $0x124] ss:$16 sps:$4 sm:$0xff]   ;;  %v662_v37 = vld [vmem:[%s928_s1 + $0x12c] ss:$16 sps:$4 sm:$0xff]   ;;  %v664_v38 = vld [vmem:[%s928_s1 + $0x120] ss:$16 sps:$4 sm:$0xff]  }
   0xe   :  { %v665_v39 = vld [vmem:[%s928_s1 + $0x128] ss:$16 sps:$4 sm:$0xff]   ;;  %v666_v40 = vld [vmem:[%s928_s1 + $0x144] ss:$16 sps:$4 sm:$0xff]   ;;  %v668_v41 = vld [vmem:[%s928_s1 + $0x14c] ss:$16 sps:$4 sm:$0xff]  }
   0xf   :  { %435 = vmatpush1.bf16.msra.mxu0 %v628_v14  ;;  %476 = vmatpush1.bf16.msra.mxu1 %v629_v15  ;;  %v670_v42 = vld [vmem:[%s928_s1 + $0x140] ss:$16 sps:$4 sm:$0xff]   ;;  %v671_v43 = vld [vmem:[%s928_s1 + $0x148] ss:$16 sps:$4 sm:$0xff]   ;;  %v672_v44 = vld [vmem:[%s928_s1 + $0x164] ss:$16 sps:$4 sm:$0xff]  }
  0x10   :  { %436 = vmatprep.subr.bf16.mxu0 %v630_v16  ;;  %477 = vmatprep.subr.bf16.mxu1 %v632_v17  ;;  %v674_v45 = vld [vmem:[%s928_s1 + $0x16c] ss:$16 sps:$4 sm:$0xff]   ;;  %v14_v46 = vld [vmem:[%s929_s0] sm:$0xff]  ;;  %v677_v49 = vld [vmem:[%s928_s1 + $0x168] ss:$16 sps:$4 sm:$0xff]   ;;  %v82_v4 = vshrl.u32 %v81_v3, 7 }
  0x11   :  { %v537_v47 = vcombine.high %v14_v46, %v14_v46  ;;  %v676_v48 = vld [vmem:[%s928_s1 + $0x160] ss:$16 sps:$4 sm:$0xff]   ;;  %v678_v50 = vld [vmem:[%s928_s1 + $0x184] ss:$16 sps:$4 sm:$0xff]   ;;  %v680_v51 = vld [vmem:[%s928_s1 + $0x18c] ss:$16 sps:$4 sm:$0xff]   ;;  %v536_v2 = vcombine.low %v14_v46, %v14_v46 }
  0x12   :  { %v682_v52 = vld [vmem:[%s928_s1 + $0x180] ss:$16 sps:$4 sm:$0xff]   ;;  %v683_v53 = vld [vmem:[%s928_s1 + $0x188] ss:$16 sps:$4 sm:$0xff]   ;;  %v684_v54 = vld [vmem:[%s928_s1 + $0x1a4] ss:$16 sps:$4 sm:$0xff]  }
  0x13   :  { %437 = vmatpush1.bf16.msra.mxu0 %v634_v18  ;;  %478 = vmatpush1.bf16.msra.mxu1 %v635_v19  ;;  %v686_v55 = vld [vmem:[%s928_s1 + $0x1ac] ss:$16 sps:$4 sm:$0xff]   ;;  %v688_v56 = vld [vmem:[%s928_s1 + $0x1a0] ss:$16 sps:$4 sm:$0xff]   ;;  %v689_v57 = vld [vmem:[%s928_s1 + $0x1a8] ss:$16 sps:$4 sm:$0xff]  }
  0x14   :  { %438 = vmatprep.subr.bf16.mxu0 %v636_v20  ;;  %479 = vmatprep.subr.bf16.mxu1 %v638_v21  ;;  %v690_v58 = vld [vmem:[%s928_s1 + $0x1c4] ss:$16 sps:$4 sm:$0xff]   ;;  %v692_v59 = vld [vmem:[%s928_s1 + $0x1cc] ss:$16 sps:$4 sm:$0xff]   ;;  %v694_v60 = vld [vmem:[%s928_s1 + $0x1c0] ss:$16 sps:$4 sm:$0xff]  }
  0x15   :  { %460 = vmatprep.mubr.bf16.mxu0 %v537_v47  ;;  %501 = vmatprep.mubr.bf16.mxu1 %v537_v47  ;;  %v695_v61 = vld [vmem:[%s928_s1 + $0x1c8] ss:$16 sps:$4 sm:$0xff]   ;;  %v696_v62 = vld [vmem:[%s928_s1 + $0x1e4] ss:$16 sps:$4 sm:$0xff]   ;;  %v698_v63 = vld [vmem:[%s928_s1 + $0x1ec] ss:$16 sps:$4 sm:$0xff]  }
  0x16   :  { %v700_v0 = vld [vmem:[%s928_s1 + $0x1e0] ss:$16 sps:$4 sm:$0xff]   ;;  %v701_v1 = vld [vmem:[%s928_s1 + $0x1e8] ss:$16 sps:$4 sm:$0xff]   ;;  %v83_v5 = vsub.s32 0, %v82_v4  ;;  %v91_v6 = vsub.s32 2, %v82_v4 }
  0x17   :  { %439 = vmatpush1.bf16.msra.mxu0 %v640_v22  ;;  %480 = vmatpush1.bf16.msra.mxu1 %v641_v23  ;;  %v79_v7 = vld [vmem:[%s930_s2] sm:$0xf]  ;;  %v87_v8 = vsub.s32 1, %v82_v4  ;;  %v95_v9 = vsub.s32 3, %v82_v4 }
  0x18   :  { %440 = vmatprep.subr.bf16.mxu0 %v642_v24  ;;  %481 = vmatprep.subr.bf16.mxu1 %v644_v25  ;;  %v84_v10 = vrot.slane %v79_v7, %v83_v5  ;;  %v92_v11 = vrot.slane %v79_v7, %v91_v6 }
  0x19   :  { %v88_v12 = vrot.slane %v79_v7, %v87_v8  ;;  %v96_v13 = vrot.slane %v79_v7, %v95_v9 }
  0x1b   :  { %441 = vmatpush1.bf16.msra.mxu0 %v646_v26  ;;  %482 = vmatpush1.bf16.msra.mxu1 %v647_v27 }
  0x1c   :  { %442 = vmatprep.subr.bf16.mxu0 %v648_v28  ;;  %483 = vmatprep.subr.bf16.mxu1 %v650_v29 }
  0x1f   :  { %443 = vmatpush1.bf16.msra.mxu0 %v652_v30  ;;  %484 = vmatpush1.bf16.msra.mxu1 %v653_v31 }
  0x20   :  { %444 = vmatprep.subr.bf16.mxu0 %v654_v32  ;;  %485 = vmatprep.subr.bf16.mxu1 %v656_v33 }
  0x23   :  { %445 = vmatpush1.bf16.msra.mxu0 %v658_v34  ;;  %486 = vmatpush1.bf16.msra.mxu1 %v659_v35 }
  0x24   :  { %446 = vmatprep.subr.bf16.mxu0 %v660_v36  ;;  %487 = vmatprep.subr.bf16.mxu1 %v662_v37 }
  0x27   :  { %447 = vmatpush1.bf16.msra.mxu0 %v664_v38  ;;  %488 = vmatpush1.bf16.msra.mxu1 %v665_v39 }
  0x28   :  { %448 = vmatprep.subr.bf16.mxu0 %v666_v40  ;;  %489 = vmatprep.subr.bf16.mxu1 %v668_v41 }
  0x2b   :  { %449 = vmatpush1.bf16.msra.mxu0 %v670_v42  ;;  %490 = vmatpush1.bf16.msra.mxu1 %v671_v43 }
  0x2c   :  { %450 = vmatprep.subr.bf16.mxu0 %v672_v44  ;;  %491 = vmatprep.subr.bf16.mxu1 %v674_v45 }
  0x2f   :  { %451 = vmatpush1.bf16.msra.mxu0 %v676_v48  ;;  %492 = vmatpush1.bf16.msra.mxu1 %v677_v49 }
  0x30   :  { %452 = vmatprep.subr.bf16.mxu0 %v678_v50  ;;  %493 = vmatprep.subr.bf16.mxu1 %v680_v51 }
  0x33   :  { %453 = vmatpush1.bf16.msra.mxu0 %v682_v52  ;;  %494 = vmatpush1.bf16.msra.mxu1 %v683_v53 }
  0x34   :  { %454 = vmatprep.subr.bf16.mxu0 %v684_v54  ;;  %495 = vmatprep.subr.bf16.mxu1 %v686_v55 }
  0x37   :  { %455 = vmatpush1.bf16.msra.mxu0 %v688_v56  ;;  %496 = vmatpush1.bf16.msra.mxu1 %v689_v57 }
  0x38   :  { %456 = vmatprep.subr.bf16.mxu0 %v690_v58  ;;  %497 = vmatprep.subr.bf16.mxu1 %v692_v59 }
  0x3b   :  { %457 = vmatpush1.bf16.msra.mxu0 %v694_v60  ;;  %498 = vmatpush1.bf16.msra.mxu1 %v695_v61 }
  0x3c   :  { %458 = vmatprep.subr.bf16.mxu0 %v696_v62  ;;  %499 = vmatprep.subr.bf16.mxu1 %v698_v63 }
  0x3f   :  { %459 = vmatpush1.bf16.msra.mxu0 %v700_v0  ;;  %500 = vmatpush1.bf16.msra.mxu1 %v701_v1 }
  0x42   :  { %461 = vmatmul.mubr.bf16.vlgmr.msra.gmra.mrb[0].mxu0 %v536_v2  ;;  %502 = vmatmul.mubr.bf16.vlgmr.msra.gmra.mrb[0].mxu1 %v536_v2 }
 0x115   :  { %v462_v14 = vpop.f32.mrb[0].mxu0  ;;  %v503_v15 = vpop.f32.mrb[0].mxu1 }
 0x116   :  { %v463_v16 = vadd.f32 %v462_v14, %v84_v10  ;;  %v504_v17 = vadd.f32 %v503_v15, %v92_v11  ;;  %v464_v18 = vpop.f32.mrb[1].mxu0  ;;  %v505_v19 = vpop.f32.mrb[1].mxu1 }
 0x117   :  { %v465_v20 = vadd.f32 %v464_v18, %v88_v12  ;;  %v506_v21 = vadd.f32 %v505_v19, %v96_v13  ;;  %v466_v22 = vpop.f32.mrb[2].mxu0  ;;  %v507_v23 = vpop.f32.mrb[2].mxu1 }
 0x118   :  { %v510_v24 = vmax.f32 %v463_v16, 0.0  ;;  %v512_v25 = vmax.f32 %v504_v17, 0.0  ;;  %v467_v26 = vpop.f32.mrb[3].mxu0  ;;  %v508_v27 = vpop.f32.mrb[3].mxu1 }
 0x119   :  { %v511_v28 = vmax.f32 %v465_v20, 0.0  ;;  %v513_v29 = vmax.f32 %v506_v21, 0.0 }
 0x11b   :  { %v604_v30 = vpack.c.bf16 %v511_v28, %v510_v24  ;;  %v605_v31 = vpack.c.bf16 %v513_v29, %v512_v25 }
 0x11d   :  { %530 = vst [vmem:[%s931_s3] sm:$0xff] %v604_v30  ;;  %531 = vst [vmem:[%s931_s3 + $0x8] sm:$0xff] %v605_v31 }

// kernel: channel_distill_forward.19
= control target key start
LH: loop header
LB: loop body
LE: loop exit
PB: predicated region body
PF: predicated region fallthrough
CT: control target
= control target key end

     0   :  { %s1779_s1 = inlined_call_operand.vmem [shape: bf16[512,512], index: 1, kind: input, shape index: {}]   ;;  %s1780_s0 = inlined_call_operand.vmem [shape: bf16[8,512], index: 0, kind: input, shape index: {}]   ;;  %s1781_s2 = inlined_call_operand.vmem [shape: f32[1,512], index: 2, kind: input, shape index: {}]   ;;  %s1782_s3 = inlined_call_operand.vmem [shape: bf16[8,512], index: 3, kind: output, shape index: {}]  }
   0x1   :  { %v1158_v0 = vld [vmem:[%s1779_s1 + $0x4] ss:$16 sps:$4 sm:$0xff]   ;;  %v1160_v1 = vld [vmem:[%s1779_s1 + $0xc] ss:$16 sps:$4 sm:$0xff]   ;;  %v1162_v2 = vld [vmem:[%s1779_s1] ss:$16 sps:$4 sm:$0xff]  }
   0x2   :  { %820 = vmatprep.subr.bf16.mxu0 %v1158_v0  ;;  %v1163_v3 = vld [vmem:[%s1779_s1 + $0x8] ss:$16 sps:$4 sm:$0xff]   ;;  %902 = vmatprep.subr.bf16.mxu1 %v1160_v1  ;;  %v1164_v4 = vld [vmem:[%s1779_s1 + $0x24] ss:$16 sps:$4 sm:$0xff]   ;;  %v1166_v5 = vld [vmem:[%s1779_s1 + $0x2c] ss:$16 sps:$4 sm:$0xff]  }
   0x3   :  { %821 = vmatpush1.bf16.msra.mxu0 %v1162_v2  ;;  %903 = vmatpush1.bf16.msra.mxu1 %v1163_v3  ;;  %v1168_v6 = vld [vmem:[%s1779_s1 + $0x20] ss:$16 sps:$4 sm:$0xff]   ;;  %v1169_v7 = vld [vmem:[%s1779_s1 + $0x28] ss:$16 sps:$4 sm:$0xff]   ;;  %v1170_v8 = vld [vmem:[%s1779_s1 + $0x44] ss:$16 sps:$4 sm:$0xff]  }
   0x4   :  { %822 = vmatprep.subr.bf16.mxu0 %v1164_v4  ;;  %904 = vmatprep.subr.bf16.mxu1 %v1166_v5  ;;  %v1172_v9 = vld [vmem:[%s1779_s1 + $0x4c] ss:$16 sps:$4 sm:$0xff]   ;;  %v1174_v10 = vld [vmem:[%s1779_s1 + $0x40] ss:$16 sps:$4 sm:$0xff]   ;;  %v1175_v11 = vld [vmem:[%s1779_s1 + $0x48] ss:$16 sps:$4 sm:$0xff]  }
   0x5   :  { %v1176_v12 = vld [vmem:[%s1779_s1 + $0x64] ss:$16 sps:$4 sm:$0xff]   ;;  %v1178_v13 = vld [vmem:[%s1779_s1 + $0x6c] ss:$16 sps:$4 sm:$0xff]   ;;  %v1180_v14 = vld [vmem:[%s1779_s1 + $0x60] ss:$16 sps:$4 sm:$0xff]  }
   0x6   :  { %v1181_v15 = vld [vmem:[%s1779_s1 + $0x68] ss:$16 sps:$4 sm:$0xff]   ;;  %v1182_v16 = vld [vmem:[%s1779_s1 + $0x84] ss:$16 sps:$4 sm:$0xff]   ;;  %v1184_v17 = vld [vmem:[%s1779_s1 + $0x8c] ss:$16 sps:$4 sm:$0xff]  }
   0x7   :  { %823 = vmatpush1.bf16.msra.mxu0 %v1168_v6  ;;  %905 = vmatpush1.bf16.msra.mxu1 %v1169_v7  ;;  %v1186_v18 = vld [vmem:[%s1779_s1 + $0x80] ss:$16 sps:$4 sm:$0xff]   ;;  %v1187_v19 = vld [vmem:[%s1779_s1 + $0x88] ss:$16 sps:$4 sm:$0xff]   ;;  %v1188_v20 = vld [vmem:[%s1779_s1 + $0xa4] ss:$16 sps:$4 sm:$0xff]  }
   0x8   :  { %824 = vmatprep.subr.bf16.mxu0 %v1170_v8  ;;  %906 = vmatprep.subr.bf16.mxu1 %v1172_v9  ;;  %v1190_v21 = vld [vmem:[%s1779_s1 + $0xac] ss:$16 sps:$4 sm:$0xff]   ;;  %v1192_v22 = vld [vmem:[%s1779_s1 + $0xa0] ss:$16 sps:$4 sm:$0xff]   ;;  %v1193_v23 = vld [vmem:[%s1779_s1 + $0xa8] ss:$16 sps:$4 sm:$0xff]  }
   0x9   :  { %v1194_v24 = vld [vmem:[%s1779_s1 + $0xc4] ss:$16 sps:$4 sm:$0xff]   ;;  %v1196_v25 = vld [vmem:[%s1779_s1 + $0xcc] ss:$16 sps:$4 sm:$0xff]   ;;  %v1198_v26 = vld [vmem:[%s1779_s1 + $0xc0] ss:$16 sps:$4 sm:$0xff]  }
   0xa   :  { %v1199_v27 = vld [vmem:[%s1779_s1 + $0xc8] ss:$16 sps:$4 sm:$0xff]   ;;  %v1200_v28 = vld [vmem:[%s1779_s1 + $0xe4] ss:$16 sps:$4 sm:$0xff]   ;;  %v1202_v29 = vld [vmem:[%s1779_s1 + $0xec] ss:$16 sps:$4 sm:$0xff]  }
   0xb   :  { %825 = vmatpush1.bf16.msra.mxu0 %v1174_v10  ;;  %907 = vmatpush1.bf16.msra.mxu1 %v1175_v11  ;;  %v1204_v30 = vld [vmem:[%s1779_s1 + $0xe0] ss:$16 sps:$4 sm:$0xff]   ;;  %v1205_v31 = vld [vmem:[%s1779_s1 + $0xe8] ss:$16 sps:$4 sm:$0xff]   ;;  %v1206_v32 = vld [vmem:[%s1779_s1 + $0x104] ss:$16 sps:$4 sm:$0xff]  }
   0xc   :  { %826 = vmatprep.subr.bf16.mxu0 %v1176_v12  ;;  %908 = vmatprep.subr.bf16.mxu1 %v1178_v13  ;;  %v1208_v33 = vld [vmem:[%s1779_s1 + $0x10c] ss:$16 sps:$4 sm:$0xff]   ;;  %v1210_v34 = vld [vmem:[%s1779_s1 + $0x100] ss:$16 sps:$4 sm:$0xff]   ;;  %v1211_v35 = vld [vmem:[%s1779_s1 + $0x108] ss:$16 sps:$4 sm:$0xff]  }
   0xd   :  { %v1212_v36 = vld [vmem:[%s1779_s1 + $0x124] ss:$16 sps:$4 sm:$0xff]   ;;  %v1214_v37 = vld [vmem:[%s1779_s1 + $0x12c] ss:$16 sps:$4 sm:$0xff]   ;;  %v1216_v38 = vld [vmem:[%s1779_s1 + $0x120] ss:$16 sps:$4 sm:$0xff]  }
   0xe   :  { %v1217_v39 = vld [vmem:[%s1779_s1 + $0x128] ss:$16 sps:$4 sm:$0xff]   ;;  %v1218_v40 = vld [vmem:[%s1779_s1 + $0x144] ss:$16 sps:$4 sm:$0xff]   ;;  %v1220_v41 = vld [vmem:[%s1779_s1 + $0x14c] ss:$16 sps:$4 sm:$0xff]  }
   0xf   :  { %827 = vmatpush1.bf16.msra.mxu0 %v1180_v14  ;;  %909 = vmatpush1.bf16.msra.mxu1 %v1181_v15  ;;  %v1222_v42 = vld [vmem:[%s1779_s1 + $0x140] ss:$16 sps:$4 sm:$0xff]   ;;  %v1223_v43 = vld [vmem:[%s1779_s1 + $0x148] ss:$16 sps:$4 sm:$0xff]   ;;  %v1224_v44 = vld [vmem:[%s1779_s1 + $0x164] ss:$16 sps:$4 sm:$0xff]  }
  0x10   :  { %828 = vmatprep.subr.bf16.mxu0 %v1182_v16  ;;  %910 = vmatprep.subr.bf16.mxu1 %v1184_v17  ;;  %v1226_v45 = vld [vmem:[%s1779_s1 + $0x16c] ss:$16 sps:$4 sm:$0xff]   ;;  %v14_v46 = vld [vmem:[%s1780_s0] sm:$0xff]  ;;  %v1229_v49 = vld [vmem:[%s1779_s1 + $0x168] ss:$16 sps:$4 sm:$0xff]  }
  0x11   :  { %v1011_v47 = vcombine.high %v14_v46, %v14_v46  ;;  %v1228_v48 = vld [vmem:[%s1779_s1 + $0x160] ss:$16 sps:$4 sm:$0xff]   ;;  %v1230_v50 = vld [vmem:[%s1779_s1 + $0x184] ss:$16 sps:$4 sm:$0xff]   ;;  %v1232_v51 = vld [vmem:[%s1779_s1 + $0x18c] ss:$16 sps:$4 sm:$0xff]   ;;  %v1010_v5 = vcombine.low %v14_v46, %v14_v46 }
  0x12   :  { %v1234_v52 = vld [vmem:[%s1779_s1 + $0x180] ss:$16 sps:$4 sm:$0xff]   ;;  %v1235_v53 = vld [vmem:[%s1779_s1 + $0x188] ss:$16 sps:$4 sm:$0xff]   ;;  %v1236_v54 = vld [vmem:[%s1779_s1 + $0x1a4] ss:$16 sps:$4 sm:$0xff]  }
  0x13   :  { %829 = vmatpush1.bf16.msra.mxu0 %v1186_v18  ;;  %911 = vmatpush1.bf16.msra.mxu1 %v1187_v19  ;;  %v1238_v55 = vld [vmem:[%s1779_s1 + $0x1ac] ss:$16 sps:$4 sm:$0xff]   ;;  %v1240_v56 = vld [vmem:[%s1779_s1 + $0x1a0] ss:$16 sps:$4 sm:$0xff]   ;;  %v1241_v57 = vld [vmem:[%s1779_s1 + $0x1a8] ss:$16 sps:$4 sm:$0xff]  }
  0x14   :  { %830 = vmatprep.subr.bf16.mxu0 %v1188_v20  ;;  %912 = vmatprep.subr.bf16.mxu1 %v1190_v21  ;;  %v1242_v58 = vld [vmem:[%s1779_s1 + $0x1c4] ss:$16 sps:$4 sm:$0xff]   ;;  %v1244_v59 = vld [vmem:[%s1779_s1 + $0x1cc] ss:$16 sps:$4 sm:$0xff]   ;;  %v1246_v60 = vld [vmem:[%s1779_s1 + $0x1c0] ss:$16 sps:$4 sm:$0xff]  }
  0x15   :  { %852 = vmatprep.mubr.bf16.mxu0 %v1011_v47  ;;  %934 = vmatprep.mubr.bf16.mxu1 %v1011_v47  ;;  %v1247_v61 = vld [vmem:[%s1779_s1 + $0x1c8] ss:$16 sps:$4 sm:$0xff]   ;;  %v1248_v62 = vld [vmem:[%s1779_s1 + $0x1e4] ss:$16 sps:$4 sm:$0xff]   ;;  %v1250_v63 = vld [vmem:[%s1779_s1 + $0x1ec] ss:$16 sps:$4 sm:$0xff]  }
  0x16   :  { %v1252_v0 = vld [vmem:[%s1779_s1 + $0x1e0] ss:$16 sps:$4 sm:$0xff]   ;;  %v1253_v1 = vld [vmem:[%s1779_s1 + $0x1e8] ss:$16 sps:$4 sm:$0xff]   ;;  %v1259_v2 = vld [vmem:[%s1779_s1 + $0x204] ss:$16 sps:$4 sm:$0xff]  }
  0x17   :  { %831 = vmatpush1.bf16.msra.mxu0 %v1192_v22  ;;  %913 = vmatpush1.bf16.msra.mxu1 %v1193_v23  ;;  %v1262_v3 = vld [vmem:[%s1779_s1 + $0x20c] ss:$16 sps:$4 sm:$0xff]   ;;  %v1257_v6 = vld [vmem:[%s1779_s1 + $0x200] ss:$16 sps:$4 sm:$0xff]   ;;  %v1260_v7 = vld [vmem:[%s1779_s1 + $0x208] ss:$16 sps:$4 sm:$0xff]  }
  0x18   :  { %832 = vmatprep.subr.bf16.mxu0 %v1194_v24  ;;  %914 = vmatprep.subr.bf16.mxu1 %v1196_v25  ;;  %v1578_v4 = vld [vmem:[%s1780_s0 + $0x8] sm:$0xff]  ;;  %v1265_v8 = vld [vmem:[%s1779_s1 + $0x224] ss:$16 sps:$4 sm:$0xff]   ;;  %v1263_v11 = vld [vmem:[%s1779_s1 + $0x220] ss:$16 sps:$4 sm:$0xff]  }
  0x19   :  { %v1268_v9 = vld [vmem:[%s1779_s1 + $0x22c] ss:$16 sps:$4 sm:$0xff]   ;;  %v1013_v10 = vcombine.high %v1578_v4, %v1578_v4  ;;  %v1266_v12 = vld [vmem:[%s1779_s1 + $0x228] ss:$16 sps:$4 sm:$0xff]   ;;  %v1271_v13 = vld [vmem:[%s1779_s1 + $0x244] ss:$16 sps:$4 sm:$0xff]  }
  0x1a   :  { %v1274_v14 = vld [vmem:[%s1779_s1 + $0x24c] ss:$16 sps:$4 sm:$0xff]   ;;  %v1269_v15 = vld [vmem:[%s1779_s1 + $0x240] ss:$16 sps:$4 sm:$0xff]   ;;  %v1272_v16 = vld [vmem:[%s1779_s1 + $0x248] ss:$16 sps:$4 sm:$0xff]  }
  0x1b   :  { %833 = vmatpush1.bf16.msra.mxu0 %v1198_v26  ;;  %915 = vmatpush1.bf16.msra.mxu1 %v1199_v27  ;;  %v1277_v17 = vld [vmem:[%s1779_s1 + $0x264] ss:$16 sps:$4 sm:$0xff]   ;;  %v1280_v18 = vld [vmem:[%s1779_s1 + $0x26c] ss:$16 sps:$4 sm:$0xff]   ;;  %v1275_v19 = vld [vmem:[%s1779_s1 + $0x260] ss:$16 sps:$4 sm:$0xff]  }
  0x1c   :  { %834 = vmatprep.subr.bf16.mxu0 %v1200_v28  ;;  %916 = vmatprep.subr.bf16.mxu1 %v1202_v29  ;;  %v1278_v20 = vld [vmem:[%s1779_s1 + $0x268] ss:$16 sps:$4 sm:$0xff]   ;;  %v1283_v21 = vld [vmem:[%s1779_s1 + $0x284] ss:$16 sps:$4 sm:$0xff]   ;;  %v1286_v22 = vld [vmem:[%s1779_s1 + $0x28c] ss:$16 sps:$4 sm:$0xff]  }
  0x1d   :  { %v1281_v23 = vld [vmem:[%s1779_s1 + $0x280] ss:$16 sps:$4 sm:$0xff]   ;;  %v1284_v24 = vld [vmem:[%s1779_s1 + $0x288] ss:$16 sps:$4 sm:$0xff]   ;;  %v1289_v25 = vld [vmem:[%s1779_s1 + $0x2a4] ss:$16 sps:$4 sm:$0xff]  }
  0x1e   :  { %v1292_v26 = vld [vmem:[%s1779_s1 + $0x2ac] ss:$16 sps:$4 sm:$0xff]   ;;  %v1287_v27 = vld [vmem:[%s1779_s1 + $0x2a0] ss:$16 sps:$4 sm:$0xff]   ;;  %v1290_v28 = vld [vmem:[%s1779_s1 + $0x2a8] ss:$16 sps:$4 sm:$0xff]  }
  0x1f   :  { %835 = vmatpush1.bf16.msra.mxu0 %v1204_v30  ;;  %917 = vmatpush1.bf16.msra.mxu1 %v1205_v31  ;;  %v1295_v29 = vld [vmem:[%s1779_s1 + $0x2c4] ss:$16 sps:$4 sm:$0xff]   ;;  %v1298_v30 = vld [vmem:[%s1779_s1 + $0x2cc] ss:$16 sps:$4 sm:$0xff]   ;;  %v1293_v31 = vld [vmem:[%s1779_s1 + $0x2c0] ss:$16 sps:$4 sm:$0xff]  }
  0x20   :  { %836 = vmatprep.subr.bf16.mxu0 %v1206_v32  ;;  %918 = vmatprep.subr.bf16.mxu1 %v1208_v33  ;;  %v1296_v32 = vld [vmem:[%s1779_s1 + $0x2c8] ss:$16 sps:$4 sm:$0xff]   ;;  %v1301_v33 = vld [vmem:[%s1779_s1 + $0x2e4] ss:$16 sps:$4 sm:$0xff]   ;;  %v1322_v46 = vld [vmem:[%s1779_s1 + $0x34c] ss:$16 sps:$4 sm:$0xff]  }
  0x21   :  { %v1317_v47 = vld [vmem:[%s1779_s1 + $0x340] ss:$16 sps:$4 sm:$0xff]  }
  0x23   :  { %837 = vmatpush1.bf16.msra.mxu0 %v1210_v34  ;;  %919 = vmatpush1.bf16.msra.mxu1 %v1211_v35  ;;  %v1304_v34 = vld [vmem:[%s1779_s1 + $0x2ec] ss:$16 sps:$4 sm:$0xff]   ;;  %v1299_v35 = vld [vmem:[%s1779_s1 + $0x2e0] ss:$16 sps:$4 sm:$0xff]  }
  0x24   :  { %838 = vmatprep.subr.bf16.mxu0 %v1212_v36  ;;  %920 = vmatprep.subr.bf16.mxu1 %v1214_v37  ;;  %v1302_v36 = vld [vmem:[%s1779_s1 + $0x2e8] ss:$16 sps:$4 sm:$0xff]   ;;  %v1307_v37 = vld [vmem:[%s1779_s1 + $0x304] ss:$16 sps:$4 sm:$0xff]  }
  0x27   :  { %839 = vmatpush1.bf16.msra.mxu0 %v1216_v38  ;;  %921 = vmatpush1.bf16.msra.mxu1 %v1217_v39  ;;  %v1310_v38 = vld [vmem:[%s1779_s1 + $0x30c] ss:$16 sps:$4 sm:$0xff]   ;;  %v1305_v39 = vld [vmem:[%s1779_s1 + $0x300] ss:$16 sps:$4 sm:$0xff]  }
  0x28   :  { %840 = vmatprep.subr.bf16.mxu0 %v1218_v40  ;;  %922 = vmatprep.subr.bf16.mxu1 %v1220_v41  ;;  %v1308_v40 = vld [vmem:[%s1779_s1 + $0x308] ss:$16 sps:$4 sm:$0xff]   ;;  %v1313_v41 = vld [vmem:[%s1779_s1 + $0x324] ss:$16 sps:$4 sm:$0xff]  }
  0x2b   :  { %841 = vmatpush1.bf16.msra.mxu0 %v1222_v42  ;;  %923 = vmatpush1.bf16.msra.mxu1 %v1223_v43  ;;  %v1316_v42 = vld [vmem:[%s1779_s1 + $0x32c] ss:$16 sps:$4 sm:$0xff]   ;;  %v1311_v43 = vld [vmem:[%s1779_s1 + $0x320] ss:$16 sps:$4 sm:$0xff]  }
  0x2c   :  { %842 = vmatprep.subr.bf16.mxu0 %v1224_v44  ;;  %924 = vmatprep.subr.bf16.mxu1 %v1226_v45  ;;  %v1314_v44 = vld [vmem:[%s1779_s1 + $0x328] ss:$16 sps:$4 sm:$0xff]   ;;  %v1319_v45 = vld [vmem:[%s1779_s1 + $0x344] ss:$16 sps:$4 sm:$0xff]  }
  0x2f   :  { %843 = vmatpush1.bf16.msra.mxu0 %v1228_v48  ;;  %925 = vmatpush1.bf16.msra.mxu1 %v1229_v49  ;;  %v1320_v48 = vld [vmem:[%s1779_s1 + $0x348] ss:$16 sps:$4 sm:$0xff]   ;;  %v1325_v49 = vld [vmem:[%s1779_s1 + $0x364] ss:$16 sps:$4 sm:$0xff]  }
  0x30   :  { %844 = vmatprep.subr.bf16.mxu0 %v1230_v50  ;;  %926 = vmatprep.subr.bf16.mxu1 %v1232_v51  ;;  %v1328_v50 = vld [vmem:[%s1779_s1 + $0x36c] ss:$16 sps:$4 sm:$0xff]   ;;  %v1323_v51 = vld [vmem:[%s1779_s1 + $0x360] ss:$16 sps:$4 sm:$0xff]  }
  0x33   :  { %845 = vmatpush1.bf16.msra.mxu0 %v1234_v52  ;;  %927 = vmatpush1.bf16.msra.mxu1 %v1235_v53  ;;  %v1326_v52 = vld [vmem:[%s1779_s1 + $0x368] ss:$16 sps:$4 sm:$0xff]   ;;  %v1331_v53 = vld [vmem:[%s1779_s1 + $0x384] ss:$16 sps:$4 sm:$0xff]  }
  0x34   :  { %846 = vmatprep.subr.bf16.mxu0 %v1236_v54  ;;  %928 = vmatprep.subr.bf16.mxu1 %v1238_v55  ;;  %v1334_v54 = vld [vmem:[%s1779_s1 + $0x38c] ss:$16 sps:$4 sm:$0xff]   ;;  %v1329_v55 = vld [vmem:[%s1779_s1 + $0x380] ss:$16 sps:$4 sm:$0xff]  }
  0x37   :  { %847 = vmatpush1.bf16.msra.mxu0 %v1240_v56  ;;  %929 = vmatpush1.bf16.msra.mxu1 %v1241_v57  ;;  %v1332_v56 = vld [vmem:[%s1779_s1 + $0x388] ss:$16 sps:$4 sm:$0xff]   ;;  %v1337_v57 = vld [vmem:[%s1779_s1 + $0x3a4] ss:$16 sps:$4 sm:$0xff]  }
  0x38   :  { %848 = vmatprep.subr.bf16.mxu0 %v1242_v58  ;;  %930 = vmatprep.subr.bf16.mxu1 %v1244_v59  ;;  %v1340_v58 = vld [vmem:[%s1779_s1 + $0x3ac] ss:$16 sps:$4 sm:$0xff]   ;;  %v1335_v59 = vld [vmem:[%s1779_s1 + $0x3a0] ss:$16 sps:$4 sm:$0xff]  }
  0x3b   :  { %849 = vmatpush1.bf16.msra.mxu0 %v1246_v60  ;;  %931 = vmatpush1.bf16.msra.mxu1 %v1247_v61  ;;  %v1338_v60 = vld [vmem:[%s1779_s1 + $0x3a8] ss:$16 sps:$4 sm:$0xff]   ;;  %v1343_v61 = vld [vmem:[%s1779_s1 + $0x3c4] ss:$16 sps:$4 sm:$0xff]  }
  0x3c   :  { %850 = vmatprep.subr.bf16.mxu0 %v1248_v62  ;;  %932 = vmatprep.subr.bf16.mxu1 %v1250_v63  ;;  %v1346_v62 = vld [vmem:[%s1779_s1 + $0x3cc] ss:$16 sps:$4 sm:$0xff]   ;;  %v1341_v63 = vld [vmem:[%s1779_s1 + $0x3c0] ss:$16 sps:$4 sm:$0xff]  }
  0x3f   :  { %851 = vmatpush1.bf16.msra.mxu0 %v1252_v0  ;;  %933 = vmatpush1.bf16.msra.mxu1 %v1253_v1  ;;  %v1344_v0 = vld [vmem:[%s1779_s1 + $0x3c8] ss:$16 sps:$4 sm:$0xff]   ;;  %v1349_v1 = vld [vmem:[%s1779_s1 + $0x3e4] ss:$16 sps:$4 sm:$0xff]  }
  0x40   :  { %861 = vmatprep.subr.bf16.mxu0 %v1259_v2  ;;  %943 = vmatprep.subr.bf16.mxu1 %v1262_v3  ;;  %v1352_v2 = vld [vmem:[%s1779_s1 + $0x3ec] ss:$16 sps:$4 sm:$0xff]   ;;  %v1347_v3 = vld [vmem:[%s1779_s1 + $0x3e0] ss:$16 sps:$4 sm:$0xff]  }
  0x42   :  { %853 = vmatmul.mubr.bf16.vlgmr.msra.gmra.mrb[0].mxu0 %v1010_v5  ;;  %935 = vmatmul.mubr.bf16.vlgmr.msra.gmra.mrb[0].mxu1 %v1010_v5  ;;  %v1350_v5 = vld [vmem:[%s1779_s1 + $0x3e8] ss:$16 sps:$4 sm:$0xff]  }
  0x43   :  { %862 = vmatpush1.bf16.msra.mxu0 %v1257_v6  ;;  %944 = vmatpush1.bf16.msra.mxu1 %v1260_v7  ;;  %v1012_v6 = vcombine.low %v1578_v4, %v1578_v4  ;;  %v146_v7 = vlaneseq }
  0x44   :  { %863 = vmatprep.subr.bf16.mxu0 %v1265_v8  ;;  %945 = vmatprep.subr.bf16.mxu1 %v1268_v9 }
  0x45   :  { %893 = vmatprep.mubr.bf16.mxu0 %v1013_v10  ;;  %975 = vmatprep.mubr.bf16.mxu1 %v1013_v10  ;;  %v147_v8 = vshrl.u32 %v146_v7, 7 }
  0x47   :  { %864 = vmatpush1.bf16.msra.mxu0 %v1263_v11  ;;  %946 = vmatpush1.bf16.msra.mxu1 %v1266_v12  ;;  %v148_v9 = vsub.s32 0, %v147_v8  ;;  %v156_v10 = vsub.s32 2, %v147_v8  ;;  %v144_v11 = vld [vmem:[%s1781_s2] sm:$0xf]  ;;  %v152_v12 = vsub.s32 1, %v147_v8 }
  0x48   :  { %865 = vmatprep.subr.bf16.mxu0 %v1271_v13  ;;  %947 = vmatprep.subr.bf16.mxu1 %v1274_v14  ;;  %v160_v13 = vsub.s32 3, %v147_v8 }
  0x49   :  { %v149_v14 = vrot.slane %v144_v11, %v148_v9 }
  0x4b   :  { %866 = vmatpush1.bf16.msra.mxu0 %v1269_v15  ;;  %948 = vmatpush1.bf16.msra.mxu1 %v1272_v16  ;;  %v157_v15 = vrot.slane %v144_v11, %v156_v10  ;;  %v153_v16 = vrot.slane %v144_v11, %v152_v12 }
  0x4c   :  { %867 = vmatprep.subr.bf16.mxu0 %v1277_v17  ;;  %949 = vmatprep.subr.bf16.mxu1 %v1280_v18  ;;  %v161_v17 = vrot.slane %v144_v11, %v160_v13 }
  0x4f   :  { %868 = vmatpush1.bf16.msra.mxu0 %v1275_v19  ;;  %950 = vmatpush1.bf16.msra.mxu1 %v1278_v20 }
  0x50   :  { %869 = vmatprep.subr.bf16.mxu0 %v1283_v21  ;;  %951 = vmatprep.subr.bf16.mxu1 %v1286_v22 }
  0x53   :  { %870 = vmatpush1.bf16.msra.mxu0 %v1281_v23  ;;  %952 = vmatpush1.bf16.msra.mxu1 %v1284_v24 }
  0x54   :  { %871 = vmatprep.subr.bf16.mxu0 %v1289_v25  ;;  %953 = vmatprep.subr.bf16.mxu1 %v1292_v26 }
  0x57   :  { %872 = vmatpush1.bf16.msra.mxu0 %v1287_v27  ;;  %954 = vmatpush1.bf16.msra.mxu1 %v1290_v28 }
  0x58   :  { %873 = vmatprep.subr.bf16.mxu0 %v1295_v29  ;;  %955 = vmatprep.subr.bf16.mxu1 %v1298_v30 }
  0x5b   :  { %874 = vmatpush1.bf16.msra.mxu0 %v1293_v31  ;;  %956 = vmatpush1.bf16.msra.mxu1 %v1296_v32 }
  0x5c   :  { %875 = vmatprep.subr.bf16.mxu0 %v1301_v33  ;;  %957 = vmatprep.subr.bf16.mxu1 %v1304_v34 }
  0x5f   :  { %876 = vmatpush1.bf16.msra.mxu0 %v1299_v35  ;;  %958 = vmatpush1.bf16.msra.mxu1 %v1302_v36 }
  0x60   :  { %877 = vmatprep.subr.bf16.mxu0 %v1307_v37  ;;  %959 = vmatprep.subr.bf16.mxu1 %v1310_v38 }
  0x63   :  { %878 = vmatpush1.bf16.msra.mxu0 %v1305_v39  ;;  %960 = vmatpush1.bf16.msra.mxu1 %v1308_v40 }
  0x64   :  { %879 = vmatprep.subr.bf16.mxu0 %v1313_v41  ;;  %961 = vmatprep.subr.bf16.mxu1 %v1316_v42 }
  0x67   :  { %880 = vmatpush1.bf16.msra.mxu0 %v1311_v43  ;;  %962 = vmatpush1.bf16.msra.mxu1 %v1314_v44 }
  0x68   :  { %881 = vmatprep.subr.bf16.mxu0 %v1319_v45  ;;  %963 = vmatprep.subr.bf16.mxu1 %v1322_v46 }
  0x6b   :  { %882 = vmatpush1.bf16.msra.mxu0 %v1317_v47  ;;  %964 = vmatpush1.bf16.msra.mxu1 %v1320_v48 }
  0x6c   :  { %883 = vmatprep.subr.bf16.mxu0 %v1325_v49  ;;  %965 = vmatprep.subr.bf16.mxu1 %v1328_v50 }
  0x6f   :  { %884 = vmatpush1.bf16.msra.mxu0 %v1323_v51  ;;  %966 = vmatpush1.bf16.msra.mxu1 %v1326_v52 }
  0x70   :  { %885 = vmatprep.subr.bf16.mxu0 %v1331_v53  ;;  %967 = vmatprep.subr.bf16.mxu1 %v1334_v54 }
  0x73   :  { %886 = vmatpush1.bf16.msra.mxu0 %v1329_v55  ;;  %968 = vmatpush1.bf16.msra.mxu1 %v1332_v56 }
  0x74   :  { %887 = vmatprep.subr.bf16.mxu0 %v1337_v57  ;;  %969 = vmatprep.subr.bf16.mxu1 %v1340_v58 }
  0x77   :  { %888 = vmatpush1.bf16.msra.mxu0 %v1335_v59  ;;  %970 = vmatpush1.bf16.msra.mxu1 %v1338_v60 }
  0x78   :  { %889 = vmatprep.subr.bf16.mxu0 %v1343_v61  ;;  %971 = vmatprep.subr.bf16.mxu1 %v1346_v62 }
  0x7b   :  { %890 = vmatpush1.bf16.msra.mxu0 %v1341_v63  ;;  %972 = vmatpush1.bf16.msra.mxu1 %v1344_v0 }
  0x7c   :  { %891 = vmatprep.subr.bf16.mxu0 %v1349_v1  ;;  %973 = vmatprep.subr.bf16.mxu1 %v1352_v2 }
  0x7f   :  { %892 = vmatpush1.bf16.msra.mxu0 %v1347_v3  ;;  %974 = vmatpush1.bf16.msra.mxu1 %v1350_v5 }
  0x82   :  { %894 = vmatmul.mubr.bf16.vlgmr.msra.gmra.mrb[0].mxu0 %v1012_v6  ;;  %976 = vmatmul.mubr.bf16.vlgmr.msra.gmra.mrb[0].mxu1 %v1012_v6 }
 0x155   :  { %v895_v18 = vpop.f32.mrb[0].mxu0  ;;  %v977_v4 = vpop.f32.mrb[0].mxu1 }
 0x156   :  { %v1146_v19 = vadd.f32 %v895_v18, %v149_v14  ;;  %v1148_v20 = vadd.f32 %v977_v4, %v157_v15  ;;  %v897_v21 = vpop.f32.mrb[1].mxu0  ;;  %v979_v22 = vpop.f32.mrb[1].mxu1 }
 0x157   :  { %v1147_v23 = vadd.f32 %v897_v21, %v153_v16  ;;  %v1149_v24 = vadd.f32 %v979_v22, %v161_v17  ;;  %v899_v25 = vpop.f32.mrb[2].mxu0  ;;  %v981_v26 = vpop.f32.mrb[2].mxu1 }
 0x158   :  { %v984_v27 = vmax.f32 %v1146_v19, 0.0  ;;  %v986_v28 = vmax.f32 %v1148_v20, 0.0  ;;  %v900_v29 = vpop.f32.mrb[3].mxu0  ;;  %v982_v30 = vpop.f32.mrb[3].mxu1 }
 0x159   :  { %v985_v31 = vmax.f32 %v1147_v23, 0.0  ;;  %v987_v32 = vmax.f32 %v1149_v24, 0.0 }
 0x15b   :  { %v1144_v33 = vpack.c.bf16 %v985_v31, %v984_v27  ;;  %v1145_v34 = vpack.c.bf16 %v987_v32, %v986_v28 }
 0x15d   :  { %1004 = vst [vmem:[%s1782_s3] sm:$0xff] %v1144_v33  ;;  %1005 = vst [vmem:[%s1782_s3 + $0x8] sm:$0xff] %v1145_v34 }

// kernel: channel_distill_forward.11
= control target key start
LH: loop header
LB: loop body
LE: loop exit
PB: predicated region body
PF: predicated region fallthrough
CT: control target
= control target key end

     0   :  { %s976_s0 = inlined_call_operand.vmem [shape: bf16[128,128], index: 0, kind: input, shape index: {}]   ;;  %s977_s1 = inlined_call_operand.vmem [shape: bf16[128,128], index: 1, kind: input, shape index: {}]   ;;  %s978_s2 = inlined_call_operand.vmem [shape: f32[1,128], index: 2, kind: input, shape index: {}]   ;;  %s979_s3 = inlined_call_operand.vmem [shape: bf16[128,128], index: 3, kind: input, shape index: {}]   ;;  %s980_s4 = inlined_call_operand.vmem [shape: f32[1,128], index: 4, kind: input, shape index: {}]   ;;  %s981_s5 = inlined_call_operand.vmem [shape: bf16[128,128], index: 5, kind: output, shape index: {0}]   ;;  %s982_s6 = inlined_call_operand.hbm [shape: f32[128,128], index: 6, kind: output, shape index: {1}]  }
   0x1   :  { %v776_v0 = vld [vmem:[%s977_s1] sm:$0xff]   ;;  %v777_v1 = vld [vmem:[%s977_s1 + $0x8] sm:$0xff]   ;;  %v778_v2 = vld [vmem:[%s977_s1 + $0x10] sm:$0xff]  }
   0x2   :  { %709 = vmatprep.subr.bf16.mxu0 %v776_v0  ;;  %v779_v3 = vld [vmem:[%s977_s1 + $0x18] sm:$0xff]   ;;  %v784_v4 = vld [vmem:[%s976_s0] sm:$0xff]   ;;  %v781_v6 = vld [vmem:[%s977_s1 + $0x28] sm:$0xff]  }
   0x3   :  { %710 = vmatpush3.bf16.msra.mxu0 %v776_v0  ;;  %725 = vmatprep.mubr.bf16.mxu0 %v784_v4  ;;  %v780_v5 = vld [vmem:[%s977_s1 + $0x20] sm:$0xff]   ;;  %v793_v8 = vld [vmem:[%s979_s3 + $0x8] sm:$0xff]   ;;  %v782_v9 = vld [vmem:[%s977_s1 + $0x30] sm:$0xff]  }
   0x4   :  { %711 = vmatprep.subr.bf16.mxu0 %v777_v1  ;;  %v792_v7 = vld [vmem:[%s979_s3] sm:$0xff]   ;;  %v794_v10 = vld [vmem:[%s979_s3 + $0x10] sm:$0xff]  }
   0x5   :  { %741 = vmatprep.subr.bf16.mxu1 %v792_v7 }
   0x6   :  { %742 = vmatpush3.bf16.msra.mxu1 %v792_v7 }
   0x7   :  { %712 = vmatpush3.bf16.msra.mxu0 %v777_v1  ;;  %743 = vmatprep.subr.bf16.mxu1 %v793_v8 }
   0x8   :  { %713 = vmatprep.subr.bf16.mxu0 %v778_v2 }
   0xa   :  { %744 = vmatpush3.bf16.msra.mxu1 %v793_v8 }
   0xb   :  { %714 = vmatpush3.bf16.msra.mxu0 %v778_v2 }
   0xc   :  { %715 = vmatprep.subr.bf16.mxu0 %v779_v3 }
   0xf   :  { %716 = vmatpush3.bf16.msra.mxu0 %v779_v3 }
  0x10   :  { %717 = vmatprep.subr.bf16.mxu0 %v780_v5 }
  0x13   :  { %718 = vmatpush3.bf16.msra.mxu0 %v780_v5 }
  0x14   :  { %719 = vmatprep.subr.bf16.mxu0 %v781_v6 }
  0x17   :  { %720 = vmatpush3.bf16.msra.mxu0 %v781_v6 }
  0x18   :  { %12 = vsyncpa [#allocation3], 0  ;;  %721 = vmatprep.subr.bf16.mxu0 %v782_v9  ;;  %v783_v11 = vld [vmem:[%s977_s1 + $0x38] sm:$0xff]   ;;  %745 = vmatprep.subr.bf16.mxu1 %v794_v10  ;;  %v796_v13 = vld [vmem:[%s979_s3 + $0x20] sm:$0xff]  }
  0x19   :  { %v795_v12 = vld [vmem:[%s979_s3 + $0x18] sm:$0xff]   ;;  %746 = vmatpush3.bf16.msra.mxu1 %v794_v10  ;;  %v785_v14 = vld [vmem:[%s976_s0 + $0x8] sm:$0xff]   ;;  %v786_v15 = vld [vmem:[%s976_s0 + $0x10] sm:$0xff]  }
  0x1a   :  { %747 = vmatprep.subr.bf16.mxu1 %v795_v12  ;;  %v797_v16 = vld [vmem:[%s979_s3 + $0x28] sm:$0xff]   ;;  %v787_v17 = vld [vmem:[%s976_s0 + $0x18] sm:$0xff]   ;;  %v788_v18 = vld [vmem:[%s976_s0 + $0x20] sm:$0xff]  }
  0x1b   :  { %722 = vmatpush3.bf16.msra.mxu0 %v782_v9  ;;  %v789_v19 = vld [vmem:[%s976_s0 + $0x28] sm:$0xff]   ;;  %v790_v20 = vld [vmem:[%s976_s0 + $0x30] sm:$0xff]   ;;  %v791_v21 = vld [vmem:[%s976_s0 + $0x38] sm:$0xff]  }
  0x1c   :  { %723 = vmatprep.subr.bf16.mxu0 %v783_v11  ;;  %v798_v22 = vld [vmem:[%s979_s3 + $0x30] sm:$0xff]   ;;  %v799_v23 = vld [vmem:[%s979_s3 + $0x38] sm:$0xff]   ;;  %v572_v24 = vld [vmem:[%s978_s2] ss:$0 sm:$0xff] }
  0x1d   :  { %748 = vmatpush3.bf16.msra.mxu1 %v795_v12 }
  0x1e   :  { %749 = vmatprep.subr.bf16.mxu1 %v796_v13 }
  0x1f   :  { %724 = vmatpush3.bf16.msra.mxu0 %v783_v11 }
  0x21   :  { %750 = vmatpush3.bf16.msra.mxu1 %v796_v13 }
  0x22   :  { %726 = vmatmul.mubr.bf16.vlgmr.msra.gmra.mrb[0].mxu0 %v785_v14  ;;  %751 = vmatprep.subr.bf16.mxu1 %v797_v16 }
  0x23   :  { %729 = vmatprep.mubr.bf16.mxu0 %v786_v15 }
  0x25   :  { %752 = vmatpush3.bf16.msra.mxu1 %v797_v16 }
  0x26   :  { %753 = vmatprep.subr.bf16.mxu1 %v798_v22 }
  0x29   :  { %754 = vmatpush3.bf16.msra.mxu1 %v798_v22 }
  0x2a   :  { %730 = vmatmul.mubr.bf16.gmra.mrb[4].mxu0 %v787_v17  ;;  %755 = vmatprep.subr.bf16.mxu1 %v799_v23  ;;  %v605_v17 = vld [vmem:[%s980_s4] ss:$0 sm:$0xff]  ;;  %s824_s4 = smov [#allocation2]  }
  0x2b   :  { %733 = vmatprep.mubr.bf16.mxu0 %v788_v18 }
  0x2d   :  { %756 = vmatpush3.bf16.msra.mxu1 %v799_v23 }
  0x32   :  { %734 = vmatmul.mubr.bf16.gmra.mrb[8].mxu0 %v789_v19 }
  0x33   :  { %737 = vmatprep.mubr.bf16.mxu0 %v790_v20 }
  0x3a   :  { %738 = vmatmul.mubr.bf16.gmra.mrb[12].mxu0 %v791_v21 }
  0xf5   :  { %v727_v25 = vpop.f32.mrb[0].mxu0 }
  0xf6   :  { %v202_v26 = vadd.f32 %v727_v25, %v572_v24  ;;  %v193_v27 = vpop.f32.mrb[1].mxu0 }
  0xf7   :  { %v194_v28 = vadd.f32 %v572_v24, %v193_v27  ;;  %v728_v29 = vpop.f32.mrb[2].mxu0 }
  0xf8   :  { %v205_v30 = vadd.f32 %v728_v29, %v572_v24  ;;  %v196_v31 = vpop.f32.mrb[3].mxu0  ;;  %v258_v33 = vmax.f32 %v202_v26, 0.0 }
  0xf9   :  { %v197_v32 = vadd.f32 %v572_v24, %v196_v31  ;;  %v256_v35 = vmax.f32 %v194_v28, 0.0 }
  0xfa   :  { %v259_v34 = vmax.f32 %v205_v30, 0.0 }
  0xfb   :  { %v257_v36 = vmax.f32 %v197_v32, 0.0 }
  0xfc   :  { %v273_v37 = vpack.c.bf16 %v259_v34, %v258_v33 }
  0xfd   :  { %v731_v38 = vpop.f32.mrb[4].mxu0  ;;  %v272_v39 = vpack.c.bf16 %v257_v36, %v256_v35 }
  0xfe   :  { %670 = vst [vmem:[%s981_s5 + $0x8] sm:$0xff] %v273_v37   ;;  %v218_v40 = vadd.f32 %v731_v38, %v572_v24  ;;  %v209_v41 = vpop.f32.mrb[5].mxu0 }
  0xff   :  { %v210_v42 = vadd.f32 %v572_v24, %v209_v41  ;;  %v732_v43 = vpop.f32.mrb[6].mxu0  ;;  %634 = vst [vmem:[%s981_s5] sm:$0xff] %v272_v39   ;;  %757 = vmatprep.mubr.bf16.mxu1 %v272_v39 }
 0x100   :  { %v221_v44 = vadd.f32 %v732_v43, %v572_v24  ;;  %v212_v45 = vpop.f32.mrb[7].mxu0  ;;  %758 = vmatmul.mubr.bf16.vlgmr.msra.gmra.mrb[0].mxu1 %v273_v37  ;;  %v262_v47 = vmax.f32 %v218_v40, 0.0 }
 0x101   :  { %v213_v46 = vadd.f32 %v572_v24, %v212_v45  ;;  %v260_v49 = vmax.f32 %v210_v42, 0.0 }
 0x102   :  { %v263_v48 = vmax.f32 %v221_v44, 0.0 }
 0x103   :  { %v261_v50 = vmax.f32 %v213_v46, 0.0 }
 0x104   :  { %v275_v51 = vpack.c.bf16 %v263_v48, %v262_v47 }
 0x105   :  { %v274_v52 = vpack.c.bf16 %v261_v50, %v260_v49  ;;  %v735_v53 = vpop.f32.mrb[8].mxu0 }
 0x106   :  { %672 = vst [vmem:[%s981_s5 + $0x18] sm:$0xff] %v275_v51   ;;  %v234_v54 = vadd.f32 %v735_v53, %v572_v24  ;;  %v225_v55 = vpop.f32.mrb[9].mxu0 }
 0x107   :  { %671 = vst [vmem:[%s981_s5 + $0x10] sm:$0xff] %v274_v52   ;;  %v226_v56 = vadd.f32 %v572_v24, %v225_v55  ;;  %v736_v57 = vpop.f32.mrb[10].mxu0  ;;  %761 = vmatprep.mubr.bf16.mxu1 %v274_v52 }
 0x108   :  { %v237_v58 = vadd.f32 %v736_v57, %v572_v24  ;;  %v228_v59 = vpop.f32.mrb[11].mxu0  ;;  %762 = vmatmul.mubr.bf16.gmra.mrb[4].mxu1 %v275_v51  ;;  %v266_v61 = vmax.f32 %v234_v54, 0.0 }
 0x109   :  { %v229_v60 = vadd.f32 %v572_v24, %v228_v59  ;;  %v264_v63 = vmax.f32 %v226_v56, 0.0 }
 0x10a   :  { %v267_v62 = vmax.f32 %v237_v58, 0.0 }
 0x10b   :  { %v265_v0 = vmax.f32 %v229_v60, 0.0 }
 0x10c   :  { %v277_v1 = vpack.c.bf16 %v267_v62, %v266_v61 }
 0x10d   :  { %v276_v2 = vpack.c.bf16 %v265_v0, %v264_v63  ;;  %v739_v3 = vpop.f32.mrb[12].mxu0 }
 0x10e   :  { %674 = vst [vmem:[%s981_s5 + $0x28] sm:$0xff] %v277_v1   ;;  %v250_v4 = vadd.f32 %v739_v3, %v572_v24  ;;  %v241_v5 = vpop.f32.mrb[13].mxu0 }
 0x10f   :  { %673 = vst [vmem:[%s981_s5 + $0x20] sm:$0xff] %v276_v2   ;;  %v242_v6 = vadd.f32 %v572_v24, %v241_v5  ;;  %v740_v7 = vpop.f32.mrb[14].mxu0  ;;  %765 = vmatprep.mubr.bf16.mxu1 %v276_v2 }
 0x110   :  { %v253_v8 = vadd.f32 %v740_v7, %v572_v24  ;;  %v244_v9 = vpop.f32.mrb[15].mxu0  ;;  %766 = vmatmul.mubr.bf16.gmra.mrb[8].mxu1 %v277_v1  ;;  %v270_v11 = vmax.f32 %v250_v4, 0.0 }
 0x111   :  { %v245_v10 = vadd.f32 %v572_v24, %v244_v9  ;;  %v268_v13 = vmax.f32 %v242_v6, 0.0 }
 0x112   :  { %v271_v12 = vmax.f32 %v253_v8, 0.0 }
 0x113   :  { %v269_v14 = vmax.f32 %v245_v10, 0.0 }
 0x114   :  { %v279_v15 = vpack.c.bf16 %v271_v12, %v270_v11 }
 0x115   :  { %v278_v16 = vpack.c.bf16 %v269_v14, %v268_v13 }
 0x116   :  { %676 = vst [vmem:[%s981_s5 + $0x38] sm:$0xff] %v279_v15  }
 0x117   :  { %675 = vst [vmem:[%s981_s5 + $0x30] sm:$0xff] %v278_v16   ;;  %769 = vmatprep.mubr.bf16.mxu1 %v278_v16  ;;  %s559_s5 = sshll.u32 %s824_s4, 4  ;;  %s560_s5 = int_to_ptr.vmem [resolvable:$true] %s559_s5 }
 0x118   :  { %770 = vmatmul.mubr.bf16.gmra.mrb[12].mxu1 %v279_v15  ;;  %s800_s12 = scalar_lea.vmem %s560_s5, 2048  ;;  %p805_p1 = scmp.lt.s32.totalorder %s560_s5, %s560_s5 }
 0x119   :  { %p801_p0 = scmp.ne.s32.totalorder %s560_s5, %s800_s12  ;;  %p806_p2 = scmp.lt.s32.totalorder %s800_s12, %s800_s12 }
 0x11b   :  { %p807_p3 = por %p806_p2, %p805_p1 }
 0x11d   :  { %p808_p4 = pnand %p807_p3, %p801_p0 }
 0x1d3   :  { %v759_v18 = vpop.f32.mrb[0].mxu1 }
 0x1d4   :  { %v466_v19 = vadd.f32 %v759_v18, %v605_v17  ;;  %v457_v20 = vpop.f32.mrb[1].mxu1 }
 0x1d5   :  { %v458_v21 = vadd.f32 %v605_v17, %v457_v20  ;;  %v760_v22 = vpop.f32.mrb[2].mxu1 }
 0x1d6   :  { %v522_v23 = vmax.f32 %v466_v19, 0.0  ;;  %v469_v24 = vadd.f32 %v760_v22, %v605_v17  ;;  %v460_v25 = vpop.f32.mrb[3].mxu1 }
 0x1d7   :  { %v520_v26 = vmax.f32 %v458_v21, 0.0  ;;  %v461_v27 = vadd.f32 %v605_v17, %v460_v25 }
 0x1d8   :  { %538 = vst [vmem:[#allocation2 + $0x10] sm:$0xff] %v522_v23  ;;  %v523_v28 = vmax.f32 %v469_v24, 0.0 }
 0x1d9   :  { %536 = vst [vmem:[#allocation2] sm:$0xff] %v520_v26  ;;  %v521_v29 = vmax.f32 %v461_v27, 0.0 }
 0x1da   :  { %539 = vst [vmem:[#allocation2 + $0x18] sm:$0xff] %v523_v28 }
 0x1db   :  { %537 = vst [vmem:[#allocation2 + $0x8] sm:$0xff] %v521_v29  ;;  %v763_v30 = vpop.f32.mrb[4].mxu1 }
 0x1dc   :  { %v482_v31 = vadd.f32 %v763_v30, %v605_v17  ;;  %v473_v32 = vpop.f32.mrb[5].mxu1 }
 0x1dd   :  { %v474_v33 = vadd.f32 %v605_v17, %v473_v32  ;;  %v764_v34 = vpop.f32.mrb[6].mxu1 }
 0x1de   :  { %v526_v35 = vmax.f32 %v482_v31, 0.0  ;;  %v485_v36 = vadd.f32 %v764_v34, %v605_v17  ;;  %v476_v37 = vpop.f32.mrb[7].mxu1 }
 0x1df   :  { %v524_v38 = vmax.f32 %v474_v33, 0.0  ;;  %v477_v39 = vadd.f32 %v605_v17, %v476_v37 }
 0x1e0   :  { %542 = vst [vmem:[#allocation2 + $0x30] sm:$0xff] %v526_v35  ;;  %v527_v40 = vmax.f32 %v485_v36, 0.0 }
 0x1e1   :  { %540 = vst [vmem:[#allocation2 + $0x20] sm:$0xff] %v524_v38  ;;  %v525_v41 = vmax.f32 %v477_v39, 0.0 }
 0x1e2   :  { %543 = vst [vmem:[#allocation2 + $0x38] sm:$0xff] %v527_v40 }
 0x1e3   :  { %541 = vst [vmem:[#allocation2 + $0x28] sm:$0xff] %v525_v41  ;;  %v767_v42 = vpop.f32.mrb[8].mxu1 }
 0x1e4   :  { %v498_v43 = vadd.f32 %v767_v42, %v605_v17  ;;  %v489_v44 = vpop.f32.mrb[9].mxu1 }
 0x1e5   :  { %v490_v45 = vadd.f32 %v605_v17, %v489_v44  ;;  %v768_v46 = vpop.f32.mrb[10].mxu1 }
 0x1e6   :  { %v530_v47 = vmax.f32 %v498_v43, 0.0  ;;  %v501_v48 = vadd.f32 %v768_v46, %v605_v17  ;;  %v492_v49 = vpop.f32.mrb[11].mxu1 }
 0x1e7   :  { %v528_v50 = vmax.f32 %v490_v45, 0.0  ;;  %v493_v51 = vadd.f32 %v605_v17, %v492_v49 }
 0x1e8   :  { %546 = vst [vmem:[#allocation2 + $0x50] sm:$0xff] %v530_v47  ;;  %v531_v52 = vmax.f32 %v501_v48, 0.0 }
 0x1e9   :  { %544 = vst [vmem:[#allocation2 + $0x40] sm:$0xff] %v528_v50  ;;  %v529_v53 = vmax.f32 %v493_v51, 0.0 }
 0x1ea   :  { %547 = vst [vmem:[#allocation2 + $0x58] sm:$0xff] %v531_v52 }
 0x1eb   :  { %545 = vst [vmem:[#allocation2 + $0x48] sm:$0xff] %v529_v53  ;;  %v771_v54 = vpop.f32.mrb[12].mxu1 }
 0x1ec   :  { %v514_v55 = vadd.f32 %v771_v54, %v605_v17  ;;  %v505_v56 = vpop.f32.mrb[13].mxu1 }
 0x1ed   :  { %v506_v57 = vadd.f32 %v605_v17, %v505_v56  ;;  %v772_v58 = vpop.f32.mrb[14].mxu1 }
 0x1ee   :  { %v534_v59 = vmax.f32 %v514_v55, 0.0  ;;  %v517_v60 = vadd.f32 %v772_v58, %v605_v17  ;;  %v508_v61 = vpop.f32.mrb[15].mxu1 }
 0x1ef   :  { %v532_v62 = vmax.f32 %v506_v57, 0.0  ;;  %v509_v63 = vadd.f32 %v605_v17, %v508_v61 }
 0x1f0   :  { %550 = vst [vmem:[#allocation2 + $0x70] sm:$0xff] %v534_v59  ;;  %v535_v0 = vmax.f32 %v517_v60, 0.0 }
 0x1f1   :  { %548 = vst [vmem:[#allocation2 + $0x60] sm:$0xff] %v532_v62  ;;  %v533_v1 = vmax.f32 %v509_v63, 0.0 }
 0x1f2   :  { %551 = vst [vmem:[#allocation2 + $0x78] sm:$0xff] %v535_v0 }
 0x1f3   :  { %549 = vst [vmem:[#allocation2 + $0x68] sm:$0xff] %v533_v1 }
 0x1f4   :  { %811 = shalt.err (!%p808_p4)
}
 0x1f5   :  { %s812_s15 = scalar_lea.hbm %s982_s6, 2048 }
 0x1f6   :  { %p813_p5 = scmp.ne.s32.totalorder %s982_s6, %s812_s15  ;;  %p816_p6 = scmp.lt.u32.totalorder %s812_s15, %s982_s6 }
 0x1f8   :  { %p818_p7 = pnand %p816_p6, %p813_p5 }
 0x1fa   :  { %821 = shalt.err (!%p818_p7)
}
 0x1fb   :  { %s825_s20 = smov 128   ;;  %s826_s21 = smov 8  }
 0x1fc   :  { %565 = dma.vmem_to_hbm [thread:$0]  %s560_s5, 2048, %s982_s6, [#allocation3], %s825_s20, %s825_s20, %s826_s21  }
 0x1fd   :  { %822 = dma.done.wait [#allocation3], 2048  }
 0x1fe   :  { %823 = vsyncadd [#allocation3], 4294965248 }
 0x1ff   :  { %571 = vsyncpa [#allocation3], 1 }

// kernel: channel_distill_forward.10
= control target key start
LH: loop header
LB: loop body
LE: loop exit
PB: predicated region body
PF: predicated region fallthrough
CT: control target
= control target key end

     0   :  { %s2781_s1 = inlined_call_operand.vmem [shape: bf16[128,128], index: 1, kind: input, shape index: {}]   ;;  %s2782_s0 = inlined_call_operand.vmem [shape: bf16[512,128], index: 0, kind: input, shape index: {}]   ;;  %s2783_s3 = inlined_call_operand.vmem [shape: bf16[128,128], index: 3, kind: input, shape index: {}]   ;;  %s2784_s2 = inlined_call_operand.vmem [shape: f32[1,128], index: 2, kind: input, shape index: {}]   ;;  %s2785_s5 = inlined_call_operand.vmem [shape: bf16[512,128], index: 5, kind: output, shape index: {0}]   ;;  %s2786_s4 = inlined_call_operand.vmem [shape: f32[1,128], index: 4, kind: input, shape index: {}]   ;;  %s2787_s6 = inlined_call_operand.vmem [shape: f32[512,128], index: 6, kind: output, shape index: {1}]  }
   0x1   :  { %v2128_v0 = vld [vmem:[%s2781_s1] sm:$0xff]   ;;  %v2129_v1 = vld [vmem:[%s2781_s1 + $0x8] sm:$0xff]   ;;  %v2130_v2 = vld [vmem:[%s2781_s1 + $0x10] sm:$0xff]  }
   0x2   :  { %1968 = vmatprep.subr.bf16.mxu0 %v2128_v0  ;;  %v2131_v3 = vld [vmem:[%s2781_s1 + $0x18] sm:$0xff]   ;;  %v2136_v4 = vld [vmem:[%s2782_s0] sm:$0xff]   ;;  %v2133_v6 = vld [vmem:[%s2781_s1 + $0x28] sm:$0xff]  }
   0x3   :  { %1969 = vmatpush3.bf16.msra.mxu0 %v2128_v0  ;;  %1984 = vmatprep.mubr.bf16.mxu0 %v2136_v4  ;;  %v2132_v5 = vld [vmem:[%s2781_s1 + $0x20] sm:$0xff]   ;;  %v2134_v7 = vld [vmem:[%s2781_s1 + $0x30] sm:$0xff]   ;;  %v2135_v8 = vld [vmem:[%s2781_s1 + $0x38] sm:$0xff]  }
   0x4   :  { %1970 = vmatprep.subr.bf16.mxu0 %v2129_v1  ;;  %v2137_v9 = vld [vmem:[%s2782_s0 + $0x8] sm:$0xff]   ;;  %v2138_v10 = vld [vmem:[%s2782_s0 + $0x10] sm:$0xff]   ;;  %v2139_v11 = vld [vmem:[%s2782_s0 + $0x18] sm:$0xff]  }
   0x5   :  { %v2140_v12 = vld [vmem:[%s2782_s0 + $0x20] sm:$0xff]   ;;  %v2169_v14 = vld [vmem:[%s2783_s3 + $0x8] sm:$0xff]   ;;  %v2170_v15 = vld [vmem:[%s2783_s3 + $0x10] sm:$0xff]  }
   0x6   :  { %v2168_v13 = vld [vmem:[%s2783_s3] sm:$0xff]   ;;  %v2141_v16 = vld [vmem:[%s2782_s0 + $0x28] sm:$0xff]   ;;  %v2142_v17 = vld [vmem:[%s2782_s0 + $0x30] sm:$0xff]  }
   0x7   :  { %1971 = vmatpush3.bf16.msra.mxu0 %v2129_v1  ;;  %2048 = vmatprep.subr.bf16.mxu1 %v2168_v13  ;;  %v2171_v18 = vld [vmem:[%s2783_s3 + $0x18] sm:$0xff]   ;;  %v2172_v19 = vld [vmem:[%s2783_s3 + $0x20] sm:$0xff]   ;;  %v2173_v22 = vld [vmem:[%s2783_s3 + $0x28] sm:$0xff]  }
   0x8   :  { %1972 = vmatprep.subr.bf16.mxu0 %v2130_v2  ;;  %2049 = vmatpush3.bf16.msra.mxu1 %v2168_v13  ;;  %v2143_v20 = vld [vmem:[%s2782_s0 + $0x38] sm:$0xff]   ;;  %v2144_v21 = vld [vmem:[%s2782_s0 + $0x40] sm:$0xff]   ;;  %v2145_v23 = vld [vmem:[%s2782_s0 + $0x48] sm:$0xff]  }
   0x9   :  { %2050 = vmatprep.subr.bf16.mxu1 %v2169_v14  ;;  %v2146_v24 = vld [vmem:[%s2782_s0 + $0x50] sm:$0xff]   ;;  %v2147_v25 = vld [vmem:[%s2782_s0 + $0x58] sm:$0xff]   ;;  %v2148_v26 = vld [vmem:[%s2782_s0 + $0x60] sm:$0xff]  }
   0xa   :  { %v2149_v27 = vld [vmem:[%s2782_s0 + $0x68] sm:$0xff]   ;;  %v2150_v28 = vld [vmem:[%s2782_s0 + $0x70] sm:$0xff]   ;;  %v2151_v29 = vld [vmem:[%s2782_s0 + $0x78] sm:$0xff]  }
   0xb   :  { %1973 = vmatpush3.bf16.msra.mxu0 %v2130_v2  ;;  %v2152_v30 = vld [vmem:[%s2782_s0 + $0x80] sm:$0xff]   ;;  %v2153_v31 = vld [vmem:[%s2782_s0 + $0x88] sm:$0xff]   ;;  %v2154_v32 = vld [vmem:[%s2782_s0 + $0x90] sm:$0xff]  }
   0xc   :  { %1974 = vmatprep.subr.bf16.mxu0 %v2131_v3  ;;  %2051 = vmatpush3.bf16.msra.mxu1 %v2169_v14  ;;  %v2155_v33 = vld [vmem:[%s2782_s0 + $0x98] sm:$0xff]   ;;  %v2156_v34 = vld [vmem:[%s2782_s0 + $0xa0] sm:$0xff]   ;;  %v2157_v35 = vld [vmem:[%s2782_s0 + $0xa8] sm:$0xff]  }
   0xd   :  { %2052 = vmatprep.subr.bf16.mxu1 %v2170_v15  ;;  %v2158_v36 = vld [vmem:[%s2782_s0 + $0xb0] sm:$0xff]   ;;  %v2159_v37 = vld [vmem:[%s2782_s0 + $0xb8] sm:$0xff]   ;;  %v2160_v39 = vld [vmem:[%s2782_s0 + $0xc0] sm:$0xff]  }
   0xe   :  { %v2174_v38 = vld [vmem:[%s2783_s3 + $0x30] sm:$0xff]   ;;  %v2175_v40 = vld [vmem:[%s2783_s3 + $0x38] sm:$0xff]   ;;  %v2161_v41 = vld [vmem:[%s2782_s0 + $0xc8] sm:$0xff]  }
   0xf   :  { %1975 = vmatpush3.bf16.msra.mxu0 %v2131_v3  ;;  %v2162_v42 = vld [vmem:[%s2782_s0 + $0xd0] sm:$0xff]   ;;  %v2163_v43 = vld [vmem:[%s2782_s0 + $0xd8] sm:$0xff]   ;;  %v2164_v44 = vld [vmem:[%s2782_s0 + $0xe0] sm:$0xff]  }
  0x10   :  { %1976 = vmatprep.subr.bf16.mxu0 %v2132_v5  ;;  %2053 = vmatpush3.bf16.msra.mxu1 %v2170_v15  ;;  %v2165_v45 = vld [vmem:[%s2782_s0 + $0xe8] sm:$0xff]   ;;  %v2166_v46 = vld [vmem:[%s2782_s0 + $0xf0] sm:$0xff]   ;;  %v2167_v47 = vld [vmem:[%s2782_s0 + $0xf8] sm:$0xff]  }
  0x11   :  { %2054 = vmatprep.subr.bf16.mxu1 %v2171_v18  ;;  %v2358_v48 = vld [vmem:[%s2784_s2] ss:$0 sm:$0xff] }
  0x13   :  { %1977 = vmatpush3.bf16.msra.mxu0 %v2132_v5 }
  0x14   :  { %1978 = vmatprep.subr.bf16.mxu0 %v2133_v6  ;;  %2055 = vmatpush3.bf16.msra.mxu1 %v2171_v18 }
  0x15   :  { %2056 = vmatprep.subr.bf16.mxu1 %v2172_v19 }
  0x17   :  { %1979 = vmatpush3.bf16.msra.mxu0 %v2133_v6 }
  0x18   :  { %1980 = vmatprep.subr.bf16.mxu0 %v2134_v7  ;;  %2057 = vmatpush3.bf16.msra.mxu1 %v2172_v19 }
  0x19   :  { %2058 = vmatprep.subr.bf16.mxu1 %v2173_v22 }
  0x1b   :  { %1981 = vmatpush3.bf16.msra.mxu0 %v2134_v7 }
  0x1c   :  { %1982 = vmatprep.subr.bf16.mxu0 %v2135_v8  ;;  %2059 = vmatpush3.bf16.msra.mxu1 %v2173_v22 }
  0x1d   :  { %2060 = vmatprep.subr.bf16.mxu1 %v2174_v38 }
  0x1f   :  { %1983 = vmatpush3.bf16.msra.mxu0 %v2135_v8 }
  0x20   :  { %2061 = vmatpush3.bf16.msra.mxu1 %v2174_v38 }
  0x21   :  { %2062 = vmatprep.subr.bf16.mxu1 %v2175_v40 }
  0x22   :  { %1985 = vmatmul.mubr.bf16.vlgmr.msra.gmra.mrb[0].mxu0 %v2137_v9 }
  0x23   :  { %1988 = vmatprep.mubr.bf16.mxu0 %v2138_v10 }
  0x24   :  { %2063 = vmatpush3.bf16.msra.mxu1 %v2175_v40 }
  0x2a   :  { %1989 = vmatmul.mubr.bf16.gmra.mrb[4].mxu0 %v2139_v11 }
  0x2b   :  { %1992 = vmatprep.mubr.bf16.mxu0 %v2140_v12 }
  0x32   :  { %1993 = vmatmul.mubr.bf16.gmra.mrb[8].mxu0 %v2141_v16 }
  0x33   :  { %1996 = vmatprep.mubr.bf16.mxu0 %v2142_v17 }
  0x3a   :  { %1997 = vmatmul.mubr.bf16.gmra.mrb[12].mxu0 %v2143_v20 }
  0x3b   :  { %2000 = vmatprep.mubr.bf16.mxu0 %v2144_v21 }
  0x42   :  { %2001 = vmatmul.mubr.bf16.gmra.mrb[16].mxu0 %v2145_v23 }
  0x43   :  { %2004 = vmatprep.mubr.bf16.mxu0 %v2146_v24 }
  0x4a   :  { %2005 = vmatmul.mubr.bf16.gmra.mrb[20].mxu0 %v2147_v25 }
  0x4b   :  { %2008 = vmatprep.mubr.bf16.mxu0 %v2148_v26 }
  0x52   :  { %2009 = vmatmul.mubr.bf16.gmra.mrb[24].mxu0 %v2149_v27 }
  0x53   :  { %2012 = vmatprep.mubr.bf16.mxu0 %v2150_v28 }
  0x5a   :  { %2013 = vmatmul.mubr.bf16.gmra.mrb[28].mxu0 %v2151_v29 }
  0x5b   :  { %2016 = vmatprep.mubr.bf16.mxu0 %v2152_v30 }
  0x62   :  { %2017 = vmatmul.mubr.bf16.gmra.mrb[32].mxu0 %v2153_v31 }
  0x63   :  { %2020 = vmatprep.mubr.bf16.mxu0 %v2154_v32 }
  0x6a   :  { %2021 = vmatmul.mubr.bf16.gmra.mrb[36].mxu0 %v2155_v33 }
  0x6b   :  { %2024 = vmatprep.mubr.bf16.mxu0 %v2156_v34 }
  0x72   :  { %2025 = vmatmul.mubr.bf16.gmra.mrb[40].mxu0 %v2157_v35 }
  0x73   :  { %2028 = vmatprep.mubr.bf16.mxu0 %v2158_v36 }
  0x7a   :  { %2029 = vmatmul.mubr.bf16.gmra.mrb[44].mxu0 %v2159_v37 }
  0x7b   :  { %2032 = vmatprep.mubr.bf16.mxu0 %v2160_v39 }
  0x82   :  { %2033 = vmatmul.mubr.bf16.gmra.mrb[48].mxu0 %v2161_v41 }
  0x83   :  { %2036 = vmatprep.mubr.bf16.mxu0 %v2162_v42 }
  0x8a   :  { %2037 = vmatmul.mubr.bf16.gmra.mrb[52].mxu0 %v2163_v43 }
  0x8b   :  { %2040 = vmatprep.mubr.bf16.mxu0 %v2164_v44 }
  0x92   :  { %2041 = vmatmul.mubr.bf16.gmra.mrb[56].mxu0 %v2165_v45 }
  0x93   :  { %2044 = vmatprep.mubr.bf16.mxu0 %v2166_v46 }
  0x9a   :  { %2045 = vmatmul.mubr.bf16.gmra.mrb[60].mxu0 %v2167_v47 }
  0xf5   :  { %v1986_v49 = vpop.f32.mrb[0].mxu0 }
  0xf6   :  { %v393_v50 = vadd.f32 %v1986_v49, %v2358_v48  ;;  %v384_v51 = vpop.f32.mrb[1].mxu0 }
  0xf7   :  { %v385_v52 = vadd.f32 %v2358_v48, %v384_v51  ;;  %v1987_v53 = vpop.f32.mrb[2].mxu0 }
  0xf8   :  { %v396_v54 = vadd.f32 %v1987_v53, %v2358_v48  ;;  %v387_v55 = vpop.f32.mrb[3].mxu0  ;;  %v641_v57 = vmax.f32 %v393_v50, 0.0 }
  0xf9   :  { %v388_v56 = vadd.f32 %v2358_v48, %v387_v55  ;;  %v639_v59 = vmax.f32 %v385_v52, 0.0 }
  0xfa   :  { %v642_v58 = vmax.f32 %v396_v54, 0.0 }
  0xfb   :  { %v640_v60 = vmax.f32 %v388_v56, 0.0 }
  0xfc   :  { %v704_v61 = vpack.c.bf16 %v642_v58, %v641_v57 }
  0xfd   :  { %v1990_v62 = vpop.f32.mrb[4].mxu0  ;;  %v703_v63 = vpack.c.bf16 %v640_v60, %v639_v59 }
  0xfe   :  { %1857 = vst [vmem:[%s2785_s5 + $0x8] sm:$0xff] %v704_v61   ;;  %v409_v0 = vadd.f32 %v1990_v62, %v2358_v48  ;;  %v400_v1 = vpop.f32.mrb[5].mxu0 }
  0xff   :  { %v401_v2 = vadd.f32 %v2358_v48, %v400_v1  ;;  %v1991_v3 = vpop.f32.mrb[6].mxu0  ;;  %1701 = vst [vmem:[%s2785_s5] sm:$0xff] %v703_v63   ;;  %2064 = vmatprep.mubr.bf16.mxu1 %v703_v63 }
 0x100   :  { %v412_v4 = vadd.f32 %v1991_v3, %v2358_v48  ;;  %v403_v5 = vpop.f32.mrb[7].mxu0  ;;  %2065 = vmatmul.mubr.bf16.vlgmr.msra.gmra.mrb[0].mxu1 %v704_v61  ;;  %v645_v7 = vmax.f32 %v409_v0, 0.0 }
 0x101   :  { %v404_v6 = vadd.f32 %v2358_v48, %v403_v5  ;;  %v643_v9 = vmax.f32 %v401_v2, 0.0 }
 0x102   :  { %v646_v8 = vmax.f32 %v412_v4, 0.0 }
 0x103   :  { %v644_v10 = vmax.f32 %v404_v6, 0.0 }
 0x104   :  { %v706_v11 = vpack.c.bf16 %v646_v8, %v645_v7 }
 0x105   :  { %v705_v12 = vpack.c.bf16 %v644_v10, %v643_v9  ;;  %v1994_v13 = vpop.f32.mrb[8].mxu0 }
 0x106   :  { %1859 = vst [vmem:[%s2785_s5 + $0x18] sm:$0xff] %v706_v11   ;;  %v425_v14 = vadd.f32 %v1994_v13, %v2358_v48  ;;  %v416_v15 = vpop.f32.mrb[9].mxu0 }
 0x107   :  { %1858 = vst [vmem:[%s2785_s5 + $0x10] sm:$0xff] %v705_v12   ;;  %v417_v16 = vadd.f32 %v2358_v48, %v416_v15  ;;  %v1995_v17 = vpop.f32.mrb[10].mxu0  ;;  %2068 = vmatprep.mubr.bf16.mxu1 %v705_v12 }
 0x108   :  { %v428_v18 = vadd.f32 %v1995_v17, %v2358_v48  ;;  %v419_v19 = vpop.f32.mrb[11].mxu0  ;;  %2069 = vmatmul.mubr.bf16.gmra.mrb[4].mxu1 %v706_v11  ;;  %v649_v21 = vmax.f32 %v425_v14, 0.0 }
 0x109   :  { %v420_v20 = vadd.f32 %v2358_v48, %v419_v19  ;;  %v647_v23 = vmax.f32 %v417_v16, 0.0 }
 0x10a   :  { %v650_v22 = vmax.f32 %v428_v18, 0.0 }
 0x10b   :  { %v648_v24 = vmax.f32 %v420_v20, 0.0 }
 0x10c   :  { %v708_v25 = vpack.c.bf16 %v650_v22, %v649_v21 }
 0x10d   :  { %v707_v26 = vpack.c.bf16 %v648_v24, %v647_v23  ;;  %v1998_v27 = vpop.f32.mrb[12].mxu0 }
 0x10e   :  { %1861 = vst [vmem:[%s2785_s5 + $0x28] sm:$0xff] %v708_v25   ;;  %v441_v28 = vadd.f32 %v1998_v27, %v2358_v48  ;;  %v432_v29 = vpop.f32.mrb[13].mxu0 }
 0x10f   :  { %1860 = vst [vmem:[%s2785_s5 + $0x20] sm:$0xff] %v707_v26   ;;  %v433_v30 = vadd.f32 %v2358_v48, %v432_v29  ;;  %v1999_v31 = vpop.f32.mrb[14].mxu0  ;;  %2072 = vmatprep.mubr.bf16.mxu1 %v707_v26 }
 0x110   :  { %v444_v32 = vadd.f32 %v1999_v31, %v2358_v48  ;;  %v435_v33 = vpop.f32.mrb[15].mxu0  ;;  %2073 = vmatmul.mubr.bf16.gmra.mrb[8].mxu1 %v708_v25  ;;  %v653_v35 = vmax.f32 %v441_v28, 0.0 }
 0x111   :  { %v436_v34 = vadd.f32 %v2358_v48, %v435_v33  ;;  %v651_v37 = vmax.f32 %v433_v30, 0.0 }
 0x112   :  { %v654_v36 = vmax.f32 %v444_v32, 0.0 }
 0x113   :  { %v652_v38 = vmax.f32 %v436_v34, 0.0 }
 0x114   :  { %v710_v39 = vpack.c.bf16 %v654_v36, %v653_v35 }
 0x115   :  { %v709_v40 = vpack.c.bf16 %v652_v38, %v651_v37  ;;  %v2002_v41 = vpop.f32.mrb[16].mxu0 }
 0x116   :  { %1863 = vst [vmem:[%s2785_s5 + $0x38] sm:$0xff] %v710_v39   ;;  %v457_v42 = vadd.f32 %v2002_v41, %v2358_v48  ;;  %v448_v43 = vpop.f32.mrb[17].mxu0 }
 0x117   :  { %1862 = vst [vmem:[%s2785_s5 + $0x30] sm:$0xff] %v709_v40   ;;  %v449_v44 = vadd.f32 %v2358_v48, %v448_v43  ;;  %v2003_v45 = vpop.f32.mrb[18].mxu0  ;;  %2076 = vmatprep.mubr.bf16.mxu1 %v709_v40 }
 0x118   :  { %v460_v46 = vadd.f32 %v2003_v45, %v2358_v48  ;;  %v451_v47 = vpop.f32.mrb[19].mxu0  ;;  %2077 = vmatmul.mubr.bf16.gmra.mrb[12].mxu1 %v710_v39  ;;  %v657_v50 = vmax.f32 %v457_v42, 0.0 }
 0x119   :  { %v452_v49 = vadd.f32 %v2358_v48, %v451_v47  ;;  %v655_v52 = vmax.f32 %v449_v44, 0.0 }
 0x11a   :  { %v658_v51 = vmax.f32 %v460_v46, 0.0 }
 0x11b   :  { %v656_v53 = vmax.f32 %v452_v49, 0.0 }
 0x11c   :  { %v712_v54 = vpack.c.bf16 %v658_v51, %v657_v50 }
 0x11d   :  { %v711_v55 = vpack.c.bf16 %v656_v53, %v655_v52  ;;  %v2006_v56 = vpop.f32.mrb[20].mxu0 }
 0x11e   :  { %1865 = vst [vmem:[%s2785_s5 + $0x48] sm:$0xff] %v712_v54   ;;  %v473_v57 = vadd.f32 %v2006_v56, %v2358_v48  ;;  %v464_v58 = vpop.f32.mrb[21].mxu0 }
 0x11f   :  { %1864 = vst [vmem:[%s2785_s5 + $0x40] sm:$0xff] %v711_v55   ;;  %v465_v59 = vadd.f32 %v2358_v48, %v464_v58  ;;  %v2007_v60 = vpop.f32.mrb[22].mxu0  ;;  %2080 = vmatprep.mubr.bf16.mxu1 %v711_v55 }
 0x120   :  { %v476_v61 = vadd.f32 %v2007_v60, %v2358_v48  ;;  %v467_v62 = vpop.f32.mrb[23].mxu0  ;;  %2081 = vmatmul.mubr.bf16.gmra.mrb[16].mxu1 %v712_v54  ;;  %v661_v0 = vmax.f32 %v473_v57, 0.0 }
 0x121   :  { %v468_v63 = vadd.f32 %v2358_v48, %v467_v62  ;;  %v659_v2 = vmax.f32 %v465_v59, 0.0 }
 0x122   :  { %v662_v1 = vmax.f32 %v476_v61, 0.0 }
 0x123   :  { %v660_v3 = vmax.f32 %v468_v63, 0.0 }
 0x124   :  { %v714_v4 = vpack.c.bf16 %v662_v1, %v661_v0 }
 0x125   :  { %v713_v5 = vpack.c.bf16 %v660_v3, %v659_v2  ;;  %v2010_v6 = vpop.f32.mrb[24].mxu0 }
 0x126   :  { %1867 = vst [vmem:[%s2785_s5 + $0x58] sm:$0xff] %v714_v4   ;;  %v489_v7 = vadd.f32 %v2010_v6, %v2358_v48  ;;  %v480_v8 = vpop.f32.mrb[25].mxu0 }
 0x127   :  { %1866 = vst [vmem:[%s2785_s5 + $0x50] sm:$0xff] %v713_v5   ;;  %v481_v9 = vadd.f32 %v2358_v48, %v480_v8  ;;  %v2011_v10 = vpop.f32.mrb[26].mxu0  ;;  %2084 = vmatprep.mubr.bf16.mxu1 %v713_v5 }
 0x128   :  { %v492_v11 = vadd.f32 %v2011_v10, %v2358_v48  ;;  %v483_v12 = vpop.f32.mrb[27].mxu0  ;;  %2085 = vmatmul.mubr.bf16.gmra.mrb[20].mxu1 %v714_v4  ;;  %v665_v14 = vmax.f32 %v489_v7, 0.0 }
 0x129   :  { %v484_v13 = vadd.f32 %v2358_v48, %v483_v12  ;;  %v663_v16 = vmax.f32 %v481_v9, 0.0 }
 0x12a   :  { %v666_v15 = vmax.f32 %v492_v11, 0.0 }
 0x12b   :  { %v664_v17 = vmax.f32 %v484_v13, 0.0 }
 0x12c   :  { %v716_v18 = vpack.c.bf16 %v666_v15, %v665_v14 }
 0x12d   :  { %v715_v19 = vpack.c.bf16 %v664_v17, %v663_v16  ;;  %v2014_v20 = vpop.f32.mrb[28].mxu0 }
 0x12e   :  { %1869 = vst [vmem:[%s2785_s5 + $0x68] sm:$0xff] %v716_v18   ;;  %v505_v21 = vadd.f32 %v2014_v20, %v2358_v48  ;;  %v496_v22 = vpop.f32.mrb[29].mxu0 }
 0x12f   :  { %1868 = vst [vmem:[%s2785_s5 + $0x60] sm:$0xff] %v715_v19   ;;  %v497_v23 = vadd.f32 %v2358_v48, %v496_v22  ;;  %v2015_v24 = vpop.f32.mrb[30].mxu0  ;;  %2088 = vmatprep.mubr.bf16.mxu1 %v715_v19 }
 0x130   :  { %v508_v25 = vadd.f32 %v2015_v24, %v2358_v48  ;;  %v499_v26 = vpop.f32.mrb[31].mxu0  ;;  %2089 = vmatmul.mubr.bf16.gmra.mrb[24].mxu1 %v716_v18  ;;  %v669_v28 = vmax.f32 %v505_v21, 0.0 }
 0x131   :  { %v500_v27 = vadd.f32 %v2358_v48, %v499_v26  ;;  %v667_v30 = vmax.f32 %v497_v23, 0.0 }
 0x132   :  { %v670_v29 = vmax.f32 %v508_v25, 0.0 }
 0x133   :  { %v668_v31 = vmax.f32 %v500_v27, 0.0 }
 0x134   :  { %v718_v32 = vpack.c.bf16 %v670_v29, %v669_v28 }
 0x135   :  { %v717_v33 = vpack.c.bf16 %v668_v31, %v667_v30  ;;  %v2018_v34 = vpop.f32.mrb[32].mxu0 }
 0x136   :  { %1871 = vst [vmem:[%s2785_s5 + $0x78] sm:$0xff] %v718_v32   ;;  %v521_v35 = vadd.f32 %v2018_v34, %v2358_v48  ;;  %v512_v36 = vpop.f32.mrb[33].mxu0 }
 0x137   :  { %1870 = vst [vmem:[%s2785_s5 + $0x70] sm:$0xff] %v717_v33   ;;  %v513_v37 = vadd.f32 %v2358_v48, %v512_v36  ;;  %v2019_v38 = vpop.f32.mrb[34].mxu0  ;;  %2092 = vmatprep.mubr.bf16.mxu1 %v717_v33 }
 0x138   :  { %v524_v39 = vadd.f32 %v2019_v38, %v2358_v48  ;;  %v515_v40 = vpop.f32.mrb[35].mxu0  ;;  %2093 = vmatmul.mubr.bf16.gmra.mrb[28].mxu1 %v718_v32  ;;  %v673_v42 = vmax.f32 %v521_v35, 0.0 }
 0x139   :  { %v516_v41 = vadd.f32 %v2358_v48, %v515_v40  ;;  %v671_v44 = vmax.f32 %v513_v37, 0.0 }
 0x13a   :  { %v674_v43 = vmax.f32 %v524_v39, 0.0 }
 0x13b   :  { %v672_v45 = vmax.f32 %v516_v41, 0.0 }
 0x13c   :  { %v720_v46 = vpack.c.bf16 %v674_v43, %v673_v42 }
 0x13d   :  { %v719_v47 = vpack.c.bf16 %v672_v45, %v671_v44  ;;  %v2022_v49 = vpop.f32.mrb[36].mxu0 }
 0x13e   :  { %1873 = vst [vmem:[%s2785_s5 + $0x88] sm:$0xff] %v720_v46   ;;  %v537_v50 = vadd.f32 %v2022_v49, %v2358_v48  ;;  %v528_v51 = vpop.f32.mrb[37].mxu0 }
 0x13f   :  { %1872 = vst [vmem:[%s2785_s5 + $0x80] sm:$0xff] %v719_v47   ;;  %v529_v52 = vadd.f32 %v2358_v48, %v528_v51  ;;  %v2023_v53 = vpop.f32.mrb[38].mxu0  ;;  %2096 = vmatprep.mubr.bf16.mxu1 %v719_v47 }
 0x140   :  { %v540_v54 = vadd.f32 %v2023_v53, %v2358_v48  ;;  %v531_v55 = vpop.f32.mrb[39].mxu0  ;;  %2097 = vmatmul.mubr.bf16.gmra.mrb[32].mxu1 %v720_v46  ;;  %v677_v57 = vmax.f32 %v537_v50, 0.0 }
 0x141   :  { %v532_v56 = vadd.f32 %v2358_v48, %v531_v55  ;;  %v675_v59 = vmax.f32 %v529_v52, 0.0 }
 0x142   :  { %v678_v58 = vmax.f32 %v540_v54, 0.0 }
 0x143   :  { %v676_v60 = vmax.f32 %v532_v56, 0.0 }
 0x144   :  { %v722_v61 = vpack.c.bf16 %v678_v58, %v677_v57 }
 0x145   :  { %v721_v62 = vpack.c.bf16 %v676_v60, %v675_v59  ;;  %v2026_v63 = vpop.f32.mrb[40].mxu0 }
 0x146   :  { %1875 = vst [vmem:[%s2785_s5 + $0x98] sm:$0xff] %v722_v61   ;;  %v553_v0 = vadd.f32 %v2026_v63, %v2358_v48  ;;  %v544_v1 = vpop.f32.mrb[41].mxu0 }
 0x147   :  { %1874 = vst [vmem:[%s2785_s5 + $0x90] sm:$0xff] %v721_v62   ;;  %v545_v2 = vadd.f32 %v2358_v48, %v544_v1  ;;  %v2027_v3 = vpop.f32.mrb[42].mxu0  ;;  %2100 = vmatprep.mubr.bf16.mxu1 %v721_v62 }
 0x148   :  { %v556_v4 = vadd.f32 %v2027_v3, %v2358_v48  ;;  %v547_v5 = vpop.f32.mrb[43].mxu0  ;;  %2101 = vmatmul.mubr.bf16.gmra.mrb[36].mxu1 %v722_v61  ;;  %v681_v7 = vmax.f32 %v553_v0, 0.0 }
 0x149   :  { %v548_v6 = vadd.f32 %v2358_v48, %v547_v5  ;;  %v679_v9 = vmax.f32 %v545_v2, 0.0 }
 0x14a   :  { %v682_v8 = vmax.f32 %v556_v4, 0.0 }
 0x14b   :  { %v680_v10 = vmax.f32 %v548_v6, 0.0 }
 0x14c   :  { %v724_v11 = vpack.c.bf16 %v682_v8, %v681_v7 }
 0x14d   :  { %v723_v12 = vpack.c.bf16 %v680_v10, %v679_v9  ;;  %v2030_v13 = vpop.f32.mrb[44].mxu0 }
 0x14e   :  { %1877 = vst [vmem:[%s2785_s5 + $0xa8] sm:$0xff] %v724_v11   ;;  %v569_v14 = vadd.f32 %v2030_v13, %v2358_v48  ;;  %v560_v15 = vpop.f32.mrb[45].mxu0 }
 0x14f   :  { %1876 = vst [vmem:[%s2785_s5 + $0xa0] sm:$0xff] %v723_v12   ;;  %v561_v16 = vadd.f32 %v2358_v48, %v560_v15  ;;  %v2031_v17 = vpop.f32.mrb[46].mxu0  ;;  %2104 = vmatprep.mubr.bf16.mxu1 %v723_v12 }
 0x150   :  { %v572_v18 = vadd.f32 %v2031_v17, %v2358_v48  ;;  %v563_v19 = vpop.f32.mrb[47].mxu0  ;;  %2105 = vmatmul.mubr.bf16.gmra.mrb[40].mxu1 %v724_v11  ;;  %v685_v21 = vmax.f32 %v569_v14, 0.0 }
 0x151   :  { %v564_v20 = vadd.f32 %v2358_v48, %v563_v19  ;;  %v683_v23 = vmax.f32 %v561_v16, 0.0 }
 0x152   :  { %v686_v22 = vmax.f32 %v572_v18, 0.0 }
 0x153   :  { %v684_v24 = vmax.f32 %v564_v20, 0.0 }
 0x154   :  { %v726_v25 = vpack.c.bf16 %v686_v22, %v685_v21 }
 0x155   :  { %v725_v26 = vpack.c.bf16 %v684_v24, %v683_v23  ;;  %v2034_v27 = vpop.f32.mrb[48].mxu0 }
 0x156   :  { %1879 = vst [vmem:[%s2785_s5 + $0xb8] sm:$0xff] %v726_v25   ;;  %v585_v28 = vadd.f32 %v2034_v27, %v2358_v48  ;;  %v576_v29 = vpop.f32.mrb[49].mxu0 }
 0x157   :  { %1878 = vst [vmem:[%s2785_s5 + $0xb0] sm:$0xff] %v725_v26   ;;  %v577_v30 = vadd.f32 %v2358_v48, %v576_v29  ;;  %v2035_v31 = vpop.f32.mrb[50].mxu0  ;;  %2108 = vmatprep.mubr.bf16.mxu1 %v725_v26 }
 0x158   :  { %v588_v32 = vadd.f32 %v2035_v31, %v2358_v48  ;;  %v579_v33 = vpop.f32.mrb[51].mxu0  ;;  %2109 = vmatmul.mubr.bf16.gmra.mrb[44].mxu1 %v726_v25  ;;  %v689_v35 = vmax.f32 %v585_v28, 0.0 }
 0x159   :  { %v580_v34 = vadd.f32 %v2358_v48, %v579_v33  ;;  %v687_v37 = vmax.f32 %v577_v30, 0.0 }
 0x15a   :  { %v690_v36 = vmax.f32 %v588_v32, 0.0 }
 0x15b   :  { %v688_v38 = vmax.f32 %v580_v34, 0.0 }
 0x15c   :  { %v728_v39 = vpack.c.bf16 %v690_v36, %v689_v35 }
 0x15d   :  { %v727_v40 = vpack.c.bf16 %v688_v38, %v687_v37  ;;  %v2038_v41 = vpop.f32.mrb[52].mxu0 }
 0x15e   :  { %1881 = vst [vmem:[%s2785_s5 + $0xc8] sm:$0xff] %v728_v39   ;;  %v601_v42 = vadd.f32 %v2038_v41, %v2358_v48  ;;  %v592_v43 = vpop.f32.mrb[53].mxu0 }
 0x15f   :  { %1880 = vst [vmem:[%s2785_s5 + $0xc0] sm:$0xff] %v727_v40   ;;  %v593_v44 = vadd.f32 %v2358_v48, %v592_v43  ;;  %v2039_v45 = vpop.f32.mrb[54].mxu0  ;;  %2112 = vmatprep.mubr.bf16.mxu1 %v727_v40 }
 0x160   :  { %v604_v46 = vadd.f32 %v2039_v45, %v2358_v48  ;;  %v595_v47 = vpop.f32.mrb[55].mxu0  ;;  %2113 = vmatmul.mubr.bf16.gmra.mrb[48].mxu1 %v728_v39  ;;  %v693_v50 = vmax.f32 %v601_v42, 0.0 }
 0x161   :  { %v596_v49 = vadd.f32 %v2358_v48, %v595_v47  ;;  %v691_v52 = vmax.f32 %v593_v44, 0.0 }
 0x162   :  { %v694_v51 = vmax.f32 %v604_v46, 0.0 }
 0x163   :  { %v692_v53 = vmax.f32 %v596_v49, 0.0 }
 0x164   :  { %v730_v54 = vpack.c.bf16 %v694_v51, %v693_v50 }
 0x165   :  { %v729_v55 = vpack.c.bf16 %v692_v53, %v691_v52  ;;  %v2042_v56 = vpop.f32.mrb[56].mxu0 }
 0x166   :  { %1883 = vst [vmem:[%s2785_s5 + $0xd8] sm:$0xff] %v730_v54   ;;  %v617_v57 = vadd.f32 %v2042_v56, %v2358_v48  ;;  %v608_v58 = vpop.f32.mrb[57].mxu0 }
 0x167   :  { %1882 = vst [vmem:[%s2785_s5 + $0xd0] sm:$0xff] %v729_v55   ;;  %v609_v59 = vadd.f32 %v2358_v48, %v608_v58  ;;  %v2043_v60 = vpop.f32.mrb[58].mxu0  ;;  %2116 = vmatprep.mubr.bf16.mxu1 %v729_v55 }
 0x168   :  { %v620_v61 = vadd.f32 %v2043_v60, %v2358_v48  ;;  %v611_v62 = vpop.f32.mrb[59].mxu0  ;;  %2117 = vmatmul.mubr.bf16.gmra.mrb[52].mxu1 %v730_v54  ;;  %v697_v0 = vmax.f32 %v617_v57, 0.0 }
 0x169   :  { %v612_v63 = vadd.f32 %v2358_v48, %v611_v62  ;;  %v695_v2 = vmax.f32 %v609_v59, 0.0 }
 0x16a   :  { %v698_v1 = vmax.f32 %v620_v61, 0.0 }
 0x16b   :  { %v696_v3 = vmax.f32 %v612_v63, 0.0 }
 0x16c   :  { %v732_v4 = vpack.c.bf16 %v698_v1, %v697_v0 }
 0x16d   :  { %v731_v5 = vpack.c.bf16 %v696_v3, %v695_v2  ;;  %v2046_v6 = vpop.f32.mrb[60].mxu0 }
 0x16e   :  { %1885 = vst [vmem:[%s2785_s5 + $0xe8] sm:$0xff] %v732_v4   ;;  %v633_v7 = vadd.f32 %v2046_v6, %v2358_v48  ;;  %v624_v8 = vpop.f32.mrb[61].mxu0 }
 0x16f   :  { %1884 = vst [vmem:[%s2785_s5 + $0xe0] sm:$0xff] %v731_v5   ;;  %v625_v9 = vadd.f32 %v2358_v48, %v624_v8  ;;  %v2047_v10 = vpop.f32.mrb[62].mxu0  ;;  %2120 = vmatprep.mubr.bf16.mxu1 %v731_v5 }
 0x170   :  { %v636_v11 = vadd.f32 %v2047_v10, %v2358_v48  ;;  %v627_v12 = vpop.f32.mrb[63].mxu0  ;;  %2121 = vmatmul.mubr.bf16.gmra.mrb[56].mxu1 %v732_v4  ;;  %v701_v14 = vmax.f32 %v633_v7, 0.0 }
 0x171   :  { %v628_v13 = vadd.f32 %v2358_v48, %v627_v12  ;;  %v699_v16 = vmax.f32 %v625_v9, 0.0  ;;  %v2523_v48 = vld [vmem:[%s2786_s4] ss:$0 sm:$0xff] }
 0x172   :  { %v702_v15 = vmax.f32 %v636_v11, 0.0 }
 0x173   :  { %v700_v17 = vmax.f32 %v628_v13, 0.0 }
 0x174   :  { %v734_v18 = vpack.c.bf16 %v702_v15, %v701_v14 }
 0x175   :  { %v733_v19 = vpack.c.bf16 %v700_v17, %v699_v16 }
 0x176   :  { %1887 = vst [vmem:[%s2785_s5 + $0xf8] sm:$0xff] %v734_v18  }
 0x177   :  { %1886 = vst [vmem:[%s2785_s5 + $0xf0] sm:$0xff] %v733_v19   ;;  %2124 = vmatprep.mubr.bf16.mxu1 %v733_v19 }
 0x178   :  { %2125 = vmatmul.mubr.bf16.gmra.mrb[60].mxu1 %v734_v18 }
 0x1d3   :  { %v2066_v20 = vpop.f32.mrb[0].mxu1 }
 0x1d4   :  { %v1137_v21 = vadd.f32 %v2066_v20, %v2523_v48  ;;  %v1128_v22 = vpop.f32.mrb[1].mxu1 }
 0x1d5   :  { %v1129_v23 = vadd.f32 %v2523_v48, %v1128_v22  ;;  %v2067_v24 = vpop.f32.mrb[2].mxu1 }
 0x1d6   :  { %v1385_v25 = vmax.f32 %v1137_v21, 0.0  ;;  %v1140_v26 = vadd.f32 %v2067_v24, %v2523_v48  ;;  %v1131_v27 = vpop.f32.mrb[3].mxu1 }
 0x1d7   :  { %v1383_v28 = vmax.f32 %v1129_v23, 0.0  ;;  %v1132_v29 = vadd.f32 %v2523_v48, %v1131_v27 }
 0x1d8   :  { %1449 = vst [vmem:[%s2787_s6 + $0x10] sm:$0xff] %v1385_v25  ;;  %v1386_v30 = vmax.f32 %v1140_v26, 0.0 }
 0x1d9   :  { %1447 = vst [vmem:[%s2787_s6] sm:$0xff] %v1383_v28  ;;  %v1384_v31 = vmax.f32 %v1132_v29, 0.0 }
 0x1da   :  { %1450 = vst [vmem:[%s2787_s6 + $0x18] sm:$0xff] %v1386_v30 }
 0x1db   :  { %1448 = vst [vmem:[%s2787_s6 + $0x8] sm:$0xff] %v1384_v31  ;;  %v2070_v32 = vpop.f32.mrb[4].mxu1 }
 0x1dc   :  { %v1153_v33 = vadd.f32 %v2070_v32, %v2523_v48  ;;  %v1144_v34 = vpop.f32.mrb[5].mxu1 }
 0x1dd   :  { %v1145_v35 = vadd.f32 %v2523_v48, %v1144_v34  ;;  %v2071_v36 = vpop.f32.mrb[6].mxu1 }
 0x1de   :  { %v1389_v37 = vmax.f32 %v1153_v33, 0.0  ;;  %v1156_v38 = vadd.f32 %v2071_v36, %v2523_v48  ;;  %v1147_v39 = vpop.f32.mrb[7].mxu1 }
 0x1df   :  { %v1387_v40 = vmax.f32 %v1145_v35, 0.0  ;;  %v1148_v41 = vadd.f32 %v2523_v48, %v1147_v39 }
 0x1e0   :  { %1453 = vst [vmem:[%s2787_s6 + $0x30] sm:$0xff] %v1389_v37  ;;  %v1390_v42 = vmax.f32 %v1156_v38, 0.0 }
 0x1e1   :  { %1451 = vst [vmem:[%s2787_s6 + $0x20] sm:$0xff] %v1387_v40  ;;  %v1388_v43 = vmax.f32 %v1148_v41, 0.0 }
 0x1e2   :  { %1454 = vst [vmem:[%s2787_s6 + $0x38] sm:$0xff] %v1390_v42 }
 0x1e3   :  { %1452 = vst [vmem:[%s2787_s6 + $0x28] sm:$0xff] %v1388_v43  ;;  %v2074_v44 = vpop.f32.mrb[8].mxu1 }
 0x1e4   :  { %v1169_v45 = vadd.f32 %v2074_v44, %v2523_v48  ;;  %v1160_v46 = vpop.f32.mrb[9].mxu1 }
 0x1e5   :  { %v1161_v47 = vadd.f32 %v2523_v48, %v1160_v46  ;;  %v2075_v49 = vpop.f32.mrb[10].mxu1 }
 0x1e6   :  { %v1393_v50 = vmax.f32 %v1169_v45, 0.0  ;;  %v1172_v51 = vadd.f32 %v2075_v49, %v2523_v48  ;;  %v1163_v52 = vpop.f32.mrb[11].mxu1 }
 0x1e7   :  { %v1391_v53 = vmax.f32 %v1161_v47, 0.0  ;;  %v1164_v54 = vadd.f32 %v2523_v48, %v1163_v52 }
 0x1e8   :  { %1457 = vst [vmem:[%s2787_s6 + $0x50] sm:$0xff] %v1393_v50  ;;  %v1394_v55 = vmax.f32 %v1172_v51, 0.0 }
 0x1e9   :  { %1455 = vst [vmem:[%s2787_s6 + $0x40] sm:$0xff] %v1391_v53  ;;  %v1392_v56 = vmax.f32 %v1164_v54, 0.0 }
 0x1ea   :  { %1458 = vst [vmem:[%s2787_s6 + $0x58] sm:$0xff] %v1394_v55 }
 0x1eb   :  { %1456 = vst [vmem:[%s2787_s6 + $0x48] sm:$0xff] %v1392_v56  ;;  %v2078_v57 = vpop.f32.mrb[12].mxu1 }
 0x1ec   :  { %v1185_v58 = vadd.f32 %v2078_v57, %v2523_v48  ;;  %v1176_v59 = vpop.f32.mrb[13].mxu1 }
 0x1ed   :  { %v1177_v60 = vadd.f32 %v2523_v48, %v1176_v59  ;;  %v2079_v61 = vpop.f32.mrb[14].mxu1 }
 0x1ee   :  { %v1397_v62 = vmax.f32 %v1185_v58, 0.0  ;;  %v1188_v63 = vadd.f32 %v2079_v61, %v2523_v48  ;;  %v1179_v0 = vpop.f32.mrb[15].mxu1 }
 0x1ef   :  { %v1395_v1 = vmax.f32 %v1177_v60, 0.0  ;;  %v1180_v2 = vadd.f32 %v2523_v48, %v1179_v0 }
 0x1f0   :  { %1461 = vst [vmem:[%s2787_s6 + $0x70] sm:$0xff] %v1397_v62  ;;  %v1398_v3 = vmax.f32 %v1188_v63, 0.0 }
 0x1f1   :  { %1459 = vst [vmem:[%s2787_s6 + $0x60] sm:$0xff] %v1395_v1  ;;  %v1396_v4 = vmax.f32 %v1180_v2, 0.0 }
 0x1f2   :  { %1462 = vst [vmem:[%s2787_s6 + $0x78] sm:$0xff] %v1398_v3 }
 0x1f3   :  { %1460 = vst [vmem:[%s2787_s6 + $0x68] sm:$0xff] %v1396_v4  ;;  %v2082_v5 = vpop.f32.mrb[16].mxu1 }
 0x1f4   :  { %v1201_v6 = vadd.f32 %v2082_v5, %v2523_v48  ;;  %v1192_v7 = vpop.f32.mrb[17].mxu1 }
 0x1f5   :  { %v1193_v8 = vadd.f32 %v2523_v48, %v1192_v7  ;;  %v2083_v9 = vpop.f32.mrb[18].mxu1 }
 0x1f6   :  { %v1401_v10 = vmax.f32 %v1201_v6, 0.0  ;;  %v1204_v11 = vadd.f32 %v2083_v9, %v2523_v48  ;;  %v1195_v12 = vpop.f32.mrb[19].mxu1 }
 0x1f7   :  { %v1399_v13 = vmax.f32 %v1193_v8, 0.0  ;;  %v1196_v14 = vadd.f32 %v2523_v48, %v1195_v12 }
 0x1f8   :  { %1465 = vst [vmem:[%s2787_s6 + $0x90] sm:$0xff] %v1401_v10  ;;  %v1402_v15 = vmax.f32 %v1204_v11, 0.0 }
 0x1f9   :  { %1463 = vst [vmem:[%s2787_s6 + $0x80] sm:$0xff] %v1399_v13  ;;  %v1400_v16 = vmax.f32 %v1196_v14, 0.0 }
 0x1fa   :  { %1466 = vst [vmem:[%s2787_s6 + $0x98] sm:$0xff] %v1402_v15 }
 0x1fb   :  { %1464 = vst [vmem:[%s2787_s6 + $0x88] sm:$0xff] %v1400_v16  ;;  %v2086_v17 = vpop.f32.mrb[20].mxu1 }
 0x1fc   :  { %v1217_v18 = vadd.f32 %v2086_v17, %v2523_v48  ;;  %v1208_v19 = vpop.f32.mrb[21].mxu1 }
 0x1fd   :  { %v1209_v20 = vadd.f32 %v2523_v48, %v1208_v19  ;;  %v2087_v21 = vpop.f32.mrb[22].mxu1 }
 0x1fe   :  { %v1405_v22 = vmax.f32 %v1217_v18, 0.0  ;;  %v1220_v23 = vadd.f32 %v2087_v21, %v2523_v48  ;;  %v1211_v24 = vpop.f32.mrb[23].mxu1 }
 0x1ff   :  { %v1403_v25 = vmax.f32 %v1209_v20, 0.0  ;;  %v1212_v26 = vadd.f32 %v2523_v48, %v1211_v24 }
 0x200   :  { %1469 = vst [vmem:[%s2787_s6 + $0xb0] sm:$0xff] %v1405_v22  ;;  %v1406_v27 = vmax.f32 %v1220_v23, 0.0 }
 0x201   :  { %1467 = vst [vmem:[%s2787_s6 + $0xa0] sm:$0xff] %v1403_v25  ;;  %v1404_v28 = vmax.f32 %v1212_v26, 0.0 }
 0x202   :  { %1470 = vst [vmem:[%s2787_s6 + $0xb8] sm:$0xff] %v1406_v27 }
 0x203   :  { %1468 = vst [vmem:[%s2787_s6 + $0xa8] sm:$0xff] %v1404_v28  ;;  %v2090_v29 = vpop.f32.mrb[24].mxu1 }
 0x204   :  { %v1233_v30 = vadd.f32 %v2090_v29, %v2523_v48  ;;  %v1224_v31 = vpop.f32.mrb[25].mxu1 }
 0x205   :  { %v1225_v32 = vadd.f32 %v2523_v48, %v1224_v31  ;;  %v2091_v33 = vpop.f32.mrb[26].mxu1 }
 0x206   :  { %v1409_v34 = vmax.f32 %v1233_v30, 0.0  ;;  %v1236_v35 = vadd.f32 %v2091_v33, %v2523_v48  ;;  %v1227_v36 = vpop.f32.mrb[27].mxu1 }
 0x207   :  { %v1407_v37 = vmax.f32 %v1225_v32, 0.0  ;;  %v1228_v38 = vadd.f32 %v2523_v48, %v1227_v36 }
 0x208   :  { %1473 = vst [vmem:[%s2787_s6 + $0xd0] sm:$0xff] %v1409_v34  ;;  %v1410_v39 = vmax.f32 %v1236_v35, 0.0 }
 0x209   :  { %1471 = vst [vmem:[%s2787_s6 + $0xc0] sm:$0xff] %v1407_v37  ;;  %v1408_v40 = vmax.f32 %v1228_v38, 0.0 }
 0x20a   :  { %1474 = vst [vmem:[%s2787_s6 + $0xd8] sm:$0xff] %v1410_v39 }
 0x20b   :  { %1472 = vst [vmem:[%s2787_s6 + $0xc8] sm:$0xff] %v1408_v40  ;;  %v2094_v41 = vpop.f32.mrb[28].mxu1 }
 0x20c   :  { %v1249_v42 = vadd.f32 %v2094_v41, %v2523_v48  ;;  %v1240_v43 = vpop.f32.mrb[29].mxu1 }
 0x20d   :  { %v1241_v44 = vadd.f32 %v2523_v48, %v1240_v43  ;;  %v2095_v45 = vpop.f32.mrb[30].mxu1 }
 0x20e   :  { %v1413_v46 = vmax.f32 %v1249_v42, 0.0  ;;  %v1252_v47 = vadd.f32 %v2095_v45, %v2523_v48  ;;  %v1243_v49 = vpop.f32.mrb[31].mxu1 }
 0x20f   :  { %v1411_v50 = vmax.f32 %v1241_v44, 0.0  ;;  %v1244_v51 = vadd.f32 %v2523_v48, %v1243_v49 }
 0x210   :  { %1477 = vst [vmem:[%s2787_s6 + $0xf0] sm:$0xff] %v1413_v46  ;;  %v1414_v52 = vmax.f32 %v1252_v47, 0.0 }
 0x211   :  { %1475 = vst [vmem:[%s2787_s6 + $0xe0] sm:$0xff] %v1411_v50  ;;  %v1412_v53 = vmax.f32 %v1244_v51, 0.0 }
 0x212   :  { %1478 = vst [vmem:[%s2787_s6 + $0xf8] sm:$0xff] %v1414_v52 }
 0x213   :  { %1476 = vst [vmem:[%s2787_s6 + $0xe8] sm:$0xff] %v1412_v53  ;;  %v2098_v54 = vpop.f32.mrb[32].mxu1 }
 0x214   :  { %v1265_v55 = vadd.f32 %v2098_v54, %v2523_v48  ;;  %v1256_v56 = vpop.f32.mrb[33].mxu1 }
 0x215   :  { %v1257_v57 = vadd.f32 %v2523_v48, %v1256_v56  ;;  %v2099_v58 = vpop.f32.mrb[34].mxu1 }
 0x216   :  { %v1417_v59 = vmax.f32 %v1265_v55, 0.0  ;;  %v1268_v60 = vadd.f32 %v2099_v58, %v2523_v48  ;;  %v1259_v61 = vpop.f32.mrb[35].mxu1 }
 0x217   :  { %v1415_v62 = vmax.f32 %v1257_v57, 0.0  ;;  %v1260_v63 = vadd.f32 %v2523_v48, %v1259_v61 }
 0x218   :  { %1481 = vst [vmem:[%s2787_s6 + $0x110] sm:$0xff] %v1417_v59  ;;  %v1418_v0 = vmax.f32 %v1268_v60, 0.0 }
 0x219   :  { %1479 = vst [vmem:[%s2787_s6 + $0x100] sm:$0xff] %v1415_v62  ;;  %v1416_v1 = vmax.f32 %v1260_v63, 0.0 }
 0x21a   :  { %1482 = vst [vmem:[%s2787_s6 + $0x118] sm:$0xff] %v1418_v0 }
 0x21b   :  { %1480 = vst [vmem:[%s2787_s6 + $0x108] sm:$0xff] %v1416_v1  ;;  %v2102_v2 = vpop.f32.mrb[36].mxu1 }
 0x21c   :  { %v1281_v3 = vadd.f32 %v2102_v2, %v2523_v48  ;;  %v1272_v4 = vpop.f32.mrb[37].mxu1 }
 0x21d   :  { %v1273_v5 = vadd.f32 %v2523_v48, %v1272_v4  ;;  %v2103_v6 = vpop.f32.mrb[38].mxu1 }
 0x21e   :  { %v1421_v7 = vmax.f32 %v1281_v3, 0.0  ;;  %v1284_v8 = vadd.f32 %v2103_v6, %v2523_v48  ;;  %v1275_v9 = vpop.f32.mrb[39].mxu1 }
 0x21f   :  { %v1419_v10 = vmax.f32 %v1273_v5, 0.0  ;;  %v1276_v11 = vadd.f32 %v2523_v48, %v1275_v9 }
 0x220   :  { %1485 = vst [vmem:[%s2787_s6 + $0x130] sm:$0xff] %v1421_v7  ;;  %v1422_v12 = vmax.f32 %v1284_v8, 0.0 }
 0x221   :  { %1483 = vst [vmem:[%s2787_s6 + $0x120] sm:$0xff] %v1419_v10  ;;  %v1420_v13 = vmax.f32 %v1276_v11, 0.0 }
 0x222   :  { %1486 = vst [vmem:[%s2787_s6 + $0x138] sm:$0xff] %v1422_v12 }
 0x223   :  { %1484 = vst [vmem:[%s2787_s6 + $0x128] sm:$0xff] %v1420_v13  ;;  %v2106_v14 = vpop.f32.mrb[40].mxu1 }
 0x224   :  { %v1297_v15 = vadd.f32 %v2106_v14, %v2523_v48  ;;  %v1288_v16 = vpop.f32.mrb[41].mxu1 }
 0x225   :  { %v1289_v17 = vadd.f32 %v2523_v48, %v1288_v16  ;;  %v2107_v18 = vpop.f32.mrb[42].mxu1 }
 0x226   :  { %v1425_v19 = vmax.f32 %v1297_v15, 0.0  ;;  %v1300_v20 = vadd.f32 %v2107_v18, %v2523_v48  ;;  %v1291_v21 = vpop.f32.mrb[43].mxu1 }
 0x227   :  { %v1423_v22 = vmax.f32 %v1289_v17, 0.0  ;;  %v1292_v23 = vadd.f32 %v2523_v48, %v1291_v21 }
 0x228   :  { %1489 = vst [vmem:[%s2787_s6 + $0x150] sm:$0xff] %v1425_v19  ;;  %v1426_v24 = vmax.f32 %v1300_v20, 0.0 }
 0x229   :  { %1487 = vst [vmem:[%s2787_s6 + $0x140] sm:$0xff] %v1423_v22  ;;  %v1424_v25 = vmax.f32 %v1292_v23, 0.0 }
 0x22a   :  { %1490 = vst [vmem:[%s2787_s6 + $0x158] sm:$0xff] %v1426_v24 }
 0x22b   :  { %1488 = vst [vmem:[%s2787_s6 + $0x148] sm:$0xff] %v1424_v25  ;;  %v2110_v26 = vpop.f32.mrb[44].mxu1 }
 0x22c   :  { %v1313_v27 = vadd.f32 %v2110_v26, %v2523_v48  ;;  %v1304_v28 = vpop.f32.mrb[45].mxu1 }
 0x22d   :  { %v1305_v29 = vadd.f32 %v2523_v48, %v1304_v28  ;;  %v2111_v30 = vpop.f32.mrb[46].mxu1 }
 0x22e   :  { %v1429_v31 = vmax.f32 %v1313_v27, 0.0  ;;  %v1316_v32 = vadd.f32 %v2111_v30, %v2523_v48  ;;  %v1307_v33 = vpop.f32.mrb[47].mxu1 }
 0x22f   :  { %v1427_v34 = vmax.f32 %v1305_v29, 0.0  ;;  %v1308_v35 = vadd.f32 %v2523_v48, %v1307_v33 }
 0x230   :  { %1493 = vst [vmem:[%s2787_s6 + $0x170] sm:$0xff] %v1429_v31  ;;  %v1430_v36 = vmax.f32 %v1316_v32, 0.0 }
 0x231   :  { %1491 = vst [vmem:[%s2787_s6 + $0x160] sm:$0xff] %v1427_v34  ;;  %v1428_v37 = vmax.f32 %v1308_v35, 0.0 }
 0x232   :  { %1494 = vst [vmem:[%s2787_s6 + $0x178] sm:$0xff] %v1430_v36 }
 0x233   :  { %1492 = vst [vmem:[%s2787_s6 + $0x168] sm:$0xff] %v1428_v37  ;;  %v2114_v38 = vpop.f32.mrb[48].mxu1 }
 0x234   :  { %v1329_v39 = vadd.f32 %v2114_v38, %v2523_v48  ;;  %v1320_v40 = vpop.f32.mrb[49].mxu1 }
 0x235   :  { %v1321_v41 = vadd.f32 %v2523_v48, %v1320_v40  ;;  %v2115_v42 = vpop.f32.mrb[50].mxu1 }
 0x236   :  { %v1433_v43 = vmax.f32 %v1329_v39, 0.0  ;;  %v1332_v44 = vadd.f32 %v2115_v42, %v2523_v48  ;;  %v1323_v45 = vpop.f32.mrb[51].mxu1 }
 0x237   :  { %v1431_v46 = vmax.f32 %v1321_v41, 0.0  ;;  %v1324_v47 = vadd.f32 %v2523_v48, %v1323_v45 }
 0x238   :  { %1497 = vst [vmem:[%s2787_s6 + $0x190] sm:$0xff] %v1433_v43  ;;  %v1434_v49 = vmax.f32 %v1332_v44, 0.0 }
 0x239   :  { %1495 = vst [vmem:[%s2787_s6 + $0x180] sm:$0xff] %v1431_v46  ;;  %v1432_v50 = vmax.f32 %v1324_v47, 0.0 }
 0x23a   :  { %1498 = vst [vmem:[%s2787_s6 + $0x198] sm:$0xff] %v1434_v49 }
 0x23b   :  { %1496 = vst [vmem:[%s2787_s6 + $0x188] sm:$0xff] %v1432_v50  ;;  %v2118_v51 = vpop.f32.mrb[52].mxu1 }
 0x23c   :  { %v1345_v52 = vadd.f32 %v2118_v51, %v2523_v48  ;;  %v1336_v53 = vpop.f32.mrb[53].mxu1 }
 0x23d   :  { %v1337_v54 = vadd.f32 %v2523_v48, %v1336_v53  ;;  %v2119_v55 = vpop.f32.mrb[54].mxu1 }
 0x23e   :  { %v1437_v56 = vmax.f32 %v1345_v52, 0.0  ;;  %v1348_v57 = vadd.f32 %v2119_v55, %v2523_v48  ;;  %v1339_v58 = vpop.f32.mrb[55].mxu1 }
 0x23f   :  { %v1435_v59 = vmax.f32 %v1337_v54, 0.0  ;;  %v1340_v60 = vadd.f32 %v2523_v48, %v1339_v58 }
 0x240   :  { %1501 = vst [vmem:[%s2787_s6 + $0x1b0] sm:$0xff] %v1437_v56  ;;  %v1438_v61 = vmax.f32 %v1348_v57, 0.0 }
 0x241   :  { %1499 = vst [vmem:[%s2787_s6 + $0x1a0] sm:$0xff] %v1435_v59  ;;  %v1436_v62 = vmax.f32 %v1340_v60, 0.0 }
 0x242   :  { %1502 = vst [vmem:[%s2787_s6 + $0x1b8] sm:$0xff] %v1438_v61 }
 0x243   :  { %1500 = vst [vmem:[%s2787_s6 + $0x1a8] sm:$0xff] %v1436_v62  ;;  %v2122_v63 = vpop.f32.mrb[56].mxu1 }
 0x244   :  { %v1361_v0 = vadd.f32 %v2122_v63, %v2523_v48  ;;  %v1352_v1 = vpop.f32.mrb[57].mxu1 }
 0x245   :  { %v1353_v2 = vadd.f32 %v2523_v48, %v1352_v1  ;;  %v2123_v3 = vpop.f32.mrb[58].mxu1 }
 0x246   :  { %v1441_v4 = vmax.f32 %v1361_v0, 0.0  ;;  %v1364_v5 = vadd.f32 %v2123_v3, %v2523_v48  ;;  %v1355_v6 = vpop.f32.mrb[59].mxu1 }
 0x247   :  { %v1439_v7 = vmax.f32 %v1353_v2, 0.0  ;;  %v1356_v8 = vadd.f32 %v2523_v48, %v1355_v6 }
 0x248   :  { %1505 = vst [vmem:[%s2787_s6 + $0x1d0] sm:$0xff] %v1441_v4  ;;  %v1442_v9 = vmax.f32 %v1364_v5, 0.0 }
 0x249   :  { %1503 = vst [vmem:[%s2787_s6 + $0x1c0] sm:$0xff] %v1439_v7  ;;  %v1440_v10 = vmax.f32 %v1356_v8, 0.0 }
 0x24a   :  { %1506 = vst [vmem:[%s2787_s6 + $0x1d8] sm:$0xff] %v1442_v9 }
 0x24b   :  { %1504 = vst [vmem:[%s2787_s6 + $0x1c8] sm:$0xff] %v1440_v10  ;;  %v2126_v11 = vpop.f32.mrb[60].mxu1 }
 0x24c   :  { %v1377_v12 = vadd.f32 %v2126_v11, %v2523_v48  ;;  %v1368_v13 = vpop.f32.mrb[61].mxu1 }
 0x24d   :  { %v1369_v14 = vadd.f32 %v2523_v48, %v1368_v13  ;;  %v2127_v15 = vpop.f32.mrb[62].mxu1 }
 0x24e   :  { %v1445_v16 = vmax.f32 %v1377_v12, 0.0  ;;  %v1380_v17 = vadd.f32 %v2127_v15, %v2523_v48  ;;  %v1371_v18 = vpop.f32.mrb[63].mxu1 }
 0x24f   :  { %v1443_v19 = vmax.f32 %v1369_v14, 0.0  ;;  %v1372_v20 = vadd.f32 %v2523_v48, %v1371_v18 }
 0x250   :  { %1509 = vst [vmem:[%s2787_s6 + $0x1f0] sm:$0xff] %v1445_v16  ;;  %v1446_v21 = vmax.f32 %v1380_v17, 0.0 }
 0x251   :  { %1507 = vst [vmem:[%s2787_s6 + $0x1e0] sm:$0xff] %v1443_v19  ;;  %v1444_v22 = vmax.f32 %v1372_v20, 0.0 }
 0x252   :  { %1510 = vst [vmem:[%s2787_s6 + $0x1f8] sm:$0xff] %v1446_v21 }
 0x253   :  { %1508 = vst [vmem:[%s2787_s6 + $0x1e8] sm:$0xff] %v1444_v22 }

// kernel: channel_distill_forward.12
= control target key start
LH: loop header
LB: loop body
LE: loop exit
PB: predicated region body
PF: predicated region fallthrough
CT: control target
= control target key end

     0   :  { %v479_v26 = vmov 0   ;;  %v201_v42 = vlaneseq  ;;  %s629_s1 = inlined_call_operand.vmem [shape: bf16[128,128], index: 1, kind: input, shape index: {}]   ;;  %s630_s0 = inlined_call_operand.vmem [shape: bf16[32,128], index: 0, kind: input, shape index: {}]   ;;  %s631_s3 = inlined_call_operand.vmem [shape: bf16[128,256], index: 3, kind: input, shape index: {}]   ;;  %s632_s2 = inlined_call_operand.vmem [shape: f32[1,128], index: 2, kind: input, shape index: {}]   ;;  %s633_s5 = inlined_call_operand.vmem [shape: bf16[32,128], index: 5, kind: output, shape index: {0}]   ;;  %s634_s4 = inlined_call_operand.vmem [shape: f32[1,256], index: 4, kind: input, shape index: {}]   ;;  %s635_s6 = inlined_call_operand.vmem [shape: f32[32,256], index: 6, kind: output, shape index: {1}]  }
   0x1   :  { %v445_v0 = vld [vmem:[%s629_s1] sm:$0xff]   ;;  %v446_v1 = vld [vmem:[%s629_s1 + $0x8] sm:$0xff]   ;;  %v447_v2 = vld [vmem:[%s629_s1 + $0x10] sm:$0xff]   ;;  %323 = vmatprep.mubr.bf16.mxu1 %v479_v26 }
   0x2   :  { %424 = vmatprep.subr.bf16.mxu0 %v445_v0  ;;  %v448_v3 = vld [vmem:[%s629_s1 + $0x18] sm:$0xff]   ;;  %v453_v4 = vld [vmem:[%s630_s0] sm:$0xff]   ;;  %v450_v11 = vld [vmem:[%s629_s1 + $0x28] sm:$0xff]   ;;  %v202_v43 = vshrl.u32 %v201_v42, 7 }
   0x3   :  { %425 = vmatpush3.bf16.msra.mxu0 %v445_v0  ;;  %440 = vmatprep.mubr.bf16.mxu0 %v453_v4  ;;  %v455_v5 = vld [vmem:[%s631_s3 + $0x4] ss:$8 sps:$4 sm:$0xff]   ;;  %v457_v6 = vld [vmem:[%s631_s3] ss:$8 sps:$4 sm:$0xff]   ;;  %v458_v8 = vld [vmem:[%s631_s3 + $0x14] ss:$8 sps:$4 sm:$0xff]  }
   0x4   :  { %426 = vmatprep.subr.bf16.mxu0 %v446_v1  ;;  %v449_v7 = vld [vmem:[%s629_s1 + $0x20] sm:$0xff]   ;;  %291 = vmatprep.subr.bf16.mxu1 %v455_v5  ;;  %v460_v9 = vld [vmem:[%s631_s3 + $0x10] ss:$8 sps:$4 sm:$0xff]   ;;  %v464_v13 = vld [vmem:[%s631_s3 + $0x34] ss:$8 sps:$4 sm:$0xff]   ;;  %v203_v44 = vsub.s32 0, %v202_v43 }
   0x5   :  { %292 = vmatpush1.bf16.msra.mxu1 %v457_v6  ;;  %v461_v10 = vld [vmem:[%s631_s3 + $0x24] ss:$8 sps:$4 sm:$0xff]   ;;  %v463_v12 = vld [vmem:[%s631_s3 + $0x20] ss:$8 sps:$4 sm:$0xff]   ;;  %v451_v14 = vld [vmem:[%s629_s1 + $0x30] sm:$0xff]   ;;  %v207_v46 = vsub.s32 1, %v202_v43 }
   0x6   :  { %293 = vmatprep.subr.bf16.mxu1 %v458_v8  ;;  %v466_v15 = vld [vmem:[%s631_s3 + $0x30] ss:$8 sps:$4 sm:$0xff]   ;;  %v467_v16 = vld [vmem:[%s631_s3 + $0x44] ss:$8 sps:$4 sm:$0xff]   ;;  %v469_v18 = vld [vmem:[%s631_s3 + $0x40] ss:$8 sps:$4 sm:$0xff]  }
   0x7   :  { %427 = vmatpush3.bf16.msra.mxu0 %v446_v1  ;;  %v452_v17 = vld [vmem:[%s629_s1 + $0x38] sm:$0xff]   ;;  %v454_v21 = vld [vmem:[%s630_s0 + $0x8] sm:$0xff]   ;;  %v368_v27 = vld [vmem:[%s632_s2] ss:$0 sm:$0xff] }
   0x8   :  { %428 = vmatprep.subr.bf16.mxu0 %v447_v2  ;;  %v470_v19 = vld [vmem:[%s631_s3 + $0x54] ss:$8 sps:$4 sm:$0xff]   ;;  %v472_v20 = vld [vmem:[%s631_s3 + $0x50] ss:$8 sps:$4 sm:$0xff]   ;;  %v473_v22 = vld [vmem:[%s631_s3 + $0x64] ss:$8 sps:$4 sm:$0xff]  }
   0x9   :  { %294 = vmatpush1.bf16.msra.mxu1 %v460_v9  ;;  %v475_v23 = vld [vmem:[%s631_s3 + $0x60] ss:$8 sps:$4 sm:$0xff]   ;;  %v476_v24 = vld [vmem:[%s631_s3 + $0x74] ss:$8 sps:$4 sm:$0xff]   ;;  %v478_v25 = vld [vmem:[%s631_s3 + $0x70] ss:$8 sps:$4 sm:$0xff]  }
   0xa   :  { %295 = vmatprep.subr.bf16.mxu1 %v461_v10  ;;  %v199_v45 = vld [vmem:[%s634_s4] sm:$0x3] }
   0xb   :  { %429 = vmatpush3.bf16.msra.mxu0 %v447_v2  ;;  %v204_v47 = vrot.slane %v199_v45, %v203_v44  ;;  %v208_v48 = vrot.slane %v199_v45, %v207_v46 }
   0xc   :  { %430 = vmatprep.subr.bf16.mxu0 %v448_v3 }
   0xd   :  { %296 = vmatpush1.bf16.msra.mxu1 %v463_v12 }
   0xe   :  { %297 = vmatprep.subr.bf16.mxu1 %v464_v13 }
   0xf   :  { %431 = vmatpush3.bf16.msra.mxu0 %v448_v3 }
  0x10   :  { %432 = vmatprep.subr.bf16.mxu0 %v449_v7 }
  0x11   :  { %298 = vmatpush1.bf16.msra.mxu1 %v466_v15 }
  0x12   :  { %299 = vmatprep.subr.bf16.mxu1 %v467_v16 }
  0x13   :  { %433 = vmatpush3.bf16.msra.mxu0 %v449_v7 }
  0x14   :  { %434 = vmatprep.subr.bf16.mxu0 %v450_v11 }
  0x15   :  { %300 = vmatpush1.bf16.msra.mxu1 %v469_v18 }
  0x16   :  { %301 = vmatprep.subr.bf16.mxu1 %v470_v19 }
  0x17   :  { %435 = vmatpush3.bf16.msra.mxu0 %v450_v11 }
  0x18   :  { %436 = vmatprep.subr.bf16.mxu0 %v451_v14 }
  0x19   :  { %302 = vmatpush1.bf16.msra.mxu1 %v472_v20 }
  0x1a   :  { %303 = vmatprep.subr.bf16.mxu1 %v473_v22 }
  0x1b   :  { %437 = vmatpush3.bf16.msra.mxu0 %v451_v14 }
  0x1c   :  { %438 = vmatprep.subr.bf16.mxu0 %v452_v17 }
  0x1d   :  { %304 = vmatpush1.bf16.msra.mxu1 %v475_v23 }
  0x1e   :  { %305 = vmatprep.subr.bf16.mxu1 %v476_v24 }
  0x1f   :  { %439 = vmatpush3.bf16.msra.mxu0 %v452_v17 }
  0x21   :  { %306 = vmatpush1.bf16.msra.mxu1 %v478_v25 }
  0x22   :  { %441 = vmatmul.mubr.bf16.vlgmr.msra.gmra.mrb[0].mxu0 %v454_v21 }
  0xf5   :  { %v442_v28 = vpop.f32.mrb[0].mxu0 }
  0xf6   :  { %v153_v29 = vadd.f32 %v442_v28, %v368_v27  ;;  %v144_v30 = vpop.f32.mrb[1].mxu0 }
  0xf7   :  { %v145_v31 = vadd.f32 %v368_v27, %v144_v30  ;;  %v443_v32 = vpop.f32.mrb[2].mxu0 }
  0xf8   :  { %v156_v33 = vadd.f32 %v443_v32, %v368_v27  ;;  %v147_v34 = vpop.f32.mrb[3].mxu0  ;;  %v161_v36 = vmax.f32 %v153_v29, 0.0 }
  0xf9   :  { %v148_v35 = vadd.f32 %v368_v27, %v147_v34  ;;  %v159_v38 = vmax.f32 %v145_v31, 0.0 }
  0xfa   :  { %v162_v37 = vmax.f32 %v156_v33, 0.0 }
  0xfb   :  { %v160_v39 = vmax.f32 %v148_v35, 0.0 }
  0xfc   :  { %v164_v40 = vpack.c.bf16 %v162_v37, %v161_v36 }
  0xfd   :  { %v163_v41 = vpack.c.bf16 %v160_v39, %v159_v38 }
  0xfe   :  { %413 = vst [vmem:[%s633_s5 + $0x8] sm:$0xff] %v164_v40  }
  0xff   :  { %407 = vst [vmem:[%s633_s5] sm:$0xff] %v163_v41   ;;  %324 = vmatmul.mubr.bf16.vlgmr.msra.gmra.mrb[0].mxu1 %v163_v41 }
 0x100   :  { %333 = vmatprep.mubr.bf16.mxu1 %v479_v26 }
 0x107   :  { %334 = vmatmul.mubr.bf16.gmra.mrb[4].mxu1 %v164_v40 }
 0x1d2   :  { %v325_v49 = vpop.f32.mrb[0].mxu1 }
 0x1d3   :  { %v326_v50 = vadd.f32 %v325_v49, %v204_v47  ;;  %v327_v51 = vpop.f32.mrb[1].mxu1 }
 0x1d4   :  { %v328_v52 = vadd.f32 %v327_v51, %v208_v48  ;;  %v329_v53 = vpop.f32.mrb[2].mxu1 }
 0x1d5   :  { %v344_v54 = vmax.f32 %v326_v50, 0.0  ;;  %v330_v55 = vadd.f32 %v329_v53, %v204_v47  ;;  %v331_v56 = vpop.f32.mrb[3].mxu1 }
 0x1d6   :  { %v345_v57 = vmax.f32 %v328_v52, 0.0  ;;  %v332_v58 = vadd.f32 %v331_v56, %v208_v48 }
 0x1d7   :  { %352 = vst [vmem:[%s635_s6] sm:$0xff] %v344_v54  ;;  %v346_v59 = vmax.f32 %v330_v55, 0.0 }
 0x1d8   :  { %353 = vst [vmem:[%s635_s6 + $0x8] sm:$0xff] %v345_v57  ;;  %v347_v60 = vmax.f32 %v332_v58, 0.0 }
 0x1d9   :  { %354 = vst [vmem:[%s635_s6 + $0x10] sm:$0xff] %v346_v59 }
 0x1da   :  { %355 = vst [vmem:[%s635_s6 + $0x18] sm:$0xff] %v347_v60  ;;  %v335_v61 = vpop.f32.mrb[4].mxu1 }
 0x1db   :  { %v336_v62 = vadd.f32 %v335_v61, %v204_v47  ;;  %v337_v63 = vpop.f32.mrb[5].mxu1 }
 0x1dc   :  { %v338_v0 = vadd.f32 %v337_v63, %v208_v48  ;;  %v339_v1 = vpop.f32.mrb[6].mxu1 }
 0x1dd   :  { %v348_v2 = vmax.f32 %v336_v62, 0.0  ;;  %v340_v3 = vadd.f32 %v339_v1, %v204_v47  ;;  %v341_v4 = vpop.f32.mrb[7].mxu1 }
 0x1de   :  { %v349_v5 = vmax.f32 %v338_v0, 0.0  ;;  %v342_v6 = vadd.f32 %v341_v4, %v208_v48 }
 0x1df   :  { %356 = vst [vmem:[%s635_s6 + $0x20] sm:$0xff] %v348_v2  ;;  %v350_v7 = vmax.f32 %v340_v3, 0.0 }
 0x1e0   :  { %357 = vst [vmem:[%s635_s6 + $0x28] sm:$0xff] %v349_v5  ;;  %v351_v8 = vmax.f32 %v342_v6, 0.0 }
 0x1e1   :  { %358 = vst [vmem:[%s635_s6 + $0x30] sm:$0xff] %v350_v7 }
 0x1e2   :  { %359 = vst [vmem:[%s635_s6 + $0x38] sm:$0xff] %v351_v8 }

// kernel: channel_distill_forward.13
= control target key start
LH: loop header
LB: loop body
LE: loop exit
PB: predicated region body
PF: predicated region fallthrough
CT: control target
= control target key end

     0   :  { %v579_v0 = vmov 0.0   ;;  %vm580_vm0 = vmmov 0   ;;  %v581_v42 = vmov 0   ;;  %v172_v51 = vlaneseq  ;;  %s761_s1 = inlined_call_operand.vmem [shape: bf16[128,128], index: 1, kind: input, shape index: {}]   ;;  %s762_s3 = inlined_call_operand.vmem [shape: bf16[128,512], index: 3, kind: input, shape index: {}]   ;;  %s763_s0 = inlined_call_operand.vmem [shape: bf16[8,128], index: 0, kind: input, shape index: {}]   ;;  %s764_s2 = inlined_call_operand.vmem [shape: f32[1,128], index: 2, kind: input, shape index: {}]   ;;  %s765_s5 = inlined_call_operand.vmem [shape: bf16[8,128], index: 5, kind: output, shape index: {0}]   ;;  %s766_s4 = inlined_call_operand.vmem [shape: f32[1,512], index: 4, kind: input, shape index: {}]   ;;  %s767_s6 = inlined_call_operand.vmem [shape: f32[8,512], index: 6, kind: output, shape index: {1}]  }
   0x1   :  { %500 = vmatprep.subr.bf16.mxu0 %v579_v0  ;;  %v523_v1 = vld [vmem:[%s761_s1] sm:$0xff]   ;;  %516 = vmatprep.mubr.msk.bf16.mxu0 %vm580_vm0, %v579_v0  ;;  %v524_v2 = vld [vmem:[%s761_s1 + $0x8] sm:$0xff]   ;;  %v525_v3 = vld [vmem:[%s761_s1 + $0x10] sm:$0xff]  }
   0x2   :  { %501 = vmatpush3.bf16.msra.mxu0 %v523_v1  ;;  %v531_v4 = vld [vmem:[%s762_s3 + $0x4] ss:$16 sps:$4 sm:$0xff]   ;;  %v526_v5 = vld [vmem:[%s761_s1 + $0x18] sm:$0xff]   ;;  %v536_v6 = vld [vmem:[%s762_s3] ss:$16 sps:$4 sm:$0xff]   ;;  %384 = vmatprep.mubr.bf16.mxu1 %v581_v42  ;;  %v173_v52 = vshrl.u32 %v172_v51, 7 }
   0x3   :  { %502 = vmatprep.subr.bf16.mxu0 %v579_v0  ;;  %352 = vmatprep.subr.bf16.mxu1 %v531_v4  ;;  %v537_v7 = vld [vmem:[%s762_s3 + $0x24] ss:$16 sps:$4 sm:$0xff]   ;;  %v542_v9 = vld [vmem:[%s762_s3 + $0x20] ss:$16 sps:$4 sm:$0xff]   ;;  %v528_v13 = vld [vmem:[%s761_s1 + $0x28] sm:$0xff]  }
   0x4   :  { %353 = vmatpush1.bf16.msra.mxu1 %v536_v6  ;;  %v527_v8 = vld [vmem:[%s761_s1 + $0x20] sm:$0xff]   ;;  %v529_v16 = vld [vmem:[%s761_s1 + $0x30] sm:$0xff]   ;;  %v530_v19 = vld [vmem:[%s761_s1 + $0x38] sm:$0xff]   ;;  %v174_v53 = vsub.s32 0, %v173_v52  ;;  %v182_v54 = vsub.s32 2, %v173_v52  ;;  %v178_v56 = vsub.s32 1, %v173_v52 }
   0x5   :  { %354 = vmatprep.subr.bf16.mxu1 %v537_v7  ;;  %v543_v10 = vld [vmem:[%s762_s3 + $0x44] ss:$16 sps:$4 sm:$0xff]   ;;  %v548_v11 = vld [vmem:[%s762_s3 + $0x40] ss:$16 sps:$4 sm:$0xff]   ;;  %v535_v20 = vld [vmem:[%s762_s3 + $0xc] ss:$16 sps:$4 sm:$0xff]  }
   0x6   :  { %503 = vmatpush3.bf16.msra.mxu0 %v524_v2  ;;  %v549_v12 = vld [vmem:[%s762_s3 + $0x64] ss:$16 sps:$4 sm:$0xff]   ;;  %v554_v14 = vld [vmem:[%s762_s3 + $0x60] ss:$16 sps:$4 sm:$0xff]   ;;  %v533_v24 = vld [vmem:[%s762_s3 + $0x8] ss:$16 sps:$4 sm:$0xff]  }
   0x7   :  { %504 = vmatprep.subr.bf16.mxu0 %v579_v0  ;;  %v555_v15 = vld [vmem:[%s762_s3 + $0x84] ss:$16 sps:$4 sm:$0xff]   ;;  %v560_v17 = vld [vmem:[%s762_s3 + $0x80] ss:$16 sps:$4 sm:$0xff]   ;;  %v541_v25 = vld [vmem:[%s762_s3 + $0x2c] ss:$16 sps:$4 sm:$0xff]  }
   0x8   :  { %355 = vmatpush1.bf16.msra.mxu1 %v542_v9  ;;  %v561_v18 = vld [vmem:[%s762_s3 + $0xa4] ss:$16 sps:$4 sm:$0xff]   ;;  %v566_v21 = vld [vmem:[%s762_s3 + $0xa0] ss:$16 sps:$4 sm:$0xff]   ;;  %v539_v26 = vld [vmem:[%s762_s3 + $0x28] ss:$16 sps:$4 sm:$0xff]  }
   0x9   :  { %356 = vmatprep.subr.bf16.mxu1 %v543_v10  ;;  %v567_v22 = vld [vmem:[%s762_s3 + $0xc4] ss:$16 sps:$4 sm:$0xff]   ;;  %v23_v23 = vld [vmem:[%s763_s0] sm:$0xf]  ;;  %v547_v27 = vld [vmem:[%s762_s3 + $0x4c] ss:$16 sps:$4 sm:$0xff]  }
   0xa   :  { %505 = vmatpush3.bf16.msra.mxu0 %v525_v3  ;;  %v545_v28 = vld [vmem:[%s762_s3 + $0x48] ss:$16 sps:$4 sm:$0xff]   ;;  %v553_v29 = vld [vmem:[%s762_s3 + $0x6c] ss:$16 sps:$4 sm:$0xff]   ;;  %v572_v37 = vld [vmem:[%s762_s3 + $0xc0] ss:$16 sps:$4 sm:$0xff]  }
   0xb   :  { %506 = vmatprep.subr.bf16.mxu0 %v579_v0  ;;  %v551_v30 = vld [vmem:[%s762_s3 + $0x68] ss:$16 sps:$4 sm:$0xff]   ;;  %v559_v31 = vld [vmem:[%s762_s3 + $0x8c] ss:$16 sps:$4 sm:$0xff]   ;;  %v573_v38 = vld [vmem:[%s762_s3 + $0xe4] ss:$16 sps:$4 sm:$0xff]  }
   0xc   :  { %357 = vmatpush1.bf16.msra.mxu1 %v548_v11  ;;  %v557_v32 = vld [vmem:[%s762_s3 + $0x88] ss:$16 sps:$4 sm:$0xff]   ;;  %v565_v33 = vld [vmem:[%s762_s3 + $0xac] ss:$16 sps:$4 sm:$0xff]   ;;  %v578_v41 = vld [vmem:[%s762_s3 + $0xe0] ss:$16 sps:$4 sm:$0xff]  }
   0xd   :  { %358 = vmatprep.subr.bf16.mxu1 %v549_v12  ;;  %v563_v34 = vld [vmem:[%s762_s3 + $0xa8] ss:$16 sps:$4 sm:$0xff]   ;;  %v571_v35 = vld [vmem:[%s762_s3 + $0xcc] ss:$16 sps:$4 sm:$0xff]   ;;  %v450_v43 = vld [vmem:[%s764_s2] ss:$0 sm:$0xff] }
   0xe   :  { %507 = vmatpush3.bf16.msra.mxu0 %v526_v5  ;;  %v569_v36 = vld [vmem:[%s762_s3 + $0xc8] ss:$16 sps:$4 sm:$0xff]   ;;  %v577_v39 = vld [vmem:[%s762_s3 + $0xec] ss:$16 sps:$4 sm:$0xff]   ;;  %v170_v55 = vld [vmem:[%s766_s4] sm:$0xf] }
   0xf   :  { %508 = vmatprep.subr.bf16.mxu0 %v579_v0  ;;  %v575_v40 = vld [vmem:[%s762_s3 + $0xe8] ss:$16 sps:$4 sm:$0xff]   ;;  %v186_v57 = vsub.s32 3, %v173_v52  ;;  %v175_v58 = vrot.slane %v170_v55, %v174_v53  ;;  %v183_v59 = vrot.slane %v170_v55, %v182_v54  ;;  %v179_v60 = vrot.slane %v170_v55, %v178_v56 }
  0x10   :  { %359 = vmatpush1.bf16.msra.mxu1 %v554_v14 }
  0x11   :  { %360 = vmatprep.subr.bf16.mxu1 %v555_v15  ;;  %v187_v61 = vrot.slane %v170_v55, %v186_v57 }
  0x12   :  { %509 = vmatpush3.bf16.msra.mxu0 %v527_v8 }
  0x13   :  { %510 = vmatprep.subr.bf16.mxu0 %v579_v0 }
  0x14   :  { %361 = vmatpush1.bf16.msra.mxu1 %v560_v17 }
  0x15   :  { %362 = vmatprep.subr.bf16.mxu1 %v561_v18 }
  0x16   :  { %511 = vmatpush3.bf16.msra.mxu0 %v528_v13 }
  0x17   :  { %512 = vmatprep.subr.bf16.mxu0 %v579_v0 }
  0x18   :  { %363 = vmatpush1.bf16.msra.mxu1 %v566_v21 }
  0x19   :  { %364 = vmatprep.subr.bf16.mxu1 %v567_v22 }
  0x1a   :  { %513 = vmatpush3.bf16.msra.mxu0 %v529_v16 }
  0x1b   :  { %514 = vmatprep.subr.bf16.mxu0 %v579_v0 }
  0x1c   :  { %365 = vmatpush1.bf16.msra.mxu1 %v572_v37 }
  0x1d   :  { %366 = vmatprep.subr.bf16.mxu1 %v573_v38 }
  0x1e   :  { %515 = vmatpush3.bf16.msra.mxu0 %v530_v19 }
  0x1f   :  { %393 = vmatprep.subr.bf16.mxu0 %v535_v20 }
  0x20   :  { %367 = vmatpush1.bf16.msra.mxu1 %v578_v41 }
  0x21   :  { %517 = vmatmul.mubr.bf16.vlgmr.msra.gmra.mrb[0].mxu0 %v23_v23 }
  0x22   :  { %394 = vmatpush1.bf16.msra.mxu0 %v533_v24  ;;  %425 = vmatprep.mubr.bf16.mxu0 %v581_v42 }
  0x23   :  { %395 = vmatprep.subr.bf16.mxu0 %v541_v25 }
  0x26   :  { %396 = vmatpush1.bf16.msra.mxu0 %v539_v26 }
  0x27   :  { %397 = vmatprep.subr.bf16.mxu0 %v547_v27 }
  0x2a   :  { %398 = vmatpush1.bf16.msra.mxu0 %v545_v28 }
  0x2b   :  { %399 = vmatprep.subr.bf16.mxu0 %v553_v29 }
  0x2e   :  { %400 = vmatpush1.bf16.msra.mxu0 %v551_v30 }
  0x2f   :  { %401 = vmatprep.subr.bf16.mxu0 %v559_v31 }
  0x32   :  { %402 = vmatpush1.bf16.msra.mxu0 %v557_v32 }
  0x33   :  { %403 = vmatprep.subr.bf16.mxu0 %v565_v33 }
  0x36   :  { %404 = vmatpush1.bf16.msra.mxu0 %v563_v34 }
  0x37   :  { %405 = vmatprep.subr.bf16.mxu0 %v571_v35 }
  0x3a   :  { %406 = vmatpush1.bf16.msra.mxu0 %v569_v36 }
  0x3b   :  { %407 = vmatprep.subr.bf16.mxu0 %v577_v39 }
  0x3e   :  { %408 = vmatpush1.bf16.msra.mxu0 %v575_v40 }
  0xf4   :  { %v129_v44 = vpop.f32.mrb[0].mxu0 }
  0xf5   :  { %v130_v45 = vadd.f32 %v450_v43, %v129_v44  ;;  %v518_v46 = vpop.f32.mrb[1].mxu0 }
  0xf6   :  { %v132_v47 = vpop.f32.mrb[2].mxu0 }
  0xf7   :  { %v135_v48 = vmax.f32 %v130_v45, 0.0  ;;  %v519_v49 = vpop.f32.mrb[3].mxu0 }
  0xf9   :  { %v136_v50 = vpack.c.bf16 %v135_v48, %v135_v48 }
  0xfb   :  { %137 = vst [vmem:[%s765_s5] sm:$0xf] %v136_v50  ;;  %385 = vmatmul.mubr.bf16.vlgmr.msra.gmra.mrb[0].mxu1 %v136_v50  ;;  %426 = vmatmul.mubr.bf16.vlgmr.msra.gmra.mrb[4].mxu0 %v136_v50 }
 0x1ce   :  { %v386_v62 = vpop.f32.mrb[0].mxu1  ;;  %v427_v63 = vpop.f32.mrb[4].mxu0 }
 0x1cf   :  { %v387_v0 = vadd.f32 %v386_v62, %v175_v58  ;;  %v428_v1 = vadd.f32 %v427_v63, %v183_v59  ;;  %v388_v2 = vpop.f32.mrb[1].mxu1  ;;  %v429_v3 = vpop.f32.mrb[5].mxu0 }
 0x1d0   :  { %v389_v4 = vadd.f32 %v388_v2, %v179_v60  ;;  %v430_v5 = vadd.f32 %v429_v3, %v187_v61  ;;  %v390_v6 = vpop.f32.mrb[2].mxu1  ;;  %v431_v7 = vpop.f32.mrb[6].mxu0 }
 0x1d1   :  { %v434_v8 = vmax.f32 %v387_v0, 0.0  ;;  %v436_v9 = vmax.f32 %v428_v1, 0.0  ;;  %v391_v10 = vpop.f32.mrb[3].mxu1  ;;  %v432_v11 = vpop.f32.mrb[7].mxu0 }
 0x1d2   :  { %v435_v12 = vmax.f32 %v389_v4, 0.0  ;;  %v437_v13 = vmax.f32 %v430_v5, 0.0 }
 0x1d3   :  { %438 = vst [vmem:[%s767_s6] sm:$0xff] %v434_v8  ;;  %440 = vst [vmem:[%s767_s6 + $0x10] sm:$0xff] %v436_v9 }
 0x1d4   :  { %439 = vst [vmem:[%s767_s6 + $0x8] sm:$0xff] %v435_v12  ;;  %441 = vst [vmem:[%s767_s6 + $0x18] sm:$0xff] %v437_v13 }

// kernel: channel_distill_forward.14
= control target key start
LH: loop header
LB: loop body
LE: loop exit
PB: predicated region body
PF: predicated region fallthrough
CT: control target
= control target key end

     0   :  { %v891_v1 = vmov 0   ;;  %s1191_s1 = inlined_call_operand.vmem [shape: bf16[128,256], index: 1, kind: input, shape index: {}]   ;;  %s1192_s3 = inlined_call_operand.vmem [shape: bf16[256,512], index: 3, kind: input, shape index: {}]   ;;  %s1193_s0 = inlined_call_operand.vmem [shape: bf16[8,128], index: 0, kind: input, shape index: {}]   ;;  %s1194_s2 = inlined_call_operand.vmem [shape: f32[1,256], index: 2, kind: input, shape index: {}]   ;;  %s1195_s5 = inlined_call_operand.vmem [shape: bf16[8,256], index: 5, kind: output, shape index: {0}]   ;;  %s1196_s4 = inlined_call_operand.vmem [shape: f32[1,512], index: 4, kind: input, shape index: {}]   ;;  %s1197_s6 = inlined_call_operand.vmem [shape: f32[8,512], index: 6, kind: output, shape index: {1}]  }
   0x1   :  { %v771_v0 = vld [vmem:[%s1191_s1 + $0x4] ss:$8 sps:$4 sm:$0xff]   ;;  %164 = vmatprep.mubr.bf16.mxu0 %v891_v1  ;;  %v773_v2 = vld [vmem:[%s1191_s1] ss:$8 sps:$4 sm:$0xff]   ;;  %v774_v3 = vld [vmem:[%s1191_s1 + $0x14] ss:$8 sps:$4 sm:$0xff]  }
   0x2   :  { %132 = vmatprep.subr.bf16.mxu0 %v771_v0  ;;  %v776_v4 = vld [vmem:[%s1191_s1 + $0x10] ss:$8 sps:$4 sm:$0xff]   ;;  %v777_v5 = vld [vmem:[%s1191_s1 + $0x24] ss:$8 sps:$4 sm:$0xff]   ;;  %v779_v6 = vld [vmem:[%s1191_s1 + $0x20] ss:$8 sps:$4 sm:$0xff]  }
   0x3   :  { %133 = vmatpush1.bf16.msra.mxu0 %v773_v2  ;;  %v780_v7 = vld [vmem:[%s1191_s1 + $0x34] ss:$8 sps:$4 sm:$0xff]   ;;  %v782_v8 = vld [vmem:[%s1191_s1 + $0x30] ss:$8 sps:$4 sm:$0xff]   ;;  %v783_v10 = vld [vmem:[%s1191_s1 + $0x44] ss:$8 sps:$4 sm:$0xff]  }
   0x4   :  { %134 = vmatprep.subr.bf16.mxu0 %v774_v3  ;;  %v795_v9 = vld [vmem:[%s1192_s3 + $0x4] ss:$16 sps:$4 sm:$0xff]   ;;  %v800_v11 = vld [vmem:[%s1192_s3] ss:$16 sps:$4 sm:$0xff]   ;;  %v799_v26 = vld [vmem:[%s1192_s3 + $0xc] ss:$16 sps:$4 sm:$0xff]  }
   0x5   :  { %590 = vmatprep.subr.bf16.mxu1 %v795_v9  ;;  %v801_v12 = vld [vmem:[%s1192_s3 + $0x24] ss:$16 sps:$4 sm:$0xff]   ;;  %v785_v13 = vld [vmem:[%s1191_s1 + $0x40] ss:$8 sps:$4 sm:$0xff]   ;;  %v788_v17 = vld [vmem:[%s1191_s1 + $0x50] ss:$8 sps:$4 sm:$0xff]  }
   0x6   :  { %v786_v14 = vld [vmem:[%s1191_s1 + $0x54] ss:$8 sps:$4 sm:$0xff]   ;;  %591 = vmatpush1.bf16.msra.mxu1 %v800_v11  ;;  %v806_v15 = vld [vmem:[%s1192_s3 + $0x20] ss:$16 sps:$4 sm:$0xff]   ;;  %v789_v18 = vld [vmem:[%s1191_s1 + $0x64] ss:$8 sps:$4 sm:$0xff]  }
   0x7   :  { %135 = vmatpush1.bf16.msra.mxu0 %v776_v4  ;;  %592 = vmatprep.subr.bf16.mxu1 %v801_v12  ;;  %v807_v16 = vld [vmem:[%s1192_s3 + $0x44] ss:$16 sps:$4 sm:$0xff]   ;;  %v812_v19 = vld [vmem:[%s1192_s3 + $0x40] ss:$16 sps:$4 sm:$0xff]   ;;  %v797_v30 = vld [vmem:[%s1192_s3 + $0x8] ss:$16 sps:$4 sm:$0xff]  }
   0x8   :  { %136 = vmatprep.subr.bf16.mxu0 %v777_v5  ;;  %v813_v20 = vld [vmem:[%s1192_s3 + $0x64] ss:$16 sps:$4 sm:$0xff]   ;;  %v791_v21 = vld [vmem:[%s1191_s1 + $0x60] ss:$8 sps:$4 sm:$0xff]   ;;  %v794_v25 = vld [vmem:[%s1191_s1 + $0x70] ss:$8 sps:$4 sm:$0xff]  }
   0x9   :  { %v792_v22 = vld [vmem:[%s1191_s1 + $0x74] ss:$8 sps:$4 sm:$0xff]   ;;  %v818_v23 = vld [vmem:[%s1192_s3 + $0x60] ss:$16 sps:$4 sm:$0xff]   ;;  %v803_v34 = vld [vmem:[%s1192_s3 + $0x28] ss:$16 sps:$4 sm:$0xff]  }
   0xa   :  { %593 = vmatpush1.bf16.msra.mxu1 %v806_v15  ;;  %v819_v24 = vld [vmem:[%s1192_s3 + $0x84] ss:$16 sps:$4 sm:$0xff]   ;;  %v824_v27 = vld [vmem:[%s1192_s3 + $0x80] ss:$16 sps:$4 sm:$0xff]   ;;  %v805_v31 = vld [vmem:[%s1192_s3 + $0x2c] ss:$16 sps:$4 sm:$0xff]  }
   0xb   :  { %137 = vmatpush1.bf16.msra.mxu0 %v779_v6  ;;  %594 = vmatprep.subr.bf16.mxu1 %v807_v16  ;;  %v825_v28 = vld [vmem:[%s1192_s3 + $0xa4] ss:$16 sps:$4 sm:$0xff]   ;;  %v23_v29 = vld [vmem:[%s1193_s0] sm:$0xf]  ;;  %v811_v35 = vld [vmem:[%s1192_s3 + $0x4c] ss:$16 sps:$4 sm:$0xff]  }
   0xc   :  { %138 = vmatprep.subr.bf16.mxu0 %v780_v7  ;;  %v830_v32 = vld [vmem:[%s1192_s3 + $0xa0] ss:$16 sps:$4 sm:$0xff]   ;;  %v831_v33 = vld [vmem:[%s1192_s3 + $0xc4] ss:$16 sps:$4 sm:$0xff]   ;;  %v809_v38 = vld [vmem:[%s1192_s3 + $0x48] ss:$16 sps:$4 sm:$0xff]  }
   0xd   :  { %v836_v36 = vld [vmem:[%s1192_s3 + $0xc0] ss:$16 sps:$4 sm:$0xff]   ;;  %v837_v37 = vld [vmem:[%s1192_s3 + $0xe4] ss:$16 sps:$4 sm:$0xff]   ;;  %v817_v39 = vld [vmem:[%s1192_s3 + $0x6c] ss:$16 sps:$4 sm:$0xff]  }
   0xe   :  { %595 = vmatpush1.bf16.msra.mxu1 %v812_v19  ;;  %v842_v40 = vld [vmem:[%s1192_s3 + $0xe0] ss:$16 sps:$4 sm:$0xff]   ;;  %v843_v41 = vld [vmem:[%s1192_s3 + $0x104] ss:$16 sps:$4 sm:$0xff]   ;;  %v815_v42 = vld [vmem:[%s1192_s3 + $0x68] ss:$16 sps:$4 sm:$0xff]  }
   0xf   :  { %139 = vmatpush1.bf16.msra.mxu0 %v782_v8  ;;  %596 = vmatprep.subr.bf16.mxu1 %v813_v20  ;;  %v823_v43 = vld [vmem:[%s1192_s3 + $0x8c] ss:$16 sps:$4 sm:$0xff]   ;;  %v848_v44 = vld [vmem:[%s1192_s3 + $0x100] ss:$16 sps:$4 sm:$0xff]   ;;  %v849_v45 = vld [vmem:[%s1192_s3 + $0x124] ss:$16 sps:$4 sm:$0xff]  }
  0x10   :  { %140 = vmatprep.subr.bf16.mxu0 %v783_v10  ;;  %v821_v46 = vld [vmem:[%s1192_s3 + $0x88] ss:$16 sps:$4 sm:$0xff]   ;;  %v854_v47 = vld [vmem:[%s1192_s3 + $0x120] ss:$16 sps:$4 sm:$0xff]   ;;  %v829_v48 = vld [vmem:[%s1192_s3 + $0xac] ss:$16 sps:$4 sm:$0xff]  }
  0x11   :  { %v855_v49 = vld [vmem:[%s1192_s3 + $0x144] ss:$16 sps:$4 sm:$0xff]   ;;  %v827_v50 = vld [vmem:[%s1192_s3 + $0xa8] ss:$16 sps:$4 sm:$0xff]   ;;  %v860_v51 = vld [vmem:[%s1192_s3 + $0x140] ss:$16 sps:$4 sm:$0xff]  }
  0x12   :  { %597 = vmatpush1.bf16.msra.mxu1 %v818_v23  ;;  %v835_v52 = vld [vmem:[%s1192_s3 + $0xcc] ss:$16 sps:$4 sm:$0xff]   ;;  %v861_v53 = vld [vmem:[%s1192_s3 + $0x164] ss:$16 sps:$4 sm:$0xff]   ;;  %v833_v54 = vld [vmem:[%s1192_s3 + $0xc8] ss:$16 sps:$4 sm:$0xff]  }
  0x13   :  { %141 = vmatpush1.bf16.msra.mxu0 %v785_v13  ;;  %598 = vmatprep.subr.bf16.mxu1 %v819_v24  ;;  %v866_v55 = vld [vmem:[%s1192_s3 + $0x160] ss:$16 sps:$4 sm:$0xff]   ;;  %v841_v56 = vld [vmem:[%s1192_s3 + $0xec] ss:$16 sps:$4 sm:$0xff]   ;;  %v867_v57 = vld [vmem:[%s1192_s3 + $0x184] ss:$16 sps:$4 sm:$0xff]  }
  0x14   :  { %142 = vmatprep.subr.bf16.mxu0 %v786_v14  ;;  %v839_v58 = vld [vmem:[%s1192_s3 + $0xe8] ss:$16 sps:$4 sm:$0xff]   ;;  %v872_v59 = vld [vmem:[%s1192_s3 + $0x180] ss:$16 sps:$4 sm:$0xff]   ;;  %v847_v60 = vld [vmem:[%s1192_s3 + $0x10c] ss:$16 sps:$4 sm:$0xff]  }
  0x15   :  { %v873_v61 = vld [vmem:[%s1192_s3 + $0x1a4] ss:$16 sps:$4 sm:$0xff]   ;;  %v845_v62 = vld [vmem:[%s1192_s3 + $0x108] ss:$16 sps:$4 sm:$0xff]   ;;  %v878_v63 = vld [vmem:[%s1192_s3 + $0x1a0] ss:$16 sps:$4 sm:$0xff]  }
  0x16   :  { %599 = vmatpush1.bf16.msra.mxu1 %v824_v27  ;;  %v853_v0 = vld [vmem:[%s1192_s3 + $0x12c] ss:$16 sps:$4 sm:$0xff]   ;;  %v851_v1 = vld [vmem:[%s1192_s3 + $0x128] ss:$16 sps:$4 sm:$0xff]   ;;  %v879_v10 = vld [vmem:[%s1192_s3 + $0x1c4] ss:$16 sps:$4 sm:$0xff]  }
  0x17   :  { %143 = vmatpush1.bf16.msra.mxu0 %v788_v17  ;;  %600 = vmatprep.subr.bf16.mxu1 %v825_v28  ;;  %v859_v2 = vld [vmem:[%s1192_s3 + $0x14c] ss:$16 sps:$4 sm:$0xff]   ;;  %v857_v3 = vld [vmem:[%s1192_s3 + $0x148] ss:$16 sps:$4 sm:$0xff]   ;;  %v884_v13 = vld [vmem:[%s1192_s3 + $0x1c0] ss:$16 sps:$4 sm:$0xff]  }
  0x18   :  { %144 = vmatprep.subr.bf16.mxu0 %v789_v18  ;;  %v865_v4 = vld [vmem:[%s1192_s3 + $0x16c] ss:$16 sps:$4 sm:$0xff]   ;;  %v863_v5 = vld [vmem:[%s1192_s3 + $0x168] ss:$16 sps:$4 sm:$0xff]   ;;  %v885_v14 = vld [vmem:[%s1192_s3 + $0x1e4] ss:$16 sps:$4 sm:$0xff]   ;;  %v42_v18 = vlaneseq }
  0x19   :  { %v871_v6 = vld [vmem:[%s1192_s3 + $0x18c] ss:$16 sps:$4 sm:$0xff]   ;;  %v869_v7 = vld [vmem:[%s1192_s3 + $0x188] ss:$16 sps:$4 sm:$0xff]   ;;  %v890_v17 = vld [vmem:[%s1192_s3 + $0x1e0] ss:$16 sps:$4 sm:$0xff]  }
  0x1a   :  { %601 = vmatpush1.bf16.msra.mxu1 %v830_v32  ;;  %v877_v8 = vld [vmem:[%s1192_s3 + $0x1ac] ss:$16 sps:$4 sm:$0xff]   ;;  %v875_v9 = vld [vmem:[%s1192_s3 + $0x1a8] ss:$16 sps:$4 sm:$0xff]   ;;  %v43_v19 = vshrl.u32 %v42_v18, 7 }
  0x1b   :  { %145 = vmatpush1.bf16.msra.mxu0 %v791_v21  ;;  %602 = vmatprep.subr.bf16.mxu1 %v831_v33  ;;  %v883_v11 = vld [vmem:[%s1192_s3 + $0x1cc] ss:$16 sps:$4 sm:$0xff]   ;;  %v881_v12 = vld [vmem:[%s1192_s3 + $0x1c8] ss:$16 sps:$4 sm:$0xff]   ;;  %v40_v21 = vld [vmem:[%s1194_s2] sm:$0x3] }
  0x1c   :  { %146 = vmatprep.subr.bf16.mxu0 %v792_v22  ;;  %v889_v15 = vld [vmem:[%s1192_s3 + $0x1ec] ss:$16 sps:$4 sm:$0xff]   ;;  %v887_v16 = vld [vmem:[%s1192_s3 + $0x1e8] ss:$16 sps:$4 sm:$0xff]   ;;  %v44_v20 = vsub.s32 0, %v43_v19  ;;  %v48_v22 = vsub.s32 1, %v43_v19 }
  0x1e   :  { %603 = vmatpush1.bf16.msra.mxu1 %v836_v36  ;;  %v45_v23 = vrot.slane %v40_v21, %v44_v20  ;;  %v49_v24 = vrot.slane %v40_v21, %v48_v22  ;;  %v260_v36 = vsub.s32 2, %v43_v19 }
  0x1f   :  { %147 = vmatpush1.bf16.msra.mxu0 %v794_v25  ;;  %604 = vmatprep.subr.bf16.mxu1 %v837_v37  ;;  %v248_v37 = vld [vmem:[%s1196_s4] sm:$0xf] }
  0x20   :  { %631 = vmatprep.subr.bf16.mxu0 %v799_v26 }
  0x22   :  { %165 = vmatmul.mubr.bf16.vlgmr.msra.gmra.mrb[0].mxu0 %v23_v29  ;;  %605 = vmatpush1.bf16.msra.mxu1 %v842_v40  ;;  %v261_v40 = vrot.slane %v248_v37, %v260_v36 }
  0x23   :  { %632 = vmatpush1.bf16.msra.mxu0 %v797_v30  ;;  %606 = vmatprep.subr.bf16.mxu1 %v843_v41  ;;  %v257_v41 = vrot.slane %v248_v37, %v48_v22 }
  0x24   :  { %633 = vmatprep.subr.bf16.mxu0 %v805_v31 }
  0x26   :  { %607 = vmatpush1.bf16.msra.mxu1 %v848_v44 }
  0x27   :  { %634 = vmatpush1.bf16.msra.mxu0 %v803_v34  ;;  %608 = vmatprep.subr.bf16.mxu1 %v849_v45 }
  0x28   :  { %635 = vmatprep.subr.bf16.mxu0 %v811_v35 }
  0x2a   :  { %609 = vmatpush1.bf16.msra.mxu1 %v854_v47 }
  0x2b   :  { %636 = vmatpush1.bf16.msra.mxu0 %v809_v38  ;;  %610 = vmatprep.subr.bf16.mxu1 %v855_v49  ;;  %v264_v38 = vsub.s32 3, %v43_v19 }
  0x2c   :  { %637 = vmatprep.subr.bf16.mxu0 %v817_v39  ;;  %v253_v39 = vrot.slane %v248_v37, %v44_v20 }
  0x2e   :  { %611 = vmatpush1.bf16.msra.mxu1 %v860_v51 }
  0x2f   :  { %638 = vmatpush1.bf16.msra.mxu0 %v815_v42  ;;  %612 = vmatprep.subr.bf16.mxu1 %v861_v53  ;;  %v265_v42 = vrot.slane %v248_v37, %v264_v38 }
  0x30   :  { %639 = vmatprep.subr.bf16.mxu0 %v823_v43 }
  0x32   :  { %613 = vmatpush1.bf16.msra.mxu1 %v866_v55 }
  0x33   :  { %640 = vmatpush1.bf16.msra.mxu0 %v821_v46  ;;  %614 = vmatprep.subr.bf16.mxu1 %v867_v57 }
  0x34   :  { %641 = vmatprep.subr.bf16.mxu0 %v829_v48 }
  0x36   :  { %615 = vmatpush1.bf16.msra.mxu1 %v872_v59 }
  0x37   :  { %642 = vmatpush1.bf16.msra.mxu0 %v827_v50  ;;  %616 = vmatprep.subr.bf16.mxu1 %v873_v61 }
  0x38   :  { %643 = vmatprep.subr.bf16.mxu0 %v835_v52 }
  0x3a   :  { %617 = vmatpush1.bf16.msra.mxu1 %v878_v63 }
  0x3b   :  { %644 = vmatpush1.bf16.msra.mxu0 %v833_v54  ;;  %618 = vmatprep.subr.bf16.mxu1 %v879_v10 }
  0x3c   :  { %645 = vmatprep.subr.bf16.mxu0 %v841_v56 }
  0x3e   :  { %619 = vmatpush1.bf16.msra.mxu1 %v884_v13 }
  0x3f   :  { %646 = vmatpush1.bf16.msra.mxu0 %v839_v58  ;;  %620 = vmatprep.subr.bf16.mxu1 %v885_v14 }
  0x40   :  { %647 = vmatprep.subr.bf16.mxu0 %v847_v60 }
  0x42   :  { %621 = vmatpush1.bf16.msra.mxu1 %v890_v17 }
  0x43   :  { %648 = vmatpush1.bf16.msra.mxu0 %v845_v62 }
  0x44   :  { %649 = vmatprep.subr.bf16.mxu0 %v853_v0 }
  0x47   :  { %650 = vmatpush1.bf16.msra.mxu0 %v851_v1 }
  0x48   :  { %651 = vmatprep.subr.bf16.mxu0 %v859_v2 }
  0x4b   :  { %652 = vmatpush1.bf16.msra.mxu0 %v857_v3 }
  0x4c   :  { %653 = vmatprep.subr.bf16.mxu0 %v865_v4 }
  0x4f   :  { %654 = vmatpush1.bf16.msra.mxu0 %v863_v5 }
  0x50   :  { %655 = vmatprep.subr.bf16.mxu0 %v871_v6 }
  0x53   :  { %656 = vmatpush1.bf16.msra.mxu0 %v869_v7 }
  0x54   :  { %657 = vmatprep.subr.bf16.mxu0 %v877_v8 }
  0x57   :  { %658 = vmatpush1.bf16.msra.mxu0 %v875_v9 }
  0x58   :  { %659 = vmatprep.subr.bf16.mxu0 %v883_v11 }
  0x5b   :  { %660 = vmatpush1.bf16.msra.mxu0 %v881_v12 }
  0x5c   :  { %661 = vmatprep.subr.bf16.mxu0 %v889_v15 }
  0x5f   :  { %662 = vmatpush1.bf16.msra.mxu0 %v887_v16 }
  0xf5   :  { %v166_v25 = vpop.f32.mrb[0].mxu0 }
  0xf6   :  { %v167_v26 = vadd.f32 %v166_v25, %v45_v23  ;;  %v168_v27 = vpop.f32.mrb[1].mxu0 }
  0xf7   :  { %v169_v28 = vadd.f32 %v168_v27, %v49_v24  ;;  %v170_v29 = vpop.f32.mrb[2].mxu0 }
  0xf8   :  { %v173_v30 = vmax.f32 %v167_v26, 0.0  ;;  %v171_v31 = vpop.f32.mrb[3].mxu0 }
  0xf9   :  { %v174_v32 = vmax.f32 %v169_v28, 0.0 }
  0xfa   :  { %v175_v35 = vpack.c.bf16 %v173_v30, %v173_v30 }
  0xfb   :  { %v769_v33 = vpack.c.bf16 %v174_v32, %v173_v30  ;;  %v176_v34 = vpack.c.bf16 %v174_v32, %v174_v32 }
  0xfd   :  { %183 = vst [vmem:[%s1195_s5] sm:$0xff] %v769_v33  ;;  %622 = vmatprep.mubr.bf16.mxu1 %v176_v34  ;;  %663 = vmatprep.mubr.bf16.mxu0 %v176_v34 }
  0xfe   :  { %623 = vmatmul.mubr.bf16.vlgmr.msra.gmra.mrb[0].mxu1 %v175_v35  ;;  %664 = vmatmul.mubr.bf16.vlgmr.msra.gmra.mrb[4].mxu0 %v175_v35 }
 0x1d1   :  { %v624_v43 = vpop.f32.mrb[0].mxu1  ;;  %v665_v44 = vpop.f32.mrb[4].mxu0 }
 0x1d2   :  { %v625_v45 = vadd.f32 %v624_v43, %v253_v39  ;;  %v666_v46 = vadd.f32 %v665_v44, %v261_v40  ;;  %v626_v47 = vpop.f32.mrb[1].mxu1  ;;  %v667_v48 = vpop.f32.mrb[5].mxu0 }
 0x1d3   :  { %v627_v49 = vadd.f32 %v626_v47, %v257_v41  ;;  %v668_v50 = vadd.f32 %v667_v48, %v265_v42  ;;  %v628_v51 = vpop.f32.mrb[2].mxu1  ;;  %v669_v52 = vpop.f32.mrb[6].mxu0 }
 0x1d4   :  { %v672_v53 = vmax.f32 %v625_v45, 0.0  ;;  %v674_v54 = vmax.f32 %v666_v46, 0.0  ;;  %v629_v55 = vpop.f32.mrb[3].mxu1  ;;  %v670_v56 = vpop.f32.mrb[7].mxu0 }
 0x1d5   :  { %v673_v57 = vmax.f32 %v627_v49, 0.0  ;;  %v675_v58 = vmax.f32 %v668_v50, 0.0 }
 0x1d6   :  { %676 = vst [vmem:[%s1197_s6] sm:$0xff] %v672_v53  ;;  %678 = vst [vmem:[%s1197_s6 + $0x10] sm:$0xff] %v674_v54 }
 0x1d7   :  { %677 = vst [vmem:[%s1197_s6 + $0x8] sm:$0xff] %v673_v57  ;;  %679 = vst [vmem:[%s1197_s6 + $0x18] sm:$0xff] %v675_v58 }

</bundles_post_ra>
